<compile_context>
chip_gen: v6e
topology: v6e:2x2x1
jax: 0.10.0
libtpu: 0.0.40
codegen_flags: <defaults>
</compile_context>

<pallas_src>
import functools

import jax
import jax.numpy as jnp
from jax.experimental import pallas as pl
from jax.experimental.pallas import tpu as pltpu


def _make_resnet_block_kernel(stride, Ho, Wo, Cin, Cout, Cpad, use_proj):
    slope = 0.01  # LeakyReLU negative slope
    taps = [(dy, dx) for dy in range(3) for dx in range(3)]

    def kernel(x_ref, w1_ref, w2_ref, *rest):
        if use_proj:
            wsc_ref, o_ref = rest
        else:
            (o_ref,) = rest

        # ---- load each input (parity) plane exactly once --------------------
        if stride == 1:
            xa = x_ref[0]                                      # (Hp, Wp, Cin)

            def tap(dy, dx):
                return jax.lax.slice(xa, (dy, dx, 0),
                                     (dy + Ho, dx + Wo, Cin))
        else:
            planes = [[x_ref[0, p, q] for q in range(stride)]
                      for p in range(stride)]                  # (Hpp, Wpp, Cin)

            def tap(dy, dx):
                pln = planes[dy % stride][dx % stride]
                oy, ox = dy // stride, dx // stride
                return jax.lax.slice(pln, (oy, ox, 0),
                                     (oy + Ho, ox + Wo, Cin))

        tap_vals = [tap(dy, dx) for dy, dx in taps]            # 9 x (Ho,Wo,Cin)

        # ---- conv1 as a single im2col matmul (K = 9*Cin) ---------------------
        p1 = jnp.concatenate(tap_vals, axis=-1)                # (Ho, Wo, 9*Cin)
        p1 = p1.reshape(Ho * Wo, 9 * Cin)
        h1 = jnp.dot(p1, w1_ref[...], preferred_element_type=jnp.float32)
        h1 = jnp.where(h1 >= 0, h1, slope * h1)                # lrelu1
        h1 = h1.reshape(Ho, Wo, Cout)

        # ---- zero-pad h1 spatially in-register (no VMEM scratch) -------------
        zrow = jnp.zeros((1, Wo, Cout), jnp.float32)
        h1p = jnp.concatenate([zrow, h1, zrow], axis=0)        # (Ho+2, Wo, C)
        zcol = jnp.zeros((Ho + 2, 1, Cout), jnp.float32)
        h1p = jnp.concatenate([zcol, h1p, zcol], axis=1)       # (Ho+2, Wo+2, C)

        # ---- conv2 as a single im2col matmul (K = 9*Cout, Nout = Cpad) -------
        p2 = jnp.concatenate(
            [jax.lax.slice(h1p, (dy, dx, 0), (dy + Ho, dx + Wo, Cout))
             for dy, dx in taps], axis=-1)                     # (Ho, Wo, 9*Cout)
        p2 = p2.reshape(Ho * Wo, 9 * Cout)
        out = jnp.dot(p2, w2_ref[...],
                      preferred_element_type=jnp.float32)      # (Ho*Wo, Cpad)

        # ---- shortcut: reuse the centre tap (dy=1, dx=1) ----------------------
        xs = tap_vals[4].reshape(Ho * Wo, Cin)
        if use_proj:
            sc = jnp.dot(xs, wsc_ref[...],
                         preferred_element_type=jnp.float32)   # (Ho*Wo, Cpad)
        else:
            # identity shortcut, kept exact: lane-pad with zeros to Cpad
            sc = jnp.concatenate(
                [xs, jnp.zeros((Ho * Wo, Cpad - Cin), jnp.float32)], axis=-1)

        out = out + sc
        out = jnp.where(out >= 0, out, slope * out)            # lrelu2
        o_ref[0] = out                                         # lane-dense store

    return kernel


def resnet_block_forward(x_nchw, w1_oihw, w2_oihw, wsc_oihw=None):
    """Pallas implementation of _ResnetBlock.forward. x is NCHW float32."""
    N, Cin, H, W = x_nchw.shape
    Cout = w1_oihw.shape[0]
    stride = 1 if Cin == Cout else 2
    use_proj = stride > 1
    assert H % stride == 0 and W % stride == 0, \
        "odd spatial size with stride 2 not supported (PyTorch floor semantics)"
    Ho, Wo = H // stride, W // stride
    Cpad = -(-Cout // 128) * 128          # pad output channels to a lane multiple

    # --- layout glue: NCHW -> NHWC, +1 zero pad, (stride==2) parity planes ---
    x = jnp.transpose(x_nchw, (0, 2, 3, 1)).astype(jnp.float32)      # NHWC
    xpad = jnp.pad(x, ((0, 0), (1, 1), (1, 1), (0, 0)))
    Hp, Wp = H + 2, W + 2

    if stride == 1:
        x_in = xpad
        x_spec = pl.BlockSpec((1, Hp, Wp, Cin), lambda n: (n, 0, 0, 0))
    else:
        Hpp, Wpp = Hp // stride, Wp // stride
        x_in = (xpad.reshape(N, Hpp, stride, Wpp, stride, Cin)
                    .transpose(0, 2, 4, 1, 3, 5))        # (N, s, s, Hpp, Wpp, Cin)
        x_spec = pl.BlockSpec((1, stride, stride, Hpp, Wpp, Cin),
                              lambda n: (n, 0, 0, 0, 0, 0))

    # --- weights as im2col matrices; conv2/shortcut padded to Cpad columns ---
    w1m = (jnp.transpose(w1_oihw, (2, 3, 1, 0)).astype(jnp.float32)
              .reshape(9 * Cin, Cout))
    w2m = (jnp.transpose(w2_oihw, (2, 3, 1, 0)).astype(jnp.float32)
              .reshape(9 * Cout, Cout))
    w2m = jnp.pad(w2m, ((0, 0), (0, Cpad - Cout)))

    in_specs = [
        x_spec,
        pl.BlockSpec((9 * Cin, Cout), lambda n: (0, 0)),
        pl.BlockSpec((9 * Cout, Cpad), lambda n: (0, 0)),
    ]
    args = [x_in, w1m, w2m]
    if use_proj:
        wscm = (jnp.transpose(wsc_oihw, (2, 3, 1, 0)).astype(jnp.float32)
                   .reshape(Cin, Cout))
        wscm = jnp.pad(wscm, ((0, 0), (0, Cpad - Cout)))
        in_specs.append(pl.BlockSpec((Cin, Cpad), lambda n: (0, 0)))
        args.append(wscm)

    kernel = _make_resnet_block_kernel(stride, Ho, Wo, Cin, Cout, Cpad, use_proj)

    out = pl.pallas_call(
        kernel,
        out_shape=jax.ShapeDtypeStruct((N, Ho * Wo, Cpad), jnp.float32),
        grid=(N,),
        in_specs=in_specs,
        out_specs=pl.BlockSpec((1, Ho * Wo, Cpad), lambda n: (n, 0, 0)),
        compiler_params=pltpu.CompilerParams(
            dimension_semantics=("parallel",)),
    )(*args)

    # drop lane padding, back to NCHW
    out = out.reshape(N, Ho, Wo, Cpad)[..., :Cout]
    return jnp.transpose(out, (0, 3, 1, 2))


# ---------------------------- reference & init ------------------------------
def ref_forward(x, w1, w2, wsc=None):
    Cin, Cout = x.shape[1], w1.shape[0]
    stride = 1 if Cin == Cout else 2
    conv = functools.partial(jax.lax.conv_general_dilated,
                             dimension_numbers=('NCHW', 'OIHW', 'NCHW'),
                             precision=jax.lax.Precision.HIGHEST)
    h = conv(x, w1, (stride, stride), ((1, 1), (1, 1)))
    h = jnp.where(h >= 0, h, 0.01 * h)
    sc = x if wsc is None else conv(x, wsc, (stride, stride), ((0, 0), (0, 0)))
    out = conv(h, w2, (1, 1), ((1, 1), (1, 1))) + sc
    return jnp.where(out >= 0, out, 0.01 * out)


def xavier_uniform(key, shape):
    # shape is OIHW (PyTorch nn.Conv2d weight layout), gain = 1
    fan_out = shape[0] * shape[2] * shape[3]
    fan_in = shape[1] * shape[2] * shape[3]
    bound = (6.0 / (fan_in + fan_out)) ** 0.5
    return jax.random.uniform(key, shape, jnp.float32, -bound, bound)


if __name__ == "__main__":
    key = jax.random.PRNGKey(0)
    N, Cin, H, W = 2, 4, 16, 16
    Cout = 8
    k1, k2, k3, k4, k5, k6 = jax.random.split(key, 6)
    x = jax.random.normal(k1, (N, Cin, H, W), jnp.float32)

    # Case A: in_features == out_features  -> stride 1, identity shortcut
    w1a = xavier_uniform(k2, (Cin, Cin, 3, 3))
    w2a = xavier_uniform(k3, (Cin, Cin, 3, 3))
    out_a = resnet_block_forward(x, w1a, w2a)

    # Case B: in_features != out_features  -> stride 2, 1x1 conv shortcut
    w1b = xavier_uniform(k4, (Cout, Cin, 3, 3))
    w2b = xavier_uniform(k5, (Cout, Cout, 3, 3))
    wscb = xavier_uniform(k6, (Cout, Cin, 1, 1))
    out_b = resnet_block_forward(x, w1b, w2b, wscb)

    jax.block_until_ready((out_a, out_b))

    assert out_a.shape == (N, Cin, H, W)
    assert out_b.shape == (N, Cout, H // 2, W // 2)

    ref_a = ref_forward(x, w1a, w2a)
    ref_b = ref_forward(x, w1b, w2b, wscb)
    assert jnp.allclose(out_a, ref_a, atol=1e-3, rtol=1e-3)
    assert jnp.allclose(out_b, ref_b, atol=1e-3, rtol=1e-3)

    print("KERNEL_OK")
</pallas_src>

<mosaic_0001>
module attributes {stable_mosaic.version = 11 : i64} {
  func.func @kernel(%arg0: i32, %arg1: memref<1x18x18x4xf32, #tpu.memory_space<vmem>>, %arg2: memref<36x4xf32, #tpu.memory_space<vmem>>, %arg3: memref<36x128xf32, #tpu.memory_space<vmem>>, %arg4: memref<1x256x128xf32, #tpu.memory_space<vmem>>) attributes {dimension_semantics = [#tpu.dimension_semantics<parallel>], iteration_bounds = array<i64: 2>, scalar_prefetch = 0 : i64, scratch_operands = 0 : i64, tpu.core_type = #tpu.core_type<tc>, window_params = [{transform_indices = @transform_0, window_bounds = array<i64: 1, 18, 18, 4>}, {pipeline_mode = #tpu.pipeline_mode<synchronous>, transform_indices = @transform_1, window_bounds = array<i64: 36, 4>}, {pipeline_mode = #tpu.pipeline_mode<synchronous>, transform_indices = @transform_2, window_bounds = array<i64: 36, 128>}, {transform_indices = @transform_3, window_bounds = array<i64: 1, 256, 128>}]} {
    %c0 = arith.constant 0 : index
    %c0_0 = arith.constant 0 : index
    %c0_1 = arith.constant 0 : index
    %c0_2 = arith.constant 0 : index
    %0 = vector.load %arg1[%c0, %c0_0, %c0_1, %c0_2] : memref<1x18x18x4xf32, #tpu.memory_space<vmem>>, vector<1x18x18x4xf32>
    %1 = vector.shape_cast %0 : vector<1x18x18x4xf32> to vector<18x18x4xf32>
    %2 = vector.extract_strided_slice %1 {offsets = [0, 0, 0], sizes = [16, 16, 4], strides = [1, 1, 1]} : vector<18x18x4xf32> to vector<16x16x4xf32>
    %3 = vector.extract_strided_slice %1 {offsets = [0, 1, 0], sizes = [16, 16, 4], strides = [1, 1, 1]} : vector<18x18x4xf32> to vector<16x16x4xf32>
    %4 = vector.extract_strided_slice %1 {offsets = [0, 2, 0], sizes = [16, 16, 4], strides = [1, 1, 1]} : vector<18x18x4xf32> to vector<16x16x4xf32>
    %5 = vector.extract_strided_slice %1 {offsets = [1, 0, 0], sizes = [16, 16, 4], strides = [1, 1, 1]} : vector<18x18x4xf32> to vector<16x16x4xf32>
    %6 = vector.extract_strided_slice %1 {offsets = [1, 1, 0], sizes = [16, 16, 4], strides = [1, 1, 1]} : vector<18x18x4xf32> to vector<16x16x4xf32>
    %7 = vector.extract_strided_slice %1 {offsets = [1, 2, 0], sizes = [16, 16, 4], strides = [1, 1, 1]} : vector<18x18x4xf32> to vector<16x16x4xf32>
    %8 = vector.extract_strided_slice %1 {offsets = [2, 0, 0], sizes = [16, 16, 4], strides = [1, 1, 1]} : vector<18x18x4xf32> to vector<16x16x4xf32>
    %9 = vector.extract_strided_slice %1 {offsets = [2, 1, 0], sizes = [16, 16, 4], strides = [1, 1, 1]} : vector<18x18x4xf32> to vector<16x16x4xf32>
    %10 = vector.extract_strided_slice %1 {offsets = [2, 2, 0], sizes = [16, 16, 4], strides = [1, 1, 1]} : vector<18x18x4xf32> to vector<16x16x4xf32>
    %11 = tpu.concatenate %2, %3, %4, %5, %6, %7, %8, %9, %10 in 2 : vector<16x16x4xf32>, vector<16x16x4xf32>, vector<16x16x4xf32>, vector<16x16x4xf32>, vector<16x16x4xf32>, vector<16x16x4xf32>, vector<16x16x4xf32>, vector<16x16x4xf32>, vector<16x16x4xf32> -> vector<16x16x36xf32>
    %12 = vector.shape_cast %11 : vector<16x16x36xf32> to vector<256x36xf32>
    %c0_3 = arith.constant 0 : index
    %c0_4 = arith.constant 0 : index
    %13 = vector.load %arg2[%c0_3, %c0_4] : memref<36x4xf32, #tpu.memory_space<vmem>>, vector<36x4xf32>
    %cst = arith.constant dense<0.000000e+00> : vector<256x4xf32>
    %14 = tpu.matmul %12, %13, %cst {dimension_numbers = #tpu.dot_dimension_numbers<[1], [0], [0], [1], [0, 0, 1, 1], [], []>} : vector<256x36xf32>, vector<36x4xf32>, vector<256x4xf32> -> vector<256x4xf32>
    %cst_5 = arith.constant 0.000000e+00 : f32
    %15 = vector.broadcast %cst_5 : f32 to vector<256x4xf32>
    %16 = arith.cmpf oge, %14, %15 : vector<256x4xf32>
    %cst_6 = arith.constant 0.00999999977 : f32
    %17 = vector.broadcast %cst_6 : f32 to vector<256x4xf32>
    %18 = arith.mulf %17, %14 : vector<256x4xf32>
    %19 = arith.select %16, %14, %18 : vector<256x4xi1>, vector<256x4xf32>
    %20 = vector.shape_cast %19 : vector<256x4xf32> to vector<16x16x4xf32>
    %cst_7 = arith.constant 0.000000e+00 : f32
    %21 = vector.broadcast %cst_7 : f32 to vector<1x16x4xf32>
    %22 = tpu.concatenate %21, %20, %21 in 0 : vector<1x16x4xf32>, vector<16x16x4xf32>, vector<1x16x4xf32> -> vector<18x16x4xf32>
    %cst_8 = arith.constant 0.000000e+00 : f32
    %23 = vector.broadcast %cst_8 : f32 to vector<18x1x4xf32>
    %24 = tpu.concatenate %23, %22, %23 in 1 : vector<18x1x4xf32>, vector<18x16x4xf32>, vector<18x1x4xf32> -> vector<18x18x4xf32>
    %25 = vector.extract_strided_slice %24 {offsets = [0, 0, 0], sizes = [16, 16, 4], strides = [1, 1, 1]} : vector<18x18x4xf32> to vector<16x16x4xf32>
    %26 = vector.extract_strided_slice %24 {offsets = [0, 1, 0], sizes = [16, 16, 4], strides = [1, 1, 1]} : vector<18x18x4xf32> to vector<16x16x4xf32>
    %27 = vector.extract_strided_slice %24 {offsets = [0, 2, 0], sizes = [16, 16, 4], strides = [1, 1, 1]} : vector<18x18x4xf32> to vector<16x16x4xf32>
    %28 = vector.extract_strided_slice %24 {offsets = [1, 0, 0], sizes = [16, 16, 4], strides = [1, 1, 1]} : vector<18x18x4xf32> to vector<16x16x4xf32>
    %29 = vector.extract_strided_slice %24 {offsets = [1, 1, 0], sizes = [16, 16, 4], strides = [1, 1, 1]} : vector<18x18x4xf32> to vector<16x16x4xf32>
    %30 = vector.extract_strided_slice %24 {offsets = [1, 2, 0], sizes = [16, 16, 4], strides = [1, 1, 1]} : vector<18x18x4xf32> to vector<16x16x4xf32>
    %31 = vector.extract_strided_slice %24 {offsets = [2, 0, 0], sizes = [16, 16, 4], strides = [1, 1, 1]} : vector<18x18x4xf32> to vector<16x16x4xf32>
    %32 = vector.extract_strided_slice %24 {offsets = [2, 1, 0], sizes = [16, 16, 4], strides = [1, 1, 1]} : vector<18x18x4xf32> to vector<16x16x4xf32>
    %33 = vector.extract_strided_slice %24 {offsets = [2, 2, 0], sizes = [16, 16, 4], strides = [1, 1, 1]} : vector<18x18x4xf32> to vector<16x16x4xf32>
    %34 = tpu.concatenate %25, %26, %27, %28, %29, %30, %31, %32, %33 in 2 : vector<16x16x4xf32>, vector<16x16x4xf32>, vector<16x16x4xf32>, vector<16x16x4xf32>, vector<16x16x4xf32>, vector<16x16x4xf32>, vector<16x16x4xf32>, vector<16x16x4xf32>, vector<16x16x4xf32> -> vector<16x16x36xf32>
    %35 = vector.shape_cast %34 : vector<16x16x36xf32> to vector<256x36xf32>
    %c0_9 = arith.constant 0 : index
    %c0_10 = arith.constant 0 : index
    %36 = vector.load %arg3[%c0_9, %c0_10] : memref<36x128xf32, #tpu.memory_space<vmem>>, vector<36x128xf32>
    %cst_11 = arith.constant dense<0.000000e+00> : vector<256x128xf32>
    %37 = tpu.matmul %35, %36, %cst_11 {dimension_numbers = #tpu.dot_dimension_numbers<[1], [0], [0], [1], [0, 0, 1, 1], [], []>} : vector<256x36xf32>, vector<36x128xf32>, vector<256x128xf32> -> vector<256x128xf32>
    %38 = vector.shape_cast %6 : vector<16x16x4xf32> to vector<256x4xf32>
    %cst_12 = arith.constant 0.000000e+00 : f32
    %39 = vector.broadcast %cst_12 : f32 to vector<256x124xf32>
    %40 = tpu.concatenate %38, %39 in 1 : vector<256x4xf32>, vector<256x124xf32> -> vector<256x128xf32>
    %41 = arith.addf %37, %40 : vector<256x128xf32>
    %cst_13 = arith.constant 0.000000e+00 : f32
    %42 = vector.broadcast %cst_13 : f32 to vector<256x128xf32>
    %43 = arith.cmpf oge, %41, %42 : vector<256x128xf32>
    %cst_14 = arith.constant 0.00999999977 : f32
    %44 = vector.broadcast %cst_14 : f32 to vector<256x128xf32>
    %45 = arith.mulf %44, %41 : vector<256x128xf32>
    %46 = arith.select %43, %41, %45 : vector<256x128xi1>, vector<256x128xf32>
    %c0_15 = arith.constant 0 : index
    %c0_16 = arith.constant 0 : index
    %c0_17 = arith.constant 0 : index
    %47 = vector.load %arg4[%c0_15, %c0_16, %c0_17] : memref<1x256x128xf32, #tpu.memory_space<vmem>>, vector<1x256x128xf32>
    %48 = vector.shape_cast %47 : vector<1x256x128xf32> to vector<256x128xf32>
    %49 = vector.shape_cast %46 : vector<256x128xf32> to vector<1x256x128xf32>
    tpu.vector_store %arg4[%c0_15, %c0_16, %c0_17], %49 {strides = array<i32>} : memref<1x256x128xf32, #tpu.memory_space<vmem>>, vector<1x256x128xf32>,
    return
  }
  func.func @transform_0(%arg0: i32) -> (i32, i32, i32, i32) {
    %c0_i32 = arith.constant 0 : i32
    %c0_i32_0 = arith.constant 0 : i32
    %c0_i32_1 = arith.constant 0 : i32
    %c0_i32_2 = arith.constant 0 : i32
    return %arg0, %c0_i32, %c0_i32_0, %c0_i32_1 : i32, i32, i32, i32
  }
  func.func @transform_1(%arg0: i32) -> (i32, i32) {
    %c0_i32 = arith.constant 0 : i32
    %c0_i32_0 = arith.constant 0 : i32
    %c0_i32_1 = arith.constant 0 : i32
    return %c0_i32, %c0_i32_0 : i32, i32
  }
  func.func @transform_2(%arg0: i32) -> (i32, i32) {
    %c0_i32 = arith.constant 0 : i32
    %c0_i32_0 = arith.constant 0 : i32
    %c0_i32_1 = arith.constant 0 : i32
    return %c0_i32, %c0_i32_0 : i32, i32
  }
  func.func @transform_3(%arg0: i32) -> (i32, i32, i32) {
    %c0_i32 = arith.constant 0 : i32
    %c0_i32_0 = arith.constant 0 : i32
    %c0_i32_1 = arith.constant 0 : i32
    return %arg0, %c0_i32, %c0_i32_0 : i32, i32, i32
  }
}

</mosaic_0001>

<bundles_post_ra>
// kernel: tpu_custom_call.1
= control target key start
LH: loop header
LB: loop body
LE: loop exit
PB: predicated region body
PF: predicated region fallthrough
CT: control target
= control target key end

     0   :  { %8 = vsyncpa [#allocation3], 0  ;;  %s8083_s0 = inlined_call_operand.vmem [shape: f32[2,18,18,4], index: 0, kind: input, shape index: {}]   ;;  %s8084_s1 = inlined_call_operand.vmem [shape: f32[36,4], index: 1, kind: input, shape index: {}]   ;;  %s8085_s2 = inlined_call_operand.vmem [shape: f32[36,128], index: 2, kind: input, shape index: {}]   ;;  %s8086_s3 = inlined_call_operand.hbm [shape: f32[2,256,128], index: 3, kind: output, shape index: {}]  }
   0x1   :  { %10 = vsyncpa [#allocation3 + $0x1], 0  ;;  %s4378_s12 = smov 0   ;;  %s4380_s13 = smov 0  }
   0x2   :  { %s4382_s14 = smov 0   ;;  %s4384_s15 = smov 0  }
   0x3 LB: > { %s4399_s16 = sadd.s32 4294967295, %s4345_s15   ;;  %s3910_s17 = sadd.s32 4294967294, %s4345_s15   ;;  %s4345_s15 = sphi %s4384_s15, %s9059_s15   ;;  %s4341_s14 = sphi %s4382_s14, %s9058_s14   ;;  %s4337_s13 = sphi %s4380_s13, %s9057_s13   ;;  %s4333_s12 = sphi %s4378_s12, %s9056_s12  }
   0x4   : > { %s4403_s18 = sadd.s32 1, %s4345_s15   ;;  %s91_s19 = sadd.s32 1, %s4341_s14 }
   0x5   : > { %s88_s20 = ssub.s32 %s4345_s15, %s4403_s18  ;;  %p101_p0 = scmp.ne.s32.totalorder %s4341_s14, %s4337_s13 }
   0x6   : > { %p89_p1 = scmp.eq.s32.totalorder %s88_s20, 0  ;;  %p102_p2 = scmp.eq.s32.totalorder %s4399_s16, 1 }
   0x7   : > { %p107_p3 = scmp.ne.s32.totalorder %s4337_s13, %s4333_s12  ;;  %p108_p4 = scmp.eq.s32.totalorder %s3910_s17, 1 }
   0x8   : > { %s4414_s21 = scalar_select %p89_p1, %s4341_s14, %s91_s19  }
   0x9   : > { %p4416_p5 = por %p102_p2, %p101_p0  ;;  %p4420_p6 = por %p108_p4, %p107_p3 }
   0xa   : > { %p3913_p7 = scmp.ge.s32.totalorder %s4345_s15, 1  ;;  %p140_p8 = scmp.lt.s32.totalorder %s4345_s15, 3 }
   0xc   : > { %p141_p9 = pnand %p3913_p7, %p140_p8 }
   0xe   : > { %144 = sbr.rel (%p141_p9) target bundleno = 1627 (0x65b), region = 32 }
  0x13   : > { %p164_p10 = scmp.lt.s32.totalorder %s4399_s16, 1  ;;  %vm271_vm0 = vcmask 1046528   ;;  %s4347_s29 = smov 4   ;;  %vm448_vm1 = vcmask 1045504   ;;  %vm1593_vm2 = vcmask 1043456   ;;  %vm1227_vm3 = vcmask 31744  }
  0x14   : > { %s4348_s30 = smov 8   ;;  %s4349_s4 = smov 12   ;;  %vm1260_vm4 = vcmask 64512   ;;  %vm1293_vm5 = vcmask 97280   ;;  %vm1326_vm6 = vcmask 130048   ;;  %vm1359_vm7 = vcmask 162816  }
  0x15   : > { %s165_s24 = scalar_select %p164_p10, %s4399_s16, 1  ;;  %vm1392_vm8 = vcmask 195584   ;;  %vm1425_vm9 = vcmask 228352   ;;  %vm1458_vm10 = vcmask 261120   ;;  %vm8177_vm11 = vcmask 293888  }
  0x16   : > { %s4350_s5 = smov 16   ;;  %s4351_s6 = smov 20   ;;  %vm1951_vm12 = vcmask 1040384  }
  0x17   : > { %s4178_s25 = smul.u32 432, %s165_s24  ;;  %s4352_s7 = smov 24  }
  0x18   : > { %s4353_s8 = smov 28   ;;  %s4354_s9 = smov 32  }
  0x19   : > { %s4431_s28 = scalar_lea.vmem %s8083_s0, %s4178_s25  ;;  %s4356_s10 = smov [#allocation2]  }
  0x1a   : > { %v4434_v0 = vld [vmem:[%s4431_s28 + $0x18] sm:$0xff]  ;;  %v4437_v1 = vld [vmem:[%s4431_s28 + $0x20] sm:$0xff]  ;;  %v4445_v5 = vld [vmem:[%s4431_s28 + $0x8] sm:$0xff]  ;;  %s4289_s11 = sshll.u32 %s4356_s10, 4  ;;  %s4290_s11 = int_to_ptr.vmem [resolvable:$false] %s4289_s11 }
  0x1b   : > { %v4440_v2 = vld [vmem:[%s4431_s28] sm:$0xff]  ;;  %v277_v3 = vrot.slane %v4434_v0, 1  ;;  %v278_v4 = vrot.slane %v4437_v1, 1  ;;  %v4449_v7 = vld [vmem:[%s4431_s28 + $0x28] sm:$0x3]  ;;  %v273_v8 = vrot.slane %v4445_v5, 1 }
  0x1c   : > { %v272_v6 = vrot.slane %v4440_v2, 1  ;;  %v280_v9 = vrot.slane %v4449_v7, 1  ;;  %v4454_v10 = vld [vmem:[%s4431_s28 + $0x10] sm:$0x3]  ;;  %v4457_v11 = vld [vmem:[%s4431_s28 + $0x38] sm:$0xff]  ;;  %v4487_v24 = vld [vmem:[%s4431_s28 + $0x48] sm:$0xff] }
  0x1d   : > { %v4460_v12 = vsel %vm271_vm0, %v277_v3, %v278_v4  ;;  %v275_v13 = vrot.slane %v4454_v10, 1  ;;  %v4464_v14 = vld [vmem:[%s4431_s28 + $0x40] sm:$0x3]  ;;  %v4467_v15 = vld [vmem:[%s4431_s28 + $0x30] sm:$0xff]  ;;  %v283_v18 = vrot.slane %v4457_v11, 1  ;;  %v287_v29 = vrot.slane %v4487_v24, 1 }
  0x1e   : > { %8293 = vst [vmem:[#allocation5_spill] sm:$0xff] %v4460_v12  ;;  %356 = vrot.lane.b32.xlu1 %v4460_v12, %s4347_s29  ;;  %v274_v16 = vsel %vm271_vm0, %v272_v6, %v273_v8  ;;  %v4474_v17 = vsel %vm271_vm0, %v278_v4, %v280_v9  ;;  %v285_v19 = vrot.slane %v4464_v14, 1  ;;  %v282_v21 = vrot.slane %v4467_v15, 1  ;;  %v4481_v22 = vld [vmem:[%s4431_s28 + $0x50] sm:$0xff]  ;;  %v4484_v23 = vld [vmem:[%s4431_s28 + $0x58] sm:$0x3] }
  0x1f   : > { %352 = vrot.lane.b32.xlu0 %v274_v16, %s4347_s29  ;;  %8294 = vst [vmem:[#allocation6_spill] sm:$0xff] %v4474_v17  ;;  %v276_v20 = vsel %vm271_vm0, %v273_v8, %v275_v13  ;;  %v288_v26 = vrot.slane %v4481_v22, 1  ;;  %v290_v27 = vrot.slane %v4484_v23, 1  ;;  %v4502_v30 = vld [vmem:[%s4431_s28 + $0x68] sm:$0xff]  ;;  %v4505_v31 = vld [vmem:[%s4431_s28 + $0x70] sm:$0x3] }
  0x20   : > { %v4493_v25 = vsel %vm271_vm0, %v283_v18, %v285_v19  ;;  %v4498_v28 = vsel %vm271_vm0, %v282_v21, %v283_v18  ;;  %v4508_v32 = vld [vmem:[%s4431_s28 + $0x60] sm:$0xff]  ;;  %v293_v34 = vrot.slane %v4502_v30, 1  ;;  %v295_v35 = vrot.slane %v4505_v31, 1  ;;  %v4527_v39 = vld [vmem:[%s4431_s28 + $0x88] sm:$0x3]  ;;  %v4530_v40 = vld [vmem:[%s4431_s28 + $0x78] sm:$0xff] }
  0x21   : > { %8295 = vst [vmem:[#allocation7_spill] sm:$0xff] %v4493_v25  ;;  %8296 = vst [vmem:[#allocation8_spill] sm:$0xff] %v4498_v28  ;;  %v4515_v33 = vsel %vm271_vm0, %v288_v26, %v290_v27  ;;  %v4520_v36 = vsel %vm271_vm0, %v287_v29, %v288_v26  ;;  %v292_v37 = vrot.slane %v4508_v32, 1  ;;  %v4524_v38 = vld [vmem:[%s4431_s28 + $0x80] sm:$0xff]  ;;  %v300_v43 = vrot.slane %v4527_v39, 1  ;;  %v4546_v46 = vld [vmem:[%s4431_s28 + $0x98] sm:$0xff] }
  0x22   : > { %358 = vrot.lane.b32.xlu1 %v4474_v17, %s4347_s29  ;;  %8297 = vst [vmem:[#allocation9_spill] sm:$0xff] %v4515_v33  ;;  %8298 = vst [vmem:[#allocation10_spill] sm:$0xff] %v4520_v36  ;;  %v4537_v41 = vsel %vm271_vm0, %v293_v34, %v295_v35  ;;  %v298_v42 = vrot.slane %v4524_v38, 1  ;;  %v297_v45 = vrot.slane %v4530_v40, 1  ;;  %v4549_v47 = vld [vmem:[%s4431_s28 + $0xa0] sm:$0x3] }
  0x23   : > { %354 = vrot.lane.b32.xlu0 %v276_v20, %s4347_s29  ;;  %8299 = vst [vmem:[#allocation11_spill] sm:$0xff] %v4537_v41  ;;  %v4542_v44 = vsel %vm271_vm0, %v292_v37, %v293_v34  ;;  %v4552_v48 = vld [vmem:[%s4431_s28 + $0x90] sm:$0xff]  ;;  %v303_v50 = vrot.slane %v4546_v46, 1  ;;  %v305_v51 = vrot.slane %v4549_v47, 1  ;;  %v4571_v55 = vld [vmem:[%s4431_s28 + $0xb8] sm:$0x3] }
  0x24   : > { %8300 = vst [vmem:[#allocation12_spill] sm:$0xff] %v4542_v44  ;;  %v4559_v49 = vsel %vm271_vm0, %v298_v42, %v300_v43  ;;  %v4564_v52 = vsel %vm271_vm0, %v297_v45, %v298_v42  ;;  %v302_v53 = vrot.slane %v4552_v48, 1  ;;  %v4568_v54 = vld [vmem:[%s4431_s28 + $0xb0] sm:$0xff]  ;;  %v4574_v56 = vld [vmem:[%s4431_s28 + $0xa8] sm:$0xff]  ;;  %v310_v59 = vrot.slane %v4571_v55, 1  ;;  %v4596_v3 = vld [vmem:[%s4431_s28 + $0xc0] sm:$0xff] }
  0x25   : > { %8301 = vst [vmem:[#allocation13_spill] sm:$0xff] %v4559_v49  ;;  %8302 = vst [vmem:[#allocation14_spill] sm:$0xff] %v4564_v52  ;;  %v4581_v57 = vsel %vm271_vm0, %v303_v50, %v305_v51  ;;  %v308_v58 = vrot.slane %v4568_v54, 1  ;;  %v307_v61 = vrot.slane %v4574_v56, 1  ;;  %v4590_v62 = vld [vmem:[%s4431_s28 + $0xc8] sm:$0xff]  ;;  %v312_v13 = vrot.slane %v4596_v3, 1 }
  0x26   : > { %362 = vrot.lane.b32.xlu1 %v4493_v25, %s4347_s29  ;;  %8303 = vst [vmem:[#allocation15_spill] sm:$0xff] %v4581_v57  ;;  %v4586_v60 = vsel %vm271_vm0, %v302_v53, %v303_v50  ;;  %v4593_v63 = vld [vmem:[%s4431_s28 + $0xd0] sm:$0x3]  ;;  %v313_v6 = vrot.slane %v4590_v62, 1  ;;  %v4612_v16 = vld [vmem:[%s4431_s28 + $0xe0] sm:$0xff]  ;;  %v4618_v19 = vld [vmem:[%s4431_s28 + $0xd8] sm:$0xff] }
  0x27   : > { %360 = vrot.lane.b32.xlu0 %v4498_v28, %s4347_s29  ;;  %8304 = vst [vmem:[#allocation16_spill] sm:$0xff] %v4586_v60  ;;  %v4603_v4 = vsel %vm271_vm0, %v308_v58, %v310_v59  ;;  %v315_v8 = vrot.slane %v4593_v63, 1  ;;  %v4608_v9 = vsel %vm271_vm0, %v307_v61, %v308_v58  ;;  %v4615_v18 = vld [vmem:[%s4431_s28 + $0xe8] sm:$0x3]  ;;  %v318_v21 = vrot.slane %v4612_v16, 1  ;;  %v4634_v34 = vld [vmem:[%s4431_s28 + $0xf8] sm:$0xff] }
  0x28   : > { %8305 = vst [vmem:[#allocation17_spill] sm:$0xff] %v4603_v4  ;;  %8306 = vst [vmem:[#allocation18_spill] sm:$0xff] %v4608_v9  ;;  %v320_v26 = vrot.slane %v4615_v18, 1  ;;  %v4630_v27 = vsel %vm271_vm0, %v312_v13, %v313_v6  ;;  %v317_v29 = vrot.slane %v4618_v19, 1  ;;  %v4637_v35 = vld [vmem:[%s4431_s28 + $0x100] sm:$0x3] }
  0x29   : > { %v4625_v20 = vsel %vm271_vm0, %v313_v6, %v315_v8  ;;  %8308 = vst [vmem:[#allocation20_spill] sm:$0xff] %v4630_v27  ;;  %v4640_v37 = vld [vmem:[%s4431_s28 + $0xf0] sm:$0xff]  ;;  %v323_v43 = vrot.slane %v4634_v34, 1  ;;  %v325_v45 = vrot.slane %v4637_v35, 1  ;;  %v4659_v58 = vld [vmem:[%s4431_s28 + $0x118] sm:$0x3] }
  0x2a   : > { %366 = vrot.lane.b32.xlu1 %v4515_v33, %s4347_s29  ;;  %8307 = vst [vmem:[#allocation19_spill] sm:$0xff] %v4625_v20  ;;  %v4647_v42 = vsel %vm271_vm0, %v318_v21, %v320_v26  ;;  %v4652_v50 = vsel %vm271_vm0, %v317_v29, %v318_v21  ;;  %v322_v51 = vrot.slane %v4640_v37, 1  ;;  %v4656_v53 = vld [vmem:[%s4431_s28 + $0x110] sm:$0xff]  ;;  %v4662_v59 = vld [vmem:[%s4431_s28 + $0x108] sm:$0xff]  ;;  %v330_v8 = vrot.slane %v4659_v58, 1  ;;  %s4291_s17 = scalar_lea.vmem %s4290_s11, 8192 }
  0x2b   : > { %364 = vrot.lane.b32.xlu0 %v4520_v36, %s4347_s29  ;;  %8309 = vst [vmem:[#allocation21_spill] sm:$0xff] %v4647_v42  ;;  %8310 = vst [vmem:[#allocation22_spill] sm:$0xff] %v4652_v50  ;;  %v4669_v61 = vsel %vm271_vm0, %v323_v43, %v325_v45  ;;  %v328_v6 = vrot.slane %v4656_v53, 1  ;;  %v327_v21 = vrot.slane %v4662_v59, 1  ;;  %v4678_v26 = vld [vmem:[%s4431_s28 + $0x128] sm:$0xff] }
  0x2c   : > { %8311 = vst [vmem:[#allocation23_spill] sm:$0xff] %v4669_v61  ;;  %v4674_v13 = vsel %vm271_vm0, %v322_v51, %v323_v43  ;;  %v4681_v29 = vld [vmem:[%s4431_s28 + $0x130] sm:$0x3]  ;;  %v333_v43 = vrot.slane %v4678_v26, 1 }
  0x2d   : > { %8312 = vst [vmem:[#allocation24_spill] sm:$0xff] %v4674_v13  ;;  %v4691_v45 = vsel %vm271_vm0, %v328_v6, %v330_v8  ;;  %v335_v51 = vrot.slane %v4681_v29, 1 }
  0x2e   : > { %370 = vrot.lane.b32.xlu1 %v4537_v41, %s4347_s29  ;;  %8313 = vst [vmem:[#allocation25_spill] sm:$0xff] %v4691_v45 }
  0x2f   : > { %368 = vrot.lane.b32.xlu0 %v4542_v44, %s4347_s29  ;;  %v4713_v8 = vsel %vm271_vm0, %v333_v43, %v335_v51  ;;  %v4747_v44 = vld [vmem:[%s4431_s28 + $0x178] sm:$0x3] }
  0x30   : > { %8315 = vst [vmem:[#allocation27_spill] sm:$0xff] %v4713_v8 }
  0x32   : > { %374 = vrot.lane.b32.xlu1 %v4559_v49, %s4347_s29  ;;  %v4744_v49 = vld [vmem:[%s4431_s28 + $0x170] sm:$0xff] }
  0x33   : > { %372 = vrot.lane.b32.xlu0 %v4564_v52, %s4347_s29 }
  0x36   : > { %378 = vrot.lane.b32.xlu1 %v4581_v57, %s4347_s29 }
  0x37   : > { %376 = vrot.lane.b32.xlu0 %v4586_v60, %s4347_s29  ;;  %v4722_v60 = vld [vmem:[%s4431_s28 + $0x158] sm:$0xff] }
  0x3a   : > { %382 = vrot.lane.b32.xlu1 %v4603_v4, %s4347_s29 }
  0x3b   : > { %380 = vrot.lane.b32.xlu0 %v4608_v9, %s4347_s29 }
  0x3e   : > { %386 = vrot.lane.b32.xlu1 %v4625_v20, %s4347_s29  ;;  %v4700_v20 = vld [vmem:[%s4431_s28 + $0x140] sm:$0xff] }
  0x3f   : > { %384 = vrot.lane.b32.xlu0 %v4630_v27, %s4347_s29 }
  0x42   : > { %390 = vrot.lane.b32.xlu1 %v4647_v42, %s4347_s29  ;;  %v4696_v42 = vsel %vm271_vm0, %v327_v21, %v328_v6  ;;  %v338_v6 = vrot.slane %v4700_v20, 1 }
  0x43   : > { %388 = vrot.lane.b32.xlu0 %v4652_v50, %s4347_s29  ;;  %v4684_v50 = vld [vmem:[%s4431_s28 + $0x120] sm:$0xff]  ;;  %8314 = vst [vmem:[#allocation26_spill] sm:$0xff] %v4696_v42 }
  0x44   : > { %v332_v27 = vrot.slane %v4684_v50, 1 }
  0x46   : > { %394 = vrot.lane.b32.xlu1 %v4669_v61, %s4347_s29  ;;  %v4703_v61 = vld [vmem:[%s4431_s28 + $0x148] sm:$0x3]  ;;  %v4718_v9 = vsel %vm271_vm0, %v332_v27, %v333_v43  ;;  %v343_v27 = vrot.slane %v4722_v60, 1 }
  0x47   : > { %392 = vrot.lane.b32.xlu0 %v4674_v13, %s4347_s29  ;;  %v4706_v13 = vld [vmem:[%s4431_s28 + $0x138] sm:$0xff]  ;;  %v340_v21 = vrot.slane %v4703_v61, 1  ;;  %8316 = vst [vmem:[#allocation28_spill] sm:$0xff] %v4718_v9 }
  0x48   : > { %v337_v4 = vrot.slane %v4706_v13, 1 }
  0x49   : > { %v4735_v51 = vsel %vm271_vm0, %v338_v6, %v340_v21 }
  0x4a   : > { %398 = vrot.lane.b32.xlu1 %v4691_v45, %s4347_s29  ;;  %v4725_v45 = vld [vmem:[%s4431_s28 + $0x160] sm:$0x3]  ;;  %8317 = vst [vmem:[#allocation29_spill] sm:$0xff] %v4735_v51  ;;  %v4740_v57 = vsel %vm271_vm0, %v337_v4, %v338_v6  ;;  %v348_v4 = vrot.slane %v4744_v49, 1  ;;  %v350_v6 = vrot.slane %v4747_v44, 1 }
  0x4b   : > { %396 = vrot.lane.b32.xlu0 %v4696_v42, %s4347_s29  ;;  %v4728_v42 = vld [vmem:[%s4431_s28 + $0x150] sm:$0xff]  ;;  %v345_v43 = vrot.slane %v4725_v45, 1  ;;  %8318 = vst [vmem:[#allocation30_spill] sm:$0xff] %v4740_v57 }
  0x4c   : > { %v342_v52 = vrot.slane %v4728_v42, 1 }
  0x4d   : > { %v4757_v21 = vsel %vm271_vm0, %v343_v27, %v345_v43  ;;  %v450_v43 = vrot.slane %v4445_v5, 2  ;;  %v457_v5 = vrot.slane %v4449_v7, 2  ;;  %v459_v7 = vrot.slane %v4467_v15, 2 }
  0x4e   : > { %402 = vrot.lane.b32.xlu1 %v4713_v8, %s4347_s29  ;;  %v4750_v8 = vld [vmem:[%s4431_s28 + $0x168] sm:$0xff]  ;;  %8319 = vst [vmem:[#allocation31_spill] sm:$0xff] %v4757_v21 }
  0x4f   : > { %400 = vrot.lane.b32.xlu0 %v4718_v9, %s4347_s29  ;;  %v4762_v9 = vsel %vm271_vm0, %v342_v52, %v343_v27  ;;  %v347_v41 = vrot.slane %v4750_v8, 1  ;;  %v449_v52 = vrot.slane %v4440_v2, 2 }
  0x50   : > { %8320 = vst [vmem:[#allocation32_spill] sm:$0xff] %v4762_v9 }
  0x51   : > { %v4775_v36 = vsel %vm271_vm0, %v347_v41, %v348_v4  ;;  %v454_v41 = vrot.slane %v4434_v0, 2 }
  0x52   : > { %406 = vrot.lane.b32.xlu1 %v4735_v51, %s4347_s29  ;;  %v452_v51 = vrot.slane %v4454_v10, 2  ;;  %8322 = vst [vmem:[#allocation34_spill] sm:$0xff] %v4775_v36  ;;  %v451_v10 = vsel %vm448_vm1, %v449_v52, %v450_v43  ;;  %v465_v52 = vrot.slane %v4481_v22, 2 }
  0x53   : > { %404 = vrot.lane.b32.xlu0 %v4740_v57, %s4347_s29  ;;  %v4770_v57 = vsel %vm271_vm0, %v348_v4, %v350_v6  ;;  %v455_v6 = vrot.slane %v4437_v1, 2  ;;  %v460_v4 = vrot.slane %v4457_v11, 2 }
  0x54   : > { %8321 = vst [vmem:[#allocation33_spill] sm:$0xff] %v4770_v57  ;;  %v453_v27 = vsel %vm448_vm1, %v450_v43, %v452_v51  ;;  %v462_v51 = vrot.slane %v4464_v14, 2 }
  0x55   : > { %v4790_v2 = vsel %vm448_vm1, %v455_v6, %v457_v5  ;;  %v4808_v14 = vsel %vm448_vm1, %v459_v7, %v460_v4  ;;  %v475_v7 = vrot.slane %v4524_v38, 2 }
  0x56   : > { %410 = vrot.lane.b32.xlu1 %v4757_v21, %s4347_s29  ;;  %v4803_v43 = vsel %vm448_vm1, %v460_v4, %v462_v51  ;;  %v469_v4 = vrot.slane %v4508_v32, 2 }
  0x57   : > { %408 = vrot.lane.b32.xlu0 %v4762_v9, %s4347_s29 }
  0x5a   : > { %414 = vrot.lane.b32.xlu1 %v4770_v57, %s4347_s29 }
  0x5b   : > { %412 = vrot.lane.b32.xlu0 %v4775_v36, %s4347_s29  ;;  %v4795_v36 = vsel %vm448_vm1, %v454_v41, %v455_v6  ;;  %v464_v6 = vrot.slane %v4487_v24, 2  ;;  %v472_v41 = vrot.slane %v4505_v31, 2 }
  0x5e   : > { %531 = vrot.lane.b32.xlu1 %v453_v27, %s4348_s30  ;;  %v467_v27 = vrot.slane %v4484_v23, 2  ;;  %v4821_v23 = vsel %vm448_vm1, %v464_v6, %v465_v52 }
  0x5f   : > { %529 = vrot.lane.b32.xlu0 %v451_v10, %s4348_s30  ;;  %v470_v10 = vrot.slane %v4502_v30, 2  ;;  %8323 = vst [vmem:[#allocation35_spill] sm:$0xff] %v4821_v23 }
  0x60   : > { %v4816_v5 = vsel %vm448_vm1, %v465_v52, %v467_v27  ;;  %v477_v27 = vrot.slane %v4527_v39, 2  ;;  %v474_v52 = vrot.slane %v4530_v40, 2 }
  0x61   : > { %v4829_v51 = vsel %vm448_vm1, %v470_v10, %v472_v41  ;;  %v4834_v31 = vsel %vm448_vm1, %v469_v4, %v470_v10  ;;  %v480_v41 = vrot.slane %v4546_v46, 2  ;;  %v479_v10 = vrot.slane %v4552_v48, 2 }
  0x62   : > { %535 = vrot.lane.b32.xlu1 %v4790_v2, %s4348_s30  ;;  %8324 = vst [vmem:[#allocation36_spill] sm:$0xff] %v4834_v31  ;;  %v4842_v6 = vsel %vm448_vm1, %v475_v7, %v477_v27  ;;  %v4847_v39 = vsel %vm448_vm1, %v474_v52, %v475_v7  ;;  %v485_v27 = vrot.slane %v4568_v54, 2  ;;  %v484_v7 = vrot.slane %v4574_v56, 2 }
  0x63   : > { %533 = vrot.lane.b32.xlu0 %v4795_v36, %s4348_s30  ;;  %8325 = vst [vmem:[#allocation37_spill] sm:$0xff] %v4847_v39 }
  0x66   : > { %539 = vrot.lane.b32.xlu1 %v4803_v43, %s4348_s30 }
  0x67   : > { %537 = vrot.lane.b32.xlu0 %v4808_v14, %s4348_s30 }
  0x6a   : > { %543 = vrot.lane.b32.xlu1 %v4816_v5, %s4348_s30 }
  0x6b   : > { %541 = vrot.lane.b32.xlu0 %v4821_v23, %s4348_s30  ;;  %v482_v23 = vrot.slane %v4549_v47, 2  ;;  %v4860_v47 = vsel %vm448_vm1, %v479_v10, %v480_v41 }
  0x6c   : > { %8326 = vst [vmem:[#allocation38_spill] sm:$0xff] %v4860_v47 }
  0x6d   : > { %v4855_v4 = vsel %vm448_vm1, %v480_v41, %v482_v23  ;;  %v490_v23 = vrot.slane %v4590_v62, 2  ;;  %v489_v41 = vrot.slane %v4596_v3, 2 }
  0x6e   : > { %547 = vrot.lane.b32.xlu1 %v4829_v51, %s4348_s30 }
  0x6f   : > { %545 = vrot.lane.b32.xlu0 %v4834_v31, %s4348_s30  ;;  %v487_v31 = vrot.slane %v4571_v55, 2  ;;  %v4873_v55 = vsel %vm448_vm1, %v484_v7, %v485_v27 }
  0x70   : > { %8327 = vst [vmem:[#allocation39_spill] sm:$0xff] %v4873_v55 }
  0x71   : > { %v4868_v52 = vsel %vm448_vm1, %v485_v27, %v487_v31  ;;  %v495_v31 = vrot.slane %v4612_v16, 2  ;;  %v494_v27 = vrot.slane %v4618_v19, 2 }
  0x72   : > { %551 = vrot.lane.b32.xlu1 %v4842_v6, %s4348_s30 }
  0x73   : > { %549 = vrot.lane.b32.xlu0 %v4847_v39, %s4348_s30  ;;  %v492_v39 = vrot.slane %v4593_v63, 2  ;;  %v4886_v63 = vsel %vm448_vm1, %v489_v41, %v490_v23 }
  0x74   : > { %8329 = vst [vmem:[#allocation41_spill] sm:$0xff] %v4886_v63 }
  0x75   : > { %v4881_v10 = vsel %vm448_vm1, %v490_v23, %v492_v39  ;;  %v500_v39 = vrot.slane %v4634_v34, 2  ;;  %v499_v23 = vrot.slane %v4640_v37, 2 }
  0x76   : > { %555 = vrot.lane.b32.xlu1 %v4855_v4, %s4348_s30  ;;  %8328 = vst [vmem:[#allocation40_spill] sm:$0xff] %v4881_v10 }
  0x77   : > { %553 = vrot.lane.b32.xlu0 %v4860_v47, %s4348_s30  ;;  %v497_v47 = vrot.slane %v4615_v18, 2  ;;  %v4899_v18 = vsel %vm448_vm1, %v494_v27, %v495_v31 }
  0x78   : > { %8331 = vst [vmem:[#allocation43_spill] sm:$0xff] %v4899_v18 }
  0x79   : > { %v4894_v7 = vsel %vm448_vm1, %v495_v31, %v497_v47  ;;  %v505_v47 = vrot.slane %v4656_v53, 2  ;;  %v504_v31 = vrot.slane %v4662_v59, 2 }
  0x7a   : > { %559 = vrot.lane.b32.xlu1 %v4868_v52, %s4348_s30  ;;  %8330 = vst [vmem:[#allocation42_spill] sm:$0xff] %v4894_v7 }
  0x7b   : > { %557 = vrot.lane.b32.xlu0 %v4873_v55, %s4348_s30  ;;  %v502_v55 = vrot.slane %v4637_v35, 2  ;;  %v4912_v35 = vsel %vm448_vm1, %v499_v23, %v500_v39 }
  0x7c   : > { %8333 = vst [vmem:[#allocation45_spill] sm:$0xff] %v4912_v35 }
  0x7d   : > { %v4907_v41 = vsel %vm448_vm1, %v500_v39, %v502_v55  ;;  %v510_v55 = vrot.slane %v4678_v26, 2  ;;  %v509_v39 = vrot.slane %v4684_v50, 2 }
  0x7e   : > { %563 = vrot.lane.b32.xlu1 %v4881_v10, %s4348_s30  ;;  %8332 = vst [vmem:[#allocation44_spill] sm:$0xff] %v4907_v41 }
  0x7f   : > { %561 = vrot.lane.b32.xlu0 %v4886_v63, %s4348_s30  ;;  %v507_v63 = vrot.slane %v4659_v58, 2  ;;  %v4925_v58 = vsel %vm448_vm1, %v504_v31, %v505_v47 }
  0x80   : > { %8335 = vst [vmem:[#allocation47_spill] sm:$0xff] %v4925_v58 }
  0x81   : > { %v4920_v27 = vsel %vm448_vm1, %v505_v47, %v507_v63  ;;  %v515_v63 = vrot.slane %v4700_v20, 2  ;;  %v514_v47 = vrot.slane %v4706_v13, 2 }
  0x82   : > { %567 = vrot.lane.b32.xlu1 %v4894_v7, %s4348_s30  ;;  %8334 = vst [vmem:[#allocation46_spill] sm:$0xff] %v4920_v27 }
  0x83   : > { %565 = vrot.lane.b32.xlu0 %v4899_v18, %s4348_s30  ;;  %v512_v18 = vrot.slane %v4681_v29, 2  ;;  %v4938_v29 = vsel %vm448_vm1, %v509_v39, %v510_v55 }
  0x84   : > { %8337 = vst [vmem:[#allocation49_spill] sm:$0xff] %v4938_v29 }
  0x85   : > { %v4933_v23 = vsel %vm448_vm1, %v510_v55, %v512_v18  ;;  %v520_v18 = vrot.slane %v4722_v60, 2  ;;  %v519_v55 = vrot.slane %v4728_v42, 2 }
  0x86   : > { %571 = vrot.lane.b32.xlu1 %v4907_v41, %s4348_s30  ;;  %8336 = vst [vmem:[#allocation48_spill] sm:$0xff] %v4933_v23 }
  0x87   : > { %569 = vrot.lane.b32.xlu0 %v4912_v35, %s4348_s30  ;;  %v517_v35 = vrot.slane %v4703_v61, 2  ;;  %v4953_v61 = vsel %vm448_vm1, %v514_v47, %v515_v63  ;;  %v524_v47 = vrot.slane %v4750_v8, 2 }
  0x88   : > { %8340 = vst [vmem:[#allocation52_spill] sm:$0xff] %v4953_v61 }
  0x89   : > { %v4946_v31 = vsel %vm448_vm1, %v515_v63, %v517_v35  ;;  %v4970_v63 = vsel %vm448_vm1, %v519_v55, %v520_v18 }
  0x8a   : > { %575 = vrot.lane.b32.xlu1 %v4920_v27, %s4348_s30  ;;  %8338 = vst [vmem:[#allocation50_spill] sm:$0xff] %v4946_v31  ;;  %8343 = vst [vmem:[#allocation55_spill] sm:$0xff] %v4970_v63 }
  0x8b   : > { %573 = vrot.lane.b32.xlu0 %v4925_v58, %s4348_s30  ;;  %v522_v58 = vrot.slane %v4725_v45, 2  ;;  %v525_v45 = vrot.slane %v4744_v49, 2 }
  0x8d   : > { %v4963_v35 = vsel %vm448_vm1, %v520_v18, %v522_v58 }
  0x8e   : > { %579 = vrot.lane.b32.xlu1 %v4933_v23, %s4348_s30 }
  0x8f   : > { %577 = vrot.lane.b32.xlu0 %v4938_v29, %s4348_s30 }
  0x90   : > { %v4950_v27 = vpop.permute.xlu1 %356 }
  0x91   : > { %8339 = vst [vmem:[#allocation51_spill] sm:$0xff] %v4950_v27  ;;  %v4956_v39 = vpop.permute.xlu0 %352  ;;  %v527_v27 = vrot.slane %v4747_v44, 2  ;;  %v4985_v44 = vsel %vm448_vm1, %v524_v47, %v525_v45 }
  0x92   : > { %8341 = vst [vmem:[#allocation53_spill] sm:$0xff] %v4956_v39  ;;  %583 = vrot.lane.b32.xlu1 %v4946_v31, %s4348_s30 }
  0x93   : > { %581 = vrot.lane.b32.xlu0 %v4953_v61, %s4348_s30  ;;  %v4980_v58 = vsel %vm448_vm1, %v525_v45, %v527_v27 }
  0x94   : > { %v4967_v29 = vpop.permute.xlu1 %358 }
  0x95   : > { %8342 = vst [vmem:[#allocation54_spill] sm:$0xff] %v4967_v29  ;;  %v4973_v39 = vpop.permute.xlu0 %354 }
  0x96   : > { %8344 = vst [vmem:[#allocation56_spill] sm:$0xff] %v4973_v39  ;;  %587 = vrot.lane.b32.xlu1 %v4963_v35, %s4348_s30  ;;  %v8393_v39 = vld [vmem:[#allocation14_spill] sm:$0xff] }
  0x97   : > { %585 = vrot.lane.b32.xlu0 %v4970_v63, %s4348_s30 }
  0x98   : > { %v4982_v61 = vpop.permute.xlu1 %362 }
  0x99   : > { %8345 = vst [vmem:[#allocation57_spill] sm:$0xff] %v4982_v61  ;;  %v4987_v18 = vpop.permute.xlu0 %360  ;;  %v5119_v61 = vld [vmem:[%s4431_s28 + $0x180] sm:$0xff] }
  0x9a   : > { %8346 = vst [vmem:[#allocation58_spill] sm:$0xff] %v4987_v18  ;;  %591 = vrot.lane.b32.xlu1 %v4980_v58, %s4348_s30 }
  0x9b   : > { %589 = vrot.lane.b32.xlu0 %v4985_v44, %s4348_s30 }
  0x9c   : > { %v4993_v55 = vpop.permute.xlu1 %366 }
  0x9d   : > { %8347 = vst [vmem:[#allocation59_spill] sm:$0xff] %v4993_v55  ;;  %v4995_v29 = vpop.permute.xlu0 %364 }
  0x9e   : > { %8348 = vst [vmem:[#allocation60_spill] sm:$0xff] %v4995_v29  ;;  %629 = vrot.lane.b32.xlu1 %v4437_v1, %s4349_s4 }
  0x9f   : > { %627 = vrot.lane.b32.xlu0 %v4434_v0, %s4349_s4 }
  0xa0   : > { %v5001_v27 = vpop.permute.xlu1 %370 }
  0xa1   : > { %8349 = vst [vmem:[#allocation61_spill] sm:$0xff] %v5001_v27  ;;  %v5003_v45 = vpop.permute.xlu0 %368 }
  0xa2   : > { %8350 = vst [vmem:[#allocation62_spill] sm:$0xff] %v5003_v45  ;;  %633 = vrot.lane.b32.xlu1 %v4457_v11, %s4349_s4 }
  0xa3   : > { %631 = vrot.lane.b32.xlu0 %v4467_v15, %s4349_s4 }
  0xa4   : > { %v5009_v47 = vpop.permute.xlu1 %374 }
  0xa5   : > { %8351 = vst [vmem:[#allocation63_spill] sm:$0xff] %v5009_v47  ;;  %v5011_v55 = vpop.permute.xlu0 %372 }
  0xa6   : > { %8352 = vst [vmem:[#allocation64_spill] sm:$0xff] %v5011_v55  ;;  %637 = vrot.lane.b32.xlu1 %v4481_v22, %s4349_s4 }
  0xa7   : > { %635 = vrot.lane.b32.xlu0 %v4487_v24, %s4349_s4 }
  0xa8   : > { %v5017_v0 = vpop.permute.xlu1 %378 }
  0xa9   : > { %8353 = vst [vmem:[#allocation65_spill] sm:$0xff] %v5017_v0  ;;  %v5019_v1 = vpop.permute.xlu0 %376 }
  0xaa   : > { %8354 = vst [vmem:[#allocation66_spill] sm:$0xff] %v5019_v1  ;;  %641 = vrot.lane.b32.xlu1 %v4502_v30, %s4349_s4 }
  0xab   : > { %639 = vrot.lane.b32.xlu0 %v4508_v32, %s4349_s4 }
  0xac   : > { %v5025_v27 = vpop.permute.xlu1 %382 }
  0xad   : > { %8355 = vst [vmem:[#allocation67_spill] sm:$0xff] %v5025_v27  ;;  %v5027_v47 = vpop.permute.xlu0 %380 }
  0xae   : > { %8356 = vst [vmem:[#allocation68_spill] sm:$0xff] %v5027_v47  ;;  %645 = vrot.lane.b32.xlu1 %v4524_v38, %s4349_s4 }
  0xaf   : > { %643 = vrot.lane.b32.xlu0 %v4530_v40, %s4349_s4 }
  0xb0   : > { %v5033_v55 = vpop.permute.xlu1 %386 }
  0xb1   : > { %8357 = vst [vmem:[#allocation69_spill] sm:$0xff] %v5033_v55  ;;  %v5035_v0 = vpop.permute.xlu0 %384 }
  0xb2   : > { %8358 = vst [vmem:[#allocation70_spill] sm:$0xff] %v5035_v0  ;;  %649 = vrot.lane.b32.xlu1 %v4546_v46, %s4349_s4 }
  0xb3   : > { %647 = vrot.lane.b32.xlu0 %v4552_v48, %s4349_s4 }
  0xb4   : > { %v5041_v1 = vpop.permute.xlu1 %390 }
  0xb5   : > { %8359 = vst [vmem:[#allocation71_spill] sm:$0xff] %v5041_v1  ;;  %v5043_v27 = vpop.permute.xlu0 %388 }
  0xb6   : > { %8360 = vst [vmem:[#allocation72_spill] sm:$0xff] %v5043_v27  ;;  %653 = vrot.lane.b32.xlu1 %v4568_v54, %s4349_s4 }
  0xb7   : > { %651 = vrot.lane.b32.xlu0 %v4574_v56, %s4349_s4 }
  0xb8   : > { %v5049_v47 = vpop.permute.xlu1 %394 }
  0xb9   : > { %8361 = vst [vmem:[#allocation73_spill] sm:$0xff] %v5049_v47  ;;  %v5051_v55 = vpop.permute.xlu0 %392 }
  0xba   : > { %8362 = vst [vmem:[#allocation74_spill] sm:$0xff] %v5051_v55  ;;  %657 = vrot.lane.b32.xlu1 %v4590_v62, %s4349_s4 }
  0xbb   : > { %655 = vrot.lane.b32.xlu0 %v4596_v3, %s4349_s4 }
  0xbc   : > { %v5057_v0 = vpop.permute.xlu1 %398 }
  0xbd   : > { %8363 = vst [vmem:[#allocation75_spill] sm:$0xff] %v5057_v0  ;;  %v5059_v1 = vpop.permute.xlu0 %396 }
  0xbe   : > { %8364 = vst [vmem:[#allocation76_spill] sm:$0xff] %v5059_v1  ;;  %661 = vrot.lane.b32.xlu1 %v4612_v16, %s4349_s4 }
  0xbf   : > { %659 = vrot.lane.b32.xlu0 %v4618_v19, %s4349_s4 }
  0xc0   : > { %v5065_v27 = vpop.permute.xlu1 %402 }
  0xc1   : > { %8365 = vst [vmem:[#allocation77_spill] sm:$0xff] %v5065_v27  ;;  %v5067_v47 = vpop.permute.xlu0 %400 }
  0xc2   : > { %8366 = vst [vmem:[#allocation78_spill] sm:$0xff] %v5067_v47  ;;  %665 = vrot.lane.b32.xlu1 %v4634_v34, %s4349_s4 }
  0xc3   : > { %663 = vrot.lane.b32.xlu0 %v4640_v37, %s4349_s4 }
  0xc4   : > { %v5073_v55 = vpop.permute.xlu1 %406 }
  0xc5   : > { %8367 = vst [vmem:[#allocation79_spill] sm:$0xff] %v5073_v55  ;;  %v5075_v0 = vpop.permute.xlu0 %404 }
  0xc6   : > { %8368 = vst [vmem:[#allocation80_spill] sm:$0xff] %v5075_v0  ;;  %669 = vrot.lane.b32.xlu1 %v4656_v53, %s4349_s4 }
  0xc7   : > { %667 = vrot.lane.b32.xlu0 %v4662_v59, %s4349_s4 }
  0xc8   : > { %v5081_v1 = vpop.permute.xlu1 %410 }
  0xc9   : > { %8369 = vst [vmem:[#allocation81_spill] sm:$0xff] %v5081_v1  ;;  %v5083_v47 = vpop.permute.xlu0 %408 }
  0xca   : > { %8370 = vst [vmem:[#allocation82_spill] sm:$0xff] %v5083_v47  ;;  %673 = vrot.lane.b32.xlu1 %v4678_v26, %s4349_s4 }
  0xcb   : > { %671 = vrot.lane.b32.xlu0 %v4684_v50, %s4349_s4 }
  0xcc   : > { %v5089_v55 = vpop.permute.xlu1 %414 }
  0xcd   : > { %8371 = vst [vmem:[#allocation83_spill] sm:$0xff] %v5089_v55  ;;  %v5091_v0 = vpop.permute.xlu0 %412 }
  0xce   : > { %8372 = vst [vmem:[#allocation84_spill] sm:$0xff] %v5091_v0  ;;  %677 = vrot.lane.b32.xlu1 %v4700_v20, %s4349_s4  ;;  %v5114_v0 = vld [vmem:[%s4431_s28 + $0x188] sm:$0xff] }
  0xcf   : > { %675 = vrot.lane.b32.xlu0 %v4706_v13, %s4349_s4 }
  0xd0   : > { %v5097_v1 = vpop.permute.xlu1 %531 }
  0xd1   : > { %8373 = vst [vmem:[#allocation85_spill] sm:$0xff] %v5097_v1  ;;  %v5099_v47 = vpop.permute.xlu0 %529  ;;  %v8389_v1 = vld [vmem:[#allocation12_spill] sm:$0xff] }
  0xd2   : > { %8374 = vst [vmem:[#allocation86_spill] sm:$0xff] %v5099_v47  ;;  %681 = vrot.lane.b32.xlu1 %v4722_v60, %s4349_s4 }
  0xd3   : > { %679 = vrot.lane.b32.xlu0 %v4728_v42, %s4349_s4 }
  0xd4   : > { %v5105_v27 = vpop.permute.xlu1 %535 }
  0xd5   : > { %8375 = vst [vmem:[#allocation87_spill] sm:$0xff] %v5105_v27  ;;  %v5107_v55 = vpop.permute.xlu0 %533 }
  0xd6   : > { %8376 = vst [vmem:[#allocation88_spill] sm:$0xff] %v5107_v55  ;;  %685 = vrot.lane.b32.xlu1 %v4744_v49, %s4349_s4 }
  0xd7   : > { %683 = vrot.lane.b32.xlu0 %v4750_v8, %s4349_s4 }
  0xd8   : > { %v5116_v45 = vpop.permute.xlu1 %539 }
  0xd9   : > { %8377 = vst [vmem:[#allocation89_spill] sm:$0xff] %v5116_v45  ;;  %v5121_v29 = vpop.permute.xlu0 %537 }
  0xda   : > { %8378 = vst [vmem:[#allocation90_spill] sm:$0xff] %v5121_v29  ;;  %689 = vrot.lane.b32.xlu1 %v5114_v0, %s4349_s4 }
  0xdb   : > { %687 = vrot.lane.b32.xlu0 %v5119_v61, %s4349_s4 }
  0xdc   : > { %v5127_v27 = vpop.permute.xlu1 %543 }
  0xdd   : > { %8379 = vst [vmem:[#allocation91_spill] sm:$0xff] %v5127_v27  ;;  %v5129_v18 = vpop.permute.xlu0 %541 }
  0xde   : > { %8380 = vst [vmem:[#allocation92_spill] sm:$0xff] %v5129_v18  ;;  %731 = vrot.lane.b32.xlu1 %v4474_v17, %s4350_s5  ;;  %v8385_v17 = vld [vmem:[#allocation10_spill] sm:$0xff] }
  0xdf   : > { %729 = vrot.lane.b32.xlu0 %v4460_v12, %s4350_s5 }
  0xe0   : > { %v5135_v45 = vpop.permute.xlu1 %547 }
  0xe1   : > { %8381 = vst [vmem:[#allocation93_spill] sm:$0xff] %v5135_v45  ;;  %v5137_v29 = vpop.permute.xlu0 %545 }
  0xe2   : > { %8382 = vst [vmem:[#allocation94_spill] sm:$0xff] %v5137_v29  ;;  %735 = vrot.lane.b32.xlu1 %v4493_v25, %s4350_s5  ;;  %v8388_v29 = vld [vmem:[#allocation11_spill] sm:$0xff] }
  0xe3   : > { %733 = vrot.lane.b32.xlu0 %v4498_v28, %s4350_s5 }
  0xe4   : > { %v5143_v27 = vpop.permute.xlu1 %551 }
  0xe5   : > { %8383 = vst [vmem:[#allocation95_spill] sm:$0xff] %v5143_v27  ;;  %v5145_v18 = vpop.permute.xlu0 %549 }
  0xe6   : > { %8384 = vst [vmem:[#allocation96_spill] sm:$0xff] %v5145_v18  ;;  %739 = vrot.lane.b32.xlu1 %v4515_v33, %s4350_s5  ;;  %v8392_v18 = vld [vmem:[#allocation13_spill] sm:$0xff] }
  0xe7   : > { %737 = vrot.lane.b32.xlu0 %v8385_v17, %s4350_s5 }
  0xe8   : > { %v5151_v12 = vpop.permute.xlu1 %555 }
  0xe9   : > { %8386 = vst [vmem:[#allocation97_spill] sm:$0xff] %v5151_v12  ;;  %v5153_v45 = vpop.permute.xlu0 %553 }
  0xea   : > { %8387 = vst [vmem:[#allocation98_spill] sm:$0xff] %v5153_v45  ;;  %743 = vrot.lane.b32.xlu1 %v8388_v29, %s4350_s5  ;;  %v8396_v45 = vld [vmem:[#allocation15_spill] sm:$0xff]  ;;  %v8397_v29 = vld [vmem:[#allocation16_spill] sm:$0xff] }
  0xeb   : > { %741 = vrot.lane.b32.xlu0 %v8389_v1, %s4350_s5 }
  0xec   : > { %v5159_v55 = vpop.permute.xlu1 %559 }
  0xed   : > { %8390 = vst [vmem:[#allocation99_spill] sm:$0xff] %v5159_v55  ;;  %v5161_v27 = vpop.permute.xlu0 %557 }
  0xee   : > { %8391 = vst [vmem:[#allocation100_spill] sm:$0xff] %v5161_v27  ;;  %747 = vrot.lane.b32.xlu1 %v8392_v18, %s4350_s5  ;;  %v8400_v27 = vld [vmem:[#allocation17_spill] sm:$0xff]  ;;  %v8401_v18 = vld [vmem:[#allocation18_spill] sm:$0xff] }
  0xef   : > { %745 = vrot.lane.b32.xlu0 %v8393_v39, %s4350_s5 }
  0xf0   : > { %v5167_v47 = vpop.permute.xlu1 %563 }
  0xf1   : > { %8394 = vst [vmem:[#allocation101_spill] sm:$0xff] %v5167_v47  ;;  %v5169_v12 = vpop.permute.xlu0 %561 }
  0xf2   : > { %8395 = vst [vmem:[#allocation102_spill] sm:$0xff] %v5169_v12  ;;  %751 = vrot.lane.b32.xlu1 %v8396_v45, %s4350_s5  ;;  %v8404_v12 = vld [vmem:[#allocation19_spill] sm:$0xff]  ;;  %v8405_v45 = vld [vmem:[#allocation20_spill] sm:$0xff] }
  0xf3   : > { %749 = vrot.lane.b32.xlu0 %v8397_v29, %s4350_s5 }
  0xf4   : > { %v5175_v1 = vpop.permute.xlu1 %567 }
  0xf5   : > { %8398 = vst [vmem:[#allocation103_spill] sm:$0xff] %v5175_v1  ;;  %v5177_v55 = vpop.permute.xlu0 %565 }
  0xf6   : > { %8399 = vst [vmem:[#allocation104_spill] sm:$0xff] %v5177_v55  ;;  %755 = vrot.lane.b32.xlu1 %v8400_v27, %s4350_s5  ;;  %v8408_v55 = vld [vmem:[#allocation21_spill] sm:$0xff]  ;;  %v8409_v27 = vld [vmem:[#allocation22_spill] sm:$0xff] }
  0xf7   : > { %753 = vrot.lane.b32.xlu0 %v8401_v18, %s4350_s5 }
  0xf8   : > { %v5183_v39 = vpop.permute.xlu1 %571 }
  0xf9   : > { %8402 = vst [vmem:[#allocation105_spill] sm:$0xff] %v5183_v39  ;;  %v5185_v47 = vpop.permute.xlu0 %569 }
  0xfa   : > { %8403 = vst [vmem:[#allocation106_spill] sm:$0xff] %v5185_v47  ;;  %759 = vrot.lane.b32.xlu1 %v8404_v12, %s4350_s5  ;;  %v8412_v47 = vld [vmem:[#allocation23_spill] sm:$0xff] }
  0xfb   : > { %757 = vrot.lane.b32.xlu0 %v8405_v45, %s4350_s5  ;;  %v8413_v45 = vld [vmem:[#allocation24_spill] sm:$0xff]  ;;  %v8420_v12 = vld [vmem:[#allocation27_spill] sm:$0xff] }
  0xfc   : > { %v5191_v29 = vpop.permute.xlu1 %575 }
  0xfd   : > { %8406 = vst [vmem:[#allocation107_spill] sm:$0xff] %v5191_v29  ;;  %v5193_v1 = vpop.permute.xlu0 %573 }
  0xfe   : > { %8407 = vst [vmem:[#allocation108_spill] sm:$0xff] %v5193_v1  ;;  %763 = vrot.lane.b32.xlu1 %v8408_v55, %s4350_s5  ;;  %v8416_v55 = vld [vmem:[#allocation25_spill] sm:$0xff] }
  0xff   : > { %761 = vrot.lane.b32.xlu0 %v8409_v27, %s4350_s5  ;;  %v8417_v27 = vld [vmem:[#allocation26_spill] sm:$0xff] }
 0x100   : > { %v5199_v18 = vpop.permute.xlu1 %579 }
 0x101   : > { %8410 = vst [vmem:[#allocation109_spill] sm:$0xff] %v5199_v18  ;;  %v5201_v39 = vpop.permute.xlu0 %577 }
 0x102   : > { %8411 = vst [vmem:[#allocation110_spill] sm:$0xff] %v5201_v39  ;;  %767 = vrot.lane.b32.xlu1 %v8412_v47, %s4350_s5  ;;  %v8421_v47 = vld [vmem:[#allocation28_spill] sm:$0xff] }
 0x103   : > { %765 = vrot.lane.b32.xlu0 %v8413_v45, %s4350_s5 }
 0x104   : > { %v5207_v29 = vpop.permute.xlu1 %583 }
 0x105   : > { %8414 = vst [vmem:[#allocation111_spill] sm:$0xff] %v5207_v29  ;;  %v5209_v1 = vpop.permute.xlu0 %581 }
 0x106   : > { %8415 = vst [vmem:[#allocation112_spill] sm:$0xff] %v5209_v1  ;;  %771 = vrot.lane.b32.xlu1 %v8416_v55, %s4350_s5  ;;  %v8424_v1 = vld [vmem:[#allocation29_spill] sm:$0xff]  ;;  %v8425_v55 = vld [vmem:[#allocation30_spill] sm:$0xff] }
 0x107   : > { %769 = vrot.lane.b32.xlu0 %v8417_v27, %s4350_s5 }
 0x108   : > { %v5215_v18 = vpop.permute.xlu1 %587 }
 0x109   : > { %8418 = vst [vmem:[#allocation113_spill] sm:$0xff] %v5215_v18  ;;  %v5217_v39 = vpop.permute.xlu0 %585  ;;  %v5234_v18 = vld [vmem:[%s4431_s28 + $0x190] sm:$0x3] }
 0x10a   : > { %8419 = vst [vmem:[#allocation114_spill] sm:$0xff] %v5217_v39  ;;  %775 = vrot.lane.b32.xlu1 %v8420_v12, %s4350_s5 }
 0x10b   : > { %773 = vrot.lane.b32.xlu0 %v8421_v47, %s4350_s5  ;;  %v725_v47 = vrot.slane %v5114_v0, 1 }
 0x10c   : > { %v5223_v45 = vpop.permute.xlu1 %591 }
 0x10d   : > { %8422 = vst [vmem:[#allocation115_spill] sm:$0xff] %v5223_v45  ;;  %v5225_v29 = vpop.permute.xlu0 %589  ;;  %v724_v45 = vrot.slane %v5119_v61, 1 }
 0x10e   : > { %8423 = vst [vmem:[#allocation116_spill] sm:$0xff] %v5225_v29  ;;  %779 = vrot.lane.b32.xlu1 %v8424_v1, %s4350_s5  ;;  %v727_v29 = vrot.slane %v5234_v18, 1 }
 0x10f   : > { %777 = vrot.lane.b32.xlu0 %v8425_v55, %s4350_s5 }
 0x110   : > { %v5231_v27 = vpop.permute.xlu1 %629 }
 0x111   : > { %8426 = vst [vmem:[#allocation117_spill] sm:$0xff] %v5231_v27  ;;  %v5236_v39 = vpop.permute.xlu0 %627  ;;  %v8430_v27 = vld [vmem:[#allocation34_spill] sm:$0xff] }
 0x112   : > { %8427 = vst [vmem:[#allocation118_spill] sm:$0xff] %v5236_v39  ;;  %783 = vrot.lane.b32.xlu1 %v4757_v21, %s4350_s5  ;;  %v5254_v39 = vsel %vm271_vm0, %v725_v47, %v727_v29 }
 0x113   : > { %781 = vrot.lane.b32.xlu0 %v4762_v9, %s4350_s5  ;;  %8431 = vst [vmem:[#allocation121_spill] sm:$0xff] %v5254_v39  ;;  %v5259_v9 = vsel %vm271_vm0, %v724_v45, %v725_v47 }
 0x114   : > { %v5245_v1 = vpop.permute.xlu1 %633  ;;  %8433 = vst [vmem:[#allocation123_spill] sm:$0xff] %v5259_v9 }
 0x115   : > { %8428 = vst [vmem:[#allocation119_spill] sm:$0xff] %v5245_v1  ;;  %v5247_v55 = vpop.permute.xlu0 %631 }
 0x116   : > { %8429 = vst [vmem:[#allocation120_spill] sm:$0xff] %v5247_v55  ;;  %787 = vrot.lane.b32.xlu1 %v4770_v57, %s4350_s5 }
 0x117   : > { %785 = vrot.lane.b32.xlu0 %v8430_v27, %s4350_s5 }
 0x118   : > { %v5256_v21 = vpop.permute.xlu1 %637 }
 0x119   : > { %8432 = vst [vmem:[#allocation122_spill] sm:$0xff] %v5256_v21  ;;  %v5261_v12 = vpop.permute.xlu0 %635 }
 0x11a   : > { %8434 = vst [vmem:[#allocation124_spill] sm:$0xff] %v5261_v12  ;;  %791 = vrot.lane.b32.xlu1 %v5254_v39, %s4350_s5 }
 0x11b   : > { %789 = vrot.lane.b32.xlu0 %v5259_v9, %s4350_s5 }
 0x11c   : > { %v5267_v1 = vpop.permute.xlu1 %641 }
 0x11d   : > { %8435 = vst [vmem:[#allocation125_spill] sm:$0xff] %v5267_v1  ;;  %v5269_v55 = vpop.permute.xlu0 %639 }
 0x11e   : > { %8436 = vst [vmem:[#allocation126_spill] sm:$0xff] %v5269_v55  ;;  %832 = vrot.lane.b32.xlu1 %v4790_v2, %s4351_s6  ;;  %v8441_v2 = vld [vmem:[#allocation35_spill] sm:$0xff] }
 0x11f   : > { %830 = vrot.lane.b32.xlu0 %v4795_v36, %s4351_s6 }
 0x120   : > { %v5275_v29 = vpop.permute.xlu1 %645 }
 0x121   : > { %8437 = vst [vmem:[#allocation127_spill] sm:$0xff] %v5275_v29  ;;  %v5277_v45 = vpop.permute.xlu0 %643 }
 0x122   : > { %8438 = vst [vmem:[#allocation128_spill] sm:$0xff] %v5277_v45  ;;  %836 = vrot.lane.b32.xlu1 %v4803_v43, %s4351_s6  ;;  %v8444_v45 = vld [vmem:[#allocation36_spill] sm:$0xff] }
 0x123   : > { %834 = vrot.lane.b32.xlu0 %v4808_v14, %s4351_s6 }
 0x124   : > { %v5283_v47 = vpop.permute.xlu1 %649 }
 0x125   : > { %8439 = vst [vmem:[#allocation129_spill] sm:$0xff] %v5283_v47  ;;  %v5285_v1 = vpop.permute.xlu0 %647 }
 0x126   : > { %8440 = vst [vmem:[#allocation130_spill] sm:$0xff] %v5285_v1  ;;  %840 = vrot.lane.b32.xlu1 %v4816_v5, %s4351_s6  ;;  %v8447_v1 = vld [vmem:[#allocation37_spill] sm:$0xff] }
 0x127   : > { %838 = vrot.lane.b32.xlu0 %v8441_v2, %s4351_s6 }
 0x128   : > { %v5291_v36 = vpop.permute.xlu1 %653 }
 0x129   : > { %8442 = vst [vmem:[#allocation35_spill] sm:$0xff] %v5291_v36  ;;  %v5293_v29 = vpop.permute.xlu0 %651 }
 0x12a   : > { %8443 = vst [vmem:[#allocation131_spill] sm:$0xff] %v5293_v29  ;;  %844 = vrot.lane.b32.xlu1 %v4829_v51, %s4351_s6  ;;  %v8450_v29 = vld [vmem:[#allocation38_spill] sm:$0xff] }
 0x12b   : > { %842 = vrot.lane.b32.xlu0 %v8444_v45, %s4351_s6 }
 0x12c   : > { %v5299_v21 = vpop.permute.xlu1 %657 }
 0x12d   : > { %8445 = vst [vmem:[#allocation36_spill] sm:$0xff] %v5299_v21  ;;  %v5301_v47 = vpop.permute.xlu0 %655 }
 0x12e   : > { %8446 = vst [vmem:[#allocation132_spill] sm:$0xff] %v5301_v47  ;;  %848 = vrot.lane.b32.xlu1 %v4842_v6, %s4351_s6  ;;  %v8453_v47 = vld [vmem:[#allocation39_spill] sm:$0xff] }
 0x12f   : > { %846 = vrot.lane.b32.xlu0 %v8447_v1, %s4351_s6 }
 0x130   : > { %v5307_v55 = vpop.permute.xlu1 %661 }
 0x131   : > { %8448 = vst [vmem:[#allocation37_spill] sm:$0xff] %v5307_v55  ;;  %v5309_v36 = vpop.permute.xlu0 %659 }
 0x132   : > { %8449 = vst [vmem:[#allocation133_spill] sm:$0xff] %v5309_v36  ;;  %852 = vrot.lane.b32.xlu1 %v4855_v4, %s4351_s6  ;;  %v8456_v36 = vld [vmem:[#allocation41_spill] sm:$0xff] }
 0x133   : > { %850 = vrot.lane.b32.xlu0 %v8450_v29, %s4351_s6 }
 0x134   : > { %v5315_v12 = vpop.permute.xlu1 %665 }
 0x135   : > { %8451 = vst [vmem:[#allocation38_spill] sm:$0xff] %v5315_v12  ;;  %v5317_v21 = vpop.permute.xlu0 %663 }
 0x136   : > { %8452 = vst [vmem:[#allocation134_spill] sm:$0xff] %v5317_v21  ;;  %856 = vrot.lane.b32.xlu1 %v4868_v52, %s4351_s6  ;;  %v8459_v21 = vld [vmem:[#allocation43_spill] sm:$0xff] }
 0x137   : > { %854 = vrot.lane.b32.xlu0 %v8453_v47, %s4351_s6 }
 0x138   : > { %v5323_v9 = vpop.permute.xlu1 %669 }
 0x139   : > { %8454 = vst [vmem:[#allocation39_spill] sm:$0xff] %v5323_v9  ;;  %v5325_v55 = vpop.permute.xlu0 %667 }
 0x13a   : > { %8455 = vst [vmem:[#allocation135_spill] sm:$0xff] %v5325_v55  ;;  %860 = vrot.lane.b32.xlu1 %v4881_v10, %s4351_s6  ;;  %v8462_v55 = vld [vmem:[#allocation45_spill] sm:$0xff] }
 0x13b   : > { %858 = vrot.lane.b32.xlu0 %v8456_v36, %s4351_s6 }
 0x13c   : > { %v5331_v39 = vpop.permute.xlu1 %673 }
 0x13d   : > { %8457 = vst [vmem:[#allocation41_spill] sm:$0xff] %v5331_v39  ;;  %v5333_v12 = vpop.permute.xlu0 %671 }
 0x13e   : > { %8458 = vst [vmem:[#allocation136_spill] sm:$0xff] %v5333_v12  ;;  %864 = vrot.lane.b32.xlu1 %v4894_v7, %s4351_s6  ;;  %v8465_v12 = vld [vmem:[#allocation46_spill] sm:$0xff]  ;;  %v8466_v7 = vld [vmem:[#allocation47_spill] sm:$0xff] }
 0x13f   : > { %862 = vrot.lane.b32.xlu0 %v8459_v21, %s4351_s6 }
 0x140   : > { %v5339_v27 = vpop.permute.xlu1 %677 }
 0x141   : > { %8460 = vst [vmem:[#allocation43_spill] sm:$0xff] %v5339_v27  ;;  %v5341_v9 = vpop.permute.xlu0 %675 }
 0x142   : > { %8461 = vst [vmem:[#allocation137_spill] sm:$0xff] %v5341_v9  ;;  %868 = vrot.lane.b32.xlu1 %v4907_v41, %s4351_s6  ;;  %v8469_v9 = vld [vmem:[#allocation49_spill] sm:$0xff] }
 0x143   : > { %866 = vrot.lane.b32.xlu0 %v8462_v55, %s4351_s6 }
 0x144   : > { %v5347_v57 = vpop.permute.xlu1 %681 }
 0x145   : > { %8463 = vst [vmem:[#allocation45_spill] sm:$0xff] %v5347_v57  ;;  %v5349_v39 = vpop.permute.xlu0 %679 }
 0x146   : > { %8464 = vst [vmem:[#allocation138_spill] sm:$0xff] %v5349_v39  ;;  %872 = vrot.lane.b32.xlu1 %v8465_v12, %s4351_s6  ;;  %v8472_v39 = vld [vmem:[#allocation52_spill] sm:$0xff] }
 0x147   : > { %870 = vrot.lane.b32.xlu0 %v8466_v7, %s4351_s6 }
 0x148   : > { %v5355_v10 = vpop.permute.xlu1 %685 }
 0x149   : > { %8467 = vst [vmem:[#allocation47_spill] sm:$0xff] %v5355_v10  ;;  %v5357_v27 = vpop.permute.xlu0 %683 }
 0x14a   : > { %8468 = vst [vmem:[#allocation139_spill] sm:$0xff] %v5357_v27  ;;  %876 = vrot.lane.b32.xlu1 %v4933_v23, %s4351_s6  ;;  %v826_v27 = vrot.slane %v5114_v0, 2 }
 0x14b   : > { %874 = vrot.lane.b32.xlu0 %v8469_v9, %s4351_s6 }
 0x14c   : > { %v5363_v41 = vpop.permute.xlu1 %689 }
 0x14d   : > { %8470 = vst [vmem:[#allocation49_spill] sm:$0xff] %v5363_v41  ;;  %v5365_v57 = vpop.permute.xlu0 %687  ;;  %v825_v41 = vrot.slane %v5119_v61, 2 }
 0x14e   : > { %8471 = vst [vmem:[#allocation140_spill] sm:$0xff] %v5365_v57  ;;  %880 = vrot.lane.b32.xlu1 %v4946_v31, %s4351_s6  ;;  %v828_v57 = vrot.slane %v5234_v18, 2 }
 0x14f   : > { %878 = vrot.lane.b32.xlu0 %v8472_v39, %s4351_s6 }
 0x150   : > { %v5371_v12 = vpop.permute.xlu1 %731 }
 0x151   : > { %8473 = vst [vmem:[#allocation52_spill] sm:$0xff] %v5371_v12  ;;  %v5373_v10 = vpop.permute.xlu0 %729  ;;  %v5391_v12 = vsel %vm448_vm1, %v826_v27, %v828_v57 }
 0x152   : > { %8474 = vst [vmem:[#allocation141_spill] sm:$0xff] %v5373_v10  ;;  %884 = vrot.lane.b32.xlu1 %v4963_v35, %s4351_s6 }
 0x153   : > { %882 = vrot.lane.b32.xlu0 %v4970_v63, %s4351_s6  ;;  %v5396_v63 = vsel %vm448_vm1, %v825_v41, %v826_v27 }
 0x154   : > { %v5382_v31 = vpop.permute.xlu1 %735 }
 0x155   : > { %8475 = vst [vmem:[#allocation142_spill] sm:$0xff] %v5382_v31  ;;  %v5384_v23 = vpop.permute.xlu0 %733 }
 0x156   : > { %8476 = vst [vmem:[#allocation143_spill] sm:$0xff] %v5384_v23  ;;  %888 = vrot.lane.b32.xlu1 %v4980_v58, %s4351_s6 }
 0x157   : > { %886 = vrot.lane.b32.xlu0 %v4985_v44, %s4351_s6 }
 0x158   : > { %v5393_v10 = vpop.permute.xlu1 %739 }
 0x159   : > { %v5398_v18 = vpop.permute.xlu0 %737 }
 0x15a   : > { %892 = vrot.lane.b32.xlu1 %v5391_v12, %s4351_s6 }
 0x15b   : > { %890 = vrot.lane.b32.xlu0 %v5396_v63, %s4351_s6 }
 0x15c   : > { %v5404_v31 = vpop.permute.xlu1 %743 }
 0x15d   : > { %8477 = vst [vmem:[#allocation144_spill] sm:$0xff] %v5404_v31  ;;  %v5406_v23 = vpop.permute.xlu0 %741 }
 0x15e   : > { %930 = vrot.lane.b32.xlu1 %v4457_v11, %s4352_s7 }
 0x15f   : > { %928 = vrot.lane.b32.xlu0 %v4467_v15, %s4352_s7 }
 0x160   : > { %v5412_v57 = vpop.permute.xlu1 %747 }
 0x161   : > { %v5414_v41 = vpop.permute.xlu0 %745 }
 0x162   : > { %934 = vrot.lane.b32.xlu1 %v4481_v22, %s4352_s7 }
 0x163   : > { %932 = vrot.lane.b32.xlu0 %v4487_v24, %s4352_s7 }
 0x164   : > { %v5420_v27 = vpop.permute.xlu1 %751 }
 0x165   : > { %v5422_v31 = vpop.permute.xlu0 %749 }
 0x166   : > { %938 = vrot.lane.b32.xlu1 %v4502_v30, %s4352_s7 }
 0x167   : > { %936 = vrot.lane.b32.xlu0 %v4508_v32, %s4352_s7 }
 0x168   : > { %v5428_v11 = vpop.permute.xlu1 %755 }
 0x169   : > { %v5430_v15 = vpop.permute.xlu0 %753 }
 0x16a   : > { %942 = vrot.lane.b32.xlu1 %v4524_v38, %s4352_s7 }
 0x16b   : > { %940 = vrot.lane.b32.xlu0 %v4530_v40, %s4352_s7 }
 0x16c   : > { %v5436_v22 = vpop.permute.xlu1 %759 }
 0x16d   : > { %8478 = vst [vmem:[#allocation145_spill] sm:$0xff] %v5436_v22  ;;  %v5438_v24 = vpop.permute.xlu0 %757  ;;  %v8575_v22 = vld [vmem:[#allocation53_spill] sm:$0xff] }
 0x16e   : > { %946 = vrot.lane.b32.xlu1 %v4546_v46, %s4352_s7 }
 0x16f   : > { %944 = vrot.lane.b32.xlu0 %v4552_v48, %s4352_s7 }
 0x170   : > { %v5444_v30 = vpop.permute.xlu1 %763 }
 0x171   : > { %8479 = vst [vmem:[#allocation146_spill] sm:$0xff] %v5444_v30  ;;  %v5446_v32 = vpop.permute.xlu0 %761  ;;  %v8514_v30 = vld [vmem:[#allocation21_spill] sm:$0xff] }
 0x172   : > { %8480 = vst [vmem:[#allocation147_spill] sm:$0xff] %v5446_v32  ;;  %950 = vrot.lane.b32.xlu1 %v4568_v54, %s4352_s7 }
 0x173   : > { %948 = vrot.lane.b32.xlu0 %v4574_v56, %s4352_s7 }
 0x174   : > { %v5452_v38 = vpop.permute.xlu1 %767 }
 0x175   : > { %8481 = vst [vmem:[#allocation148_spill] sm:$0xff] %v5452_v38  ;;  %v5454_v40 = vpop.permute.xlu0 %765 }
 0x176   : > { %8482 = vst [vmem:[#allocation149_spill] sm:$0xff] %v5454_v40  ;;  %954 = vrot.lane.b32.xlu1 %v4590_v62, %s4352_s7 }
 0x177   : > { %952 = vrot.lane.b32.xlu0 %v4596_v3, %s4352_s7 }
 0x178   : > { %v5460_v46 = vpop.permute.xlu1 %771 }
 0x179   : > { %8483 = vst [vmem:[#allocation150_spill] sm:$0xff] %v5460_v46  ;;  %v5462_v48 = vpop.permute.xlu0 %769 }
 0x17a   : > { %8484 = vst [vmem:[#allocation151_spill] sm:$0xff] %v5462_v48  ;;  %958 = vrot.lane.b32.xlu1 %v4612_v16, %s4352_s7  ;;  %v8510_v48 = vld [vmem:[#allocation19_spill] sm:$0xff] }
 0x17b   : > { %956 = vrot.lane.b32.xlu0 %v4618_v19, %s4352_s7 }
 0x17c   : > { %v5468_v54 = vpop.permute.xlu1 %775 }
 0x17d   : > { %8485 = vst [vmem:[#allocation152_spill] sm:$0xff] %v5468_v54  ;;  %v5470_v56 = vpop.permute.xlu0 %773  ;;  %v8502_v54 = vld [vmem:[#allocation15_spill] sm:$0xff] }
 0x17e   : > { %8486 = vst [vmem:[#allocation153_spill] sm:$0xff] %v5470_v56  ;;  %962 = vrot.lane.b32.xlu1 %v4634_v34, %s4352_s7  ;;  %v8506_v56 = vld [vmem:[#allocation17_spill] sm:$0xff] }
 0x17f   : > { %960 = vrot.lane.b32.xlu0 %v4640_v37, %s4352_s7 }
 0x180   : > { %v5476_v62 = vpop.permute.xlu1 %779 }
 0x181   : > { %8487 = vst [vmem:[#allocation154_spill] sm:$0xff] %v5476_v62  ;;  %v5478_v3 = vpop.permute.xlu0 %777 }
 0x182   : > { %8488 = vst [vmem:[#allocation155_spill] sm:$0xff] %v5478_v3  ;;  %966 = vrot.lane.b32.xlu1 %v4656_v53, %s4352_s7  ;;  %v8498_v3 = vld [vmem:[#allocation13_spill] sm:$0xff] }
 0x183   : > { %964 = vrot.lane.b32.xlu0 %v4662_v59, %s4352_s7 }
 0x184   : > { %v5484_v16 = vpop.permute.xlu1 %783 }
 0x185   : > { %8489 = vst [vmem:[#allocation156_spill] sm:$0xff] %v5484_v16  ;;  %v5486_v19 = vpop.permute.xlu0 %781 }
 0x186   : > { %8490 = vst [vmem:[#allocation157_spill] sm:$0xff] %v5486_v19  ;;  %970 = vrot.lane.b32.xlu1 %v4678_v26, %s4352_s7  ;;  %v8495_v19 = vld [vmem:[#allocation11_spill] sm:$0xff] }
 0x187   : > { %968 = vrot.lane.b32.xlu0 %v4684_v50, %s4352_s7 }
 0x188   : > { %v5492_v34 = vpop.permute.xlu1 %787 }
 0x189   : > { %8491 = vst [vmem:[#allocation158_spill] sm:$0xff] %v5492_v34  ;;  %v5494_v37 = vpop.permute.xlu0 %785 }
 0x18a   : > { %8492 = vst [vmem:[#allocation159_spill] sm:$0xff] %v5494_v37  ;;  %974 = vrot.lane.b32.xlu1 %v4700_v20, %s4352_s7 }
 0x18b   : > { %972 = vrot.lane.b32.xlu0 %v4706_v13, %s4352_s7 }
 0x18c   : > { %v5500_v53 = vpop.permute.xlu1 %791 }
 0x18d   : > { %8493 = vst [vmem:[#allocation160_spill] sm:$0xff] %v5500_v53  ;;  %v5502_v59 = vpop.permute.xlu0 %789 }
 0x18e   : > { %8494 = vst [vmem:[#allocation161_spill] sm:$0xff] %v5502_v59  ;;  %978 = vrot.lane.b32.xlu1 %v4722_v60, %s4352_s7  ;;  %v5525_v60 = vld [vmem:[%s4431_s28 + $0x1a0] sm:$0xff]  ;;  %v5530_v59 = vld [vmem:[%s4431_s28 + $0x198] sm:$0xff] }
 0x18f   : > { %976 = vrot.lane.b32.xlu0 %v4728_v42, %s4352_s7 }
 0x190   : > { %v5508_v50 = vpop.permute.xlu1 %832 }
 0x191   : > { %v5510_v26 = vpop.permute.xlu0 %830 }
 0x192   : > { %982 = vrot.lane.b32.xlu1 %v4744_v49, %s4352_s7 }
 0x193   : > { %980 = vrot.lane.b32.xlu0 %v4750_v8, %s4352_s7 }
 0x194   : > { %v5516_v20 = vpop.permute.xlu1 %836 }
 0x195   : > { %v5518_v13 = vpop.permute.xlu0 %834 }
 0x196   : > { %986 = vrot.lane.b32.xlu1 %v5114_v0, %s4352_s7 }
 0x197   : > { %984 = vrot.lane.b32.xlu0 %v5119_v61, %s4352_s7 }
 0x198   : > { %v5527_v42 = vpop.permute.xlu1 %840 }
 0x199   : > { %v5532_v49 = vpop.permute.xlu0 %838 }
 0x19a   : > { %990 = vrot.lane.b32.xlu1 %v5525_v60, %s4352_s7 }
 0x19b   : > { %988 = vrot.lane.b32.xlu0 %v5530_v59, %s4352_s7 }
 0x19c   : > { %v5538_v8 = vpop.permute.xlu1 %844 }
 0x19d   : > { %v5540_v0 = vpop.permute.xlu0 %842 }
 0x19e   : > { %1032 = vrot.lane.b32.xlu1 %v4493_v25, %s4353_s8  ;;  %v8496_v25 = vld [vmem:[#allocation12_spill] sm:$0xff] }
 0x19f   : > { %1030 = vrot.lane.b32.xlu0 %v4498_v28, %s4353_s8 }
 0x1a0   : > { %v5546_v61 = vpop.permute.xlu1 %848 }
 0x1a1   : > { %v5548_v53 = vpop.permute.xlu0 %846 }
 0x1a2   : > { %1036 = vrot.lane.b32.xlu1 %v4515_v33, %s4353_s8  ;;  %v8499_v33 = vld [vmem:[#allocation14_spill] sm:$0xff] }
 0x1a3   : > { %1034 = vrot.lane.b32.xlu0 %v8385_v17, %s4353_s8 }
 0x1a4   : > { %v5554_v37 = vpop.permute.xlu1 %852 }
 0x1a5   : > { %v5556_v34 = vpop.permute.xlu0 %850 }
 0x1a6   : > { %1040 = vrot.lane.b32.xlu1 %v8495_v19, %s4353_s8  ;;  %v8503_v19 = vld [vmem:[#allocation16_spill] sm:$0xff] }
 0x1a7   : > { %1038 = vrot.lane.b32.xlu0 %v8496_v25, %s4353_s8 }
 0x1a8   : > { %v5562_v28 = vpop.permute.xlu1 %856 }
 0x1a9   : > { %8497 = vst [vmem:[#allocation162_spill] sm:$0xff] %v5562_v28  ;;  %v5564_v16 = vpop.permute.xlu0 %854  ;;  %v8586_v28 = vld [vmem:[#allocation117_spill] sm:$0xff] }
 0x1aa   : > { %1044 = vrot.lane.b32.xlu1 %v8498_v3, %s4353_s8  ;;  %v8507_v3 = vld [vmem:[#allocation18_spill] sm:$0xff] }
 0x1ab   : > { %1042 = vrot.lane.b32.xlu0 %v8499_v33, %s4353_s8 }
 0x1ac   : > { %v5570_v17 = vpop.permute.xlu1 %860 }
 0x1ad   : > { %8500 = vst [vmem:[#allocation163_spill] sm:$0xff] %v5570_v17  ;;  %v5572_v62 = vpop.permute.xlu0 %858 }
 0x1ae   : > { %8501 = vst [vmem:[#allocation164_spill] sm:$0xff] %v5572_v62  ;;  %1048 = vrot.lane.b32.xlu1 %v8502_v54, %s4353_s8  ;;  %v8511_v54 = vld [vmem:[#allocation20_spill] sm:$0xff]  ;;  %v8588_v62 = vld [vmem:[#allocation58_spill] sm:$0xff] }
 0x1af   : > { %1046 = vrot.lane.b32.xlu0 %v8503_v19, %s4353_s8 }
 0x1b0   : > { %v5578_v25 = vpop.permute.xlu1 %864 }
 0x1b1   : > { %8504 = vst [vmem:[#allocation165_spill] sm:$0xff] %v5578_v25  ;;  %v5580_v46 = vpop.permute.xlu0 %862 }
 0x1b2   : > { %8505 = vst [vmem:[#allocation166_spill] sm:$0xff] %v5580_v46  ;;  %1052 = vrot.lane.b32.xlu1 %v8506_v56, %s4353_s8  ;;  %v8515_v56 = vld [vmem:[#allocation22_spill] sm:$0xff] }
 0x1b3   : > { %1050 = vrot.lane.b32.xlu0 %v8507_v3, %s4353_s8  ;;  %v1495_v3 = vld [vmem:[%s8084_s1 + $0x20] sm:$0xf] }
 0x1b4   : > { %v5586_v33 = vpop.permute.xlu1 %868  ;;  %4062 = vmatprep.subr.msk.mxu0 %vm1593_vm2, %v1495_v3 }
 0x1b5   : > { %8508 = vst [vmem:[#allocation167_spill] sm:$0xff] %v5586_v33  ;;  %v5588_v38 = vpop.permute.xlu0 %866  ;;  %4063 = vmatpush3.msk.msra.mxu0 %vm1593_vm2, %v1495_v3  ;;  %v1493_v33 = vld [vmem:[%s8084_s1 + $0x10] sm:$0xff] }
 0x1b6   : > { %8509 = vst [vmem:[#allocation168_spill] sm:$0xff] %v5588_v38  ;;  %1056 = vrot.lane.b32.xlu1 %v8510_v48, %s4353_s8 }
 0x1b7   : > { %1054 = vrot.lane.b32.xlu0 %v8511_v54, %s4353_s8 }
 0x1b8   : > { %v5594_v19 = vpop.permute.xlu1 %872 }
 0x1b9   : > { %8512 = vst [vmem:[#allocation169_spill] sm:$0xff] %v5594_v19  ;;  %v5596_v25 = vpop.permute.xlu0 %870  ;;  %v8518_v19 = vld [vmem:[#allocation23_spill] sm:$0xff] }
 0x1ba   : > { %8513 = vst [vmem:[#allocation170_spill] sm:$0xff] %v5596_v25  ;;  %1060 = vrot.lane.b32.xlu1 %v8514_v30, %s4353_s8  ;;  %v1494_v30 = vld [vmem:[%s8084_s1 + $0x18] sm:$0xff]  ;;  %v1491_v25 = vld [vmem:[%s8084_s1] sm:$0xff] }
 0x1bb   : > { %1058 = vrot.lane.b32.xlu0 %v8515_v56, %s4353_s8  ;;  %v8519_v56 = vld [vmem:[#allocation24_spill] sm:$0xff]  ;;  %4064 = vmatprep.subr.mxu0 %v1494_v30 }
 0x1bc   : > { %v5606_v48 = vpop.permute.xlu1 %876  ;;  %4065 = vmatpush3.msra.mxu0 %v1494_v30 }
 0x1bd   : > { %8516 = vst [vmem:[#allocation171_spill] sm:$0xff] %v5606_v48  ;;  %v5609_v54 = vpop.permute.xlu0 %874  ;;  %4066 = vmatprep.subr.mxu0 %v1493_v33 }
 0x1be   : > { %8517 = vst [vmem:[#allocation172_spill] sm:$0xff] %v5609_v54  ;;  %1064 = vrot.lane.b32.xlu1 %v8518_v19, %s4353_s8  ;;  %v8522_v19 = vld [vmem:[#allocation25_spill] sm:$0xff]  ;;  %4067 = vmatpush3.msra.mxu0 %v1493_v33  ;;  %v1492_v54 = vld [vmem:[%s8084_s1 + $0x8] sm:$0xff]  ;;  %v8526_v33 = vld [vmem:[#allocation27_spill] sm:$0xff] }
 0x1bf   : > { %1062 = vrot.lane.b32.xlu0 %v8519_v56, %s4353_s8  ;;  %v8523_v56 = vld [vmem:[#allocation26_spill] sm:$0xff]  ;;  %4068 = vmatprep.subr.mxu0 %v1492_v54 }
 0x1c0   : > { %v5621_v48 = vpop.permute.xlu1 %880  ;;  %4069 = vmatpush3.msra.mxu0 %v1492_v54 }
 0x1c1   : > { %8520 = vst [vmem:[#allocation173_spill] sm:$0xff] %v5621_v48  ;;  %v5623_v3 = vpop.permute.xlu0 %878  ;;  %4070 = vmatprep.subr.mxu0 %v1491_v25 }
 0x1c2   : > { %8521 = vst [vmem:[#allocation174_spill] sm:$0xff] %v5623_v3  ;;  %1068 = vrot.lane.b32.xlu1 %v8522_v19, %s4353_s8  ;;  %4071 = vmatpush3.msra.mxu0 %v1491_v25  ;;  %v8527_v19 = vld [vmem:[#allocation28_spill] sm:$0xff] }
 0x1c3   : > { %1066 = vrot.lane.b32.xlu0 %v8523_v56, %s4353_s8  ;;  %v8530_v56 = vld [vmem:[#allocation29_spill] sm:$0xff]  ;;  %v8534_v25 = vld [vmem:[#allocation32_spill] sm:$0xff] }
 0x1c4   : > { %v5635_v30 = vpop.permute.xlu1 %884 }
 0x1c5   : > { %8524 = vst [vmem:[#allocation175_spill] sm:$0xff] %v5635_v30  ;;  %v5637_v3 = vpop.permute.xlu0 %882  ;;  %v8531_v30 = vld [vmem:[#allocation30_spill] sm:$0xff] }
 0x1c6   : > { %8525 = vst [vmem:[#allocation176_spill] sm:$0xff] %v5637_v3  ;;  %1072 = vrot.lane.b32.xlu1 %v8526_v33, %s4353_s8 }
 0x1c7   : > { %1070 = vrot.lane.b32.xlu0 %v8527_v19, %s4353_s8 }
 0x1c8   : > { %v5643_v48 = vpop.permute.xlu1 %888 }
 0x1c9   : > { %8528 = vst [vmem:[#allocation177_spill] sm:$0xff] %v5643_v48  ;;  %v5645_v38 = vpop.permute.xlu0 %886 }
 0x1ca   : > { %8529 = vst [vmem:[#allocation178_spill] sm:$0xff] %v5645_v38  ;;  %1076 = vrot.lane.b32.xlu1 %v8530_v56, %s4353_s8 }
 0x1cb   : > { %1074 = vrot.lane.b32.xlu0 %v8531_v30, %s4353_s8 }
 0x1cc   : > { %v5651_v54 = vpop.permute.xlu1 %892 }
 0x1cd   : > { %8532 = vst [vmem:[#allocation179_spill] sm:$0xff] %v5651_v54  ;;  %v5653_v3 = vpop.permute.xlu0 %890 }
 0x1ce   : > { %8533 = vst [vmem:[#allocation180_spill] sm:$0xff] %v5653_v3  ;;  %1131 = vrot.lane.b32.xlu1 %v4808_v14, %s4354_s9 }
 0x1cf   : > { %1078 = vrot.lane.b32.xlu0 %v8534_v25, %s4353_s8 }
 0x1d0   : > { %v5659_v19 = vpop.permute.xlu1 %930 }
 0x1d1   : > { %v5661_v33 = vpop.permute.xlu0 %928 }
 0x1d2   : > { %1135 = vrot.lane.b32.xlu1 %v8441_v2, %s4354_s9 }
 0x1d3   : > { %1133 = vrot.lane.b32.xlu0 %v4803_v43, %s4354_s9 }
 0x1d4   : > { %v5667_v30 = vpop.permute.xlu1 %934 }
 0x1d5   : > { %v5669_v56 = vpop.permute.xlu0 %932 }
 0x1d6   : > { %1139 = vrot.lane.b32.xlu1 %v8444_v45, %s4354_s9 }
 0x1d7   : > { %1137 = vrot.lane.b32.xlu0 %v4816_v5, %s4354_s9 }
 0x1d8   : > { %v5675_v14 = vpop.permute.xlu1 %938 }
 0x1d9   : > { %v5677_v25 = vpop.permute.xlu0 %936 }
 0x1da   : > { %1143 = vrot.lane.b32.xlu1 %v8447_v1, %s4354_s9 }
 0x1db   : > { %1141 = vrot.lane.b32.xlu0 %v4829_v51, %s4354_s9 }
 0x1dc   : > { %v5683_v43 = vpop.permute.xlu1 %942 }
 0x1dd   : > { %v5685_v2 = vpop.permute.xlu0 %940 }
 0x1de   : > { %1147 = vrot.lane.b32.xlu1 %v8450_v29, %s4354_s9 }
 0x1df   : > { %1145 = vrot.lane.b32.xlu0 %v4842_v6, %s4354_s9 }
 0x1e0   : > { %v5691_v5 = vpop.permute.xlu1 %946 }
 0x1e1   : > { %v5693_v45 = vpop.permute.xlu0 %944 }
 0x1e2   : > { %1151 = vrot.lane.b32.xlu1 %v8453_v47, %s4354_s9  ;;  %v8536_v47 = vld [vmem:[#allocation40_spill] sm:$0xff] }
 0x1e3   : > { %1149 = vrot.lane.b32.xlu0 %v4855_v4, %s4354_s9 }
 0x1e4   : > { %v5699_v51 = vpop.permute.xlu1 %950 }
 0x1e5   : > { %v5701_v1 = vpop.permute.xlu0 %948 }
 0x1e6   : > { %1155 = vrot.lane.b32.xlu1 %v8456_v36, %s4354_s9  ;;  %v8539_v36 = vld [vmem:[#allocation42_spill] sm:$0xff] }
 0x1e7   : > { %1153 = vrot.lane.b32.xlu0 %v4868_v52, %s4354_s9 }
 0x1e8   : > { %v5707_v6 = vpop.permute.xlu1 %954 }
 0x1e9   : > { %8535 = vst [vmem:[#allocation181_spill] sm:$0xff] %v5707_v6  ;;  %v5709_v29 = vpop.permute.xlu0 %952  ;;  %v4254_v6 = vld [vmem:[%s4431_s28 + $0x18] sm:$0xff] }
 0x1ea   : > { %1159 = vrot.lane.b32.xlu1 %v8459_v21, %s4354_s9  ;;  %v8542_v21 = vld [vmem:[#allocation44_spill] sm:$0xff] }
 0x1eb   : > { %1157 = vrot.lane.b32.xlu0 %v8536_v47, %s4354_s9 }
 0x1ec   : > { %v5715_v4 = vpop.permute.xlu1 %958 }
 0x1ed   : > { %8537 = vst [vmem:[#allocation40_spill] sm:$0xff] %v5715_v4  ;;  %v5717_v3 = vpop.permute.xlu0 %956 }
 0x1ee   : > { %8538 = vst [vmem:[#allocation182_spill] sm:$0xff] %v5717_v3  ;;  %1163 = vrot.lane.b32.xlu1 %v8462_v55, %s4354_s9  ;;  %v8545_v55 = vld [vmem:[#allocation46_spill] sm:$0xff]  ;;  %v8581_v3 = vld [vmem:[#allocation51_spill] sm:$0xff] }
 0x1ef   : > { %1161 = vrot.lane.b32.xlu0 %v8539_v36, %s4354_s9 }
 0x1f0   : > { %v5723_v52 = vpop.permute.xlu1 %962 }
 0x1f1   : > { %8540 = vst [vmem:[#allocation42_spill] sm:$0xff] %v5723_v52  ;;  %v5725_v54 = vpop.permute.xlu0 %960  ;;  %v8551_v52 = vld [vmem:[#allocation31_spill] sm:$0xff] }
 0x1f2   : > { %8541 = vst [vmem:[#allocation183_spill] sm:$0xff] %v5725_v54  ;;  %1167 = vrot.lane.b32.xlu1 %v8466_v7, %s4354_s9  ;;  %v8548_v7 = vld [vmem:[#allocation48_spill] sm:$0xff] }
 0x1f3   : > { %1165 = vrot.lane.b32.xlu0 %v8542_v21, %s4354_s9 }
 0x1f4   : > { %v5731_v47 = vpop.permute.xlu1 %966 }
 0x1f5   : > { %8543 = vst [vmem:[#allocation44_spill] sm:$0xff] %v5731_v47  ;;  %v5733_v38 = vpop.permute.xlu0 %964 }
 0x1f6   : > { %8544 = vst [vmem:[#allocation184_spill] sm:$0xff] %v5733_v38  ;;  %1171 = vrot.lane.b32.xlu1 %v8469_v9, %s4354_s9  ;;  %v8552_v9 = vld [vmem:[#allocation50_spill] sm:$0xff] }
 0x1f7   : > { %1169 = vrot.lane.b32.xlu0 %v8545_v55, %s4354_s9 }
 0x1f8   : > { %v5739_v36 = vpop.permute.xlu1 %970 }
 0x1f9   : > { %8546 = vst [vmem:[#allocation46_spill] sm:$0xff] %v5739_v36  ;;  %v5741_v48 = vpop.permute.xlu0 %968 }
 0x1fa   : > { %8547 = vst [vmem:[#allocation185_spill] sm:$0xff] %v5741_v48  ;;  %1175 = vrot.lane.b32.xlu1 %v8472_v39, %s4354_s9  ;;  %v8555_v39 = vld [vmem:[#allocation55_spill] sm:$0xff] }
 0x1fb   : > { %1173 = vrot.lane.b32.xlu0 %v8548_v7, %s4354_s9 }
 0x1fc   : > { %v5747_v21 = vpop.permute.xlu1 %974 }
 0x1fd   : > { %8549 = vst [vmem:[#allocation48_spill] sm:$0xff] %v5747_v21  ;;  %v5749_v47 = vpop.permute.xlu0 %972 }
 0x1fe   : > { %8550 = vst [vmem:[#allocation186_spill] sm:$0xff] %v5749_v47  ;;  %1080 = vrot.lane.b32.xlu1 %v8551_v52, %s4353_s8  ;;  %v8558_v47 = vld [vmem:[#allocation33_spill] sm:$0xff]  ;;  %v8559_v52 = vld [vmem:[#allocation34_spill] sm:$0xff] }
 0x1ff   : > { %1177 = vrot.lane.b32.xlu0 %v8552_v9, %s4354_s9 }
 0x200   : > { %v5755_v55 = vpop.permute.xlu1 %978 }
 0x201   : > { %8553 = vst [vmem:[#allocation50_spill] sm:$0xff] %v5755_v55  ;;  %v5757_v36 = vpop.permute.xlu0 %976 }
 0x202   : > { %8554 = vst [vmem:[#allocation187_spill] sm:$0xff] %v5757_v36  ;;  %1181 = vrot.lane.b32.xlu1 %v4963_v35, %s4354_s9 }
 0x203   : > { %1179 = vrot.lane.b32.xlu0 %v8555_v39, %s4354_s9  ;;  %v222_v39 = vld [vmem:[%s4431_s28 + $0x1a8] sm:$0x3] }
 0x204   : > { %v5763_v7 = vpop.permute.xlu1 %982 }
 0x205   : > { %8556 = vst [vmem:[#allocation55_spill] sm:$0xff] %v5763_v7  ;;  %v5765_v21 = vpop.permute.xlu0 %980  ;;  %v1025_v7 = vrot.slane %v5530_v59, 1 }
 0x206   : > { %8557 = vst [vmem:[#allocation188_spill] sm:$0xff] %v5765_v21  ;;  %1084 = vrot.lane.b32.xlu1 %v8558_v47, %s4353_s8  ;;  %v8564_v47 = vld [vmem:[#allocation121_spill] sm:$0xff] }
 0x207   : > { %1082 = vrot.lane.b32.xlu0 %v8559_v52, %s4353_s8  ;;  %v1026_v52 = vrot.slane %v5525_v60, 1 }
 0x208   : > { %v5771_v9 = vpop.permute.xlu1 %986 }
 0x209   : > { %8560 = vst [vmem:[#allocation189_spill] sm:$0xff] %v5771_v9  ;;  %v5773_v55 = vpop.permute.xlu0 %984  ;;  %v8565_v9 = vld [vmem:[#allocation123_spill] sm:$0xff]  ;;  %v1027_v48 = vsel %vm271_vm0, %v1025_v7, %v1026_v52 }
 0x20a   : > { %8561 = vst [vmem:[#allocation190_spill] sm:$0xff] %v5773_v55  ;;  %1185 = vrot.lane.b32.xlu1 %v4980_v58, %s4354_s9  ;;  %v1028_v55 = vrot.slane %v222_v39, 1 }
 0x20b   : > { %1183 = vrot.lane.b32.xlu0 %v4985_v44, %s4354_s9  ;;  %v1127_v44 = vrot.slane %v5525_v60, 2 }
 0x20c   : > { %v5779_v35 = vpop.permute.xlu1 %990 }
 0x20d   : > { %8562 = vst [vmem:[#allocation191_spill] sm:$0xff] %v5779_v35  ;;  %v5782_v21 = vpop.permute.xlu0 %988  ;;  %v1126_v35 = vrot.slane %v5530_v59, 2 }
 0x20e   : > { %8563 = vst [vmem:[#allocation192_spill] sm:$0xff] %v5782_v21  ;;  %1088 = vrot.lane.b32.xlu1 %v8564_v47, %s4353_s8  ;;  %v1029_v47 = vsel %vm271_vm0, %v1026_v52, %v1028_v55  ;;  %v1129_v21 = vrot.slane %v222_v39, 2 }
 0x20f   : > { %1086 = vrot.lane.b32.xlu0 %v8565_v9, %s4353_s8 }
 0x210   : > { %v5790_v58 = vpop.permute.xlu1 %1032 }
 0x211   : > { %v1031_v36 = vpop.permute.xlu0 %1030 }
 0x212   : > { %1189 = vrot.lane.b32.xlu1 %v5391_v12, %s4354_s9  ;;  %v1130_v12 = vsel %vm448_vm1, %v1127_v44, %v1129_v21 }
 0x213   : > { %1187 = vrot.lane.b32.xlu0 %v5396_v63, %s4354_s9  ;;  %v1128_v63 = vsel %vm448_vm1, %v1126_v35, %v1127_v44 }
 0x214   : > { %v5799_v9 = vpop.permute.xlu1 %1036 }
 0x215   : > { %v5802_v38 = vpop.permute.xlu0 %1034 }
 0x216   : > { %1092 = vrot.lane.b32.xlu1 %v1029_v47, %s4353_s8 }
 0x217   : > { %1090 = vrot.lane.b32.xlu0 %v1027_v48, %s4353_s8 }
 0x218   : > { %v5807_v60 = vpop.permute.xlu1 %1040 }
 0x219   : > { %v5810_v55 = vpop.permute.xlu0 %1038 }
 0x21a   : > { %1193 = vrot.lane.b32.xlu1 %v1130_v12, %s4354_s9 }
 0x21b   : > { %1191 = vrot.lane.b32.xlu0 %v1128_v63, %s4354_s9 }
 0x21c   : > { %v5814_v59 = vpop.permute.xlu1 %1044 }
 0x21d   : > { %v5816_v52 = vpop.permute.xlu0 %1042 }
 0x220   : > { %v5818_v7 = vpop.permute.xlu1 %1048 }
 0x221   : > { %v5820_v47 = vpop.permute.xlu0 %1046 }
 0x224   : > { %v5822_v48 = vpop.permute.xlu1 %1052 }
 0x225   : > { %v5824_v21 = vpop.permute.xlu0 %1050 }
 0x228   : > { %v5826_v35 = vpop.permute.xlu1 %1056 }
 0x229   : > { %8566 = vst [vmem:[#allocation193_spill] sm:$0xff] %v5826_v35  ;;  %v5828_v39 = vpop.permute.xlu0 %1054 }
 0x22c   : > { %v5830_v44 = vpop.permute.xlu1 %1060 }
 0x22d   : > { %8567 = vst [vmem:[#allocation194_spill] sm:$0xff] %v5830_v44  ;;  %v5832_v12 = vpop.permute.xlu0 %1058  ;;  %v4253_v44 = vld [vmem:[%s4431_s28] sm:$0xff] }
 0x22e   : > { %8568 = vst [vmem:[#allocation195_spill] sm:$0xff] %v5832_v12  ;;  %v1228_v35 = vsel %vm1227_vm3, %v4253_v44, %v8575_v22  ;;  %v1230_v22 = vsel %vm1227_vm3, %v4254_v6, %v8581_v3  ;;  %v4255_v44 = vld [vmem:[%s4431_s28 + $0x8] sm:$0xff]  ;;  %v8585_v6 = vld [vmem:[#allocation120_spill] sm:$0xff] }
 0x230   : > { %v5834_v63 = vpop.permute.xlu1 %1064 }
 0x231   : > { %8569 = vst [vmem:[#allocation196_spill] sm:$0xff] %v5834_v63  ;;  %v5836_v40 = vpop.permute.xlu0 %1062  ;;  %v8576_v63 = vld [vmem:[#allocation86_spill] sm:$0xff] }
 0x232   : > { %8570 = vst [vmem:[#allocation197_spill] sm:$0xff] %v5836_v40  ;;  %v1261_v40 = vsel %vm1260_vm4, %v1228_v35, %v8576_v63  ;;  %v8583_v63 = vld [vmem:[#allocation88_spill] sm:$0xff] }
 0x234   : > { %v5838_v4 = vpop.permute.xlu1 %1068 }
 0x235   : > { %8571 = vst [vmem:[#allocation198_spill] sm:$0xff] %v5838_v4  ;;  %v5840_v54 = vpop.permute.xlu0 %1066  ;;  %v8577_v4 = vld [vmem:[#allocation118_spill] sm:$0xff] }
 0x236   : > { %8572 = vst [vmem:[#allocation199_spill] sm:$0xff] %v5840_v54  ;;  %v1294_v54 = vsel %vm1293_vm5, %v1261_v40, %v8577_v4  ;;  %v8582_v40 = vld [vmem:[#allocation56_spill] sm:$0xff] }
 0x237   : > { %v1229_v4 = vsel %vm1227_vm3, %v4255_v44, %v8582_v40  ;;  %v8587_v40 = vld [vmem:[#allocation143_spill] sm:$0xff] }
 0x238   : > { %v5842_v17 = vpop.permute.xlu1 %1072 }
 0x239   : > { %8573 = vst [vmem:[#allocation200_spill] sm:$0xff] %v5842_v17  ;;  %v5844_v46 = vpop.permute.xlu0 %1070  ;;  %v8579_v17 = vld [vmem:[#allocation141_spill] sm:$0xff] }
 0x23a   : > { %8574 = vst [vmem:[#allocation201_spill] sm:$0xff] %v5844_v46  ;;  %v1327_v12 = vsel %vm1326_vm6, %v1294_v54, %v8579_v17  ;;  %v8584_v54 = vld [vmem:[#allocation85_spill] sm:$0xff] }
 0x23b   : > { %v1360_v35 = vsel %vm1359_vm7, %v1327_v12, %v5510_v26  ;;  %v1262_v3 = vsel %vm1260_vm4, %v1229_v4, %v8584_v54  ;;  %v8589_v54 = vld [vmem:[#allocation52_spill] sm:$0xff] }
 0x23c   : > { %v5853_v32 = vpop.permute.xlu1 %1076  ;;  %v1393_v17 = vsel %vm1392_vm8, %v1360_v35, %v5661_v33  ;;  %v1295_v44 = vsel %vm1293_vm5, %v1262_v3, %v8586_v28  ;;  %v4256_v35 = vld [vmem:[%s4431_s28 + $0x30] sm:$0xff]  ;;  %v4257_v28 = vld [vmem:[%s4431_s28 + $0x20] sm:$0xff]  ;;  %v8591_v3 = vld [vmem:[#allocation90_spill] sm:$0xff] }
 0x23d   : > { %8578 = vst [vmem:[#allocation53_spill] sm:$0xff] %v5853_v32  ;;  %v5857_v46 = vpop.permute.xlu0 %1074  ;;  %v1263_v32 = vsel %vm1260_vm4, %v1230_v22, %v8583_v63  ;;  %v1426_v26 = vsel %vm1425_vm9, %v1393_v17, %v1031_v36  ;;  %v1232_v4 = vsel %vm1227_vm3, %v4256_v35, %v8588_v62  ;;  %v8590_v17 = vld [vmem:[#allocation54_spill] sm:$0xff] }
 0x23e   : > { %8580 = vst [vmem:[#allocation86_spill] sm:$0xff] %v5857_v46  ;;  %v1296_v46 = vsel %vm1293_vm5, %v1263_v32, %v8585_v6  ;;  %v1328_v32 = vsel %vm1326_vm6, %v1295_v44, %v8589_v54  ;;  %v1265_v6 = vsel %vm1260_vm4, %v1232_v4, %v8591_v3  ;;  %v8593_v44 = vld [vmem:[#allocation124_spill] sm:$0xff]  ;;  %v8594_v4 = vld [vmem:[#allocation119_spill] sm:$0xff] }
 0x23f   : > { %v1329_v22 = vsel %vm1326_vm6, %v1296_v46, %v8587_v40  ;;  %v1231_v46 = vsel %vm1227_vm3, %v4257_v28, %v8590_v17  ;;  %v1298_v40 = vsel %vm1293_vm5, %v1265_v6, %v8593_v44  ;;  %v4258_v28 = vld [vmem:[%s4431_s28 + $0x48] sm:$0xff]  ;;  %v8595_v17 = vld [vmem:[#allocation60_spill] sm:$0xff] }
 0x240   : > { %v1132_v12 = vpop.permute.xlu1 %1131  ;;  %v1362_v36 = vsel %vm1359_vm7, %v1329_v22, %v5518_v13 }
 0x241   : > { %v5880_v63 = vpop.permute.xlu0 %1078  ;;  %v1459_v33 = vsel %vm1458_vm10, %v1426_v26, %v1132_v12  ;;  %v1361_v26 = vsel %vm1359_vm7, %v1328_v32, %v5508_v50  ;;  %v1395_v62 = vsel %vm1392_vm8, %v1362_v36, %v5669_v56  ;;  %v8592_v12 = vld [vmem:[#allocation87_spill] sm:$0xff]  ;;  %v1331_v56 = vsel %vm1326_vm6, %v1298_v40, %v5398_v18  ;;  %v8597_v18 = vld [vmem:[#allocation57_spill] sm:$0xff] }
 0x242   : > { %4072 = vmatprep.mubr.msk.f32.mxu0 %vm8177_vm11, %v1459_v33  ;;  %v1264_v13 = vsel %vm1260_vm4, %v1231_v46, %v8592_v12  ;;  %v1394_v22 = vsel %vm1392_vm8, %v1361_v26, %v5659_v19  ;;  %v1428_v33 = vsel %vm1425_vm9, %v1395_v62, %v5802_v38  ;;  %v1234_v19 = vsel %vm1227_vm3, %v4258_v28, %v8595_v17  ;;  %v8596_v46 = vld [vmem:[#allocation142_spill] sm:$0xff]  ;;  %v4259_v26 = vld [vmem:[%s4431_s28 + $0x38] sm:$0xff]  ;;  %v8599_v40 = vld [vmem:[#allocation89_spill] sm:$0xff] }
 0x243   : > { %v1297_v50 = vsel %vm1293_vm5, %v1264_v13, %v8594_v4  ;;  %v1427_v54 = vsel %vm1425_vm9, %v1394_v22, %v5790_v58  ;;  %v1364_v3 = vsel %vm1359_vm7, %v1331_v56, %v5532_v49  ;;  %v1233_v62 = vsel %vm1227_vm3, %v4259_v26, %v8597_v18  ;;  %v8598_v58 = vld [vmem:[#allocation92_spill] sm:$0xff]  ;;  %v8600_v22 = vld [vmem:[#allocation126_spill] sm:$0xff]  ;;  %v4260_v17 = vld [vmem:[%s4431_s28 + $0x60] sm:$0xff] }
 0x244   : > { %v1136_v35 = vpop.permute.xlu1 %1135  ;;  %v1330_v38 = vsel %vm1326_vm6, %v1297_v50, %v8596_v46  ;;  %v1267_v12 = vsel %vm1260_vm4, %v1234_v19, %v8598_v58  ;;  %v1397_v44 = vsel %vm1392_vm8, %v1364_v3, %v5677_v25  ;;  %v1266_v49 = vsel %vm1260_vm4, %v1233_v62, %v8599_v40  ;;  %v8601_v50 = vld [vmem:[#allocation122_spill] sm:$0xff]  ;;  %v8606_v62 = vld [vmem:[#allocation128_spill] sm:$0xff] }
 0x245   : > { %v1461_v32 = vsel %vm1458_vm10, %v1428_v33, %v1136_v35  ;;  %v1134_v36 = vpop.permute.xlu0 %1133  ;;  %v1363_v13 = vsel %vm1359_vm7, %v1330_v38, %v5516_v20  ;;  %v1300_v33 = vsel %vm1293_vm5, %v1267_v12, %v8600_v22  ;;  %v1430_v4 = vsel %vm1425_vm9, %v1397_v44, %v5810_v55  ;;  %v4261_v38 = vld [vmem:[%s4431_s28 + $0x50] sm:$0xff]  ;;  %v8607_v44 = vld [vmem:[#allocation125_spill] sm:$0xff] }
 0x246   : > { %v1460_v6 = vsel %vm1458_vm10, %v1427_v54, %v1134_v36  ;;  %v1396_v35 = vsel %vm1392_vm8, %v1363_v13, %v5667_v30  ;;  %v1299_v25 = vsel %vm1293_vm5, %v1266_v49, %v8601_v50  ;;  %v1333_v56 = vsel %vm1326_vm6, %v1300_v33, %v5406_v23  ;;  %v8602_v30 = vld [vmem:[#allocation62_spill] sm:$0xff]  ;;  %v8603_v23 = vld [vmem:[#allocation59_spill] sm:$0xff] }
 0x247   : > { %4073 = vmatmul.mubr.msk.f32.vlgmr.msra.gmra.mxu0 %vm8177_vm11, %v1460_v6  ;;  %v1429_v54 = vsel %vm1425_vm9, %v1396_v35, %v5799_v9  ;;  %v1236_v19 = vsel %vm1227_vm3, %v4260_v17, %v8602_v30  ;;  %v1332_v55 = vsel %vm1326_vm6, %v1299_v25, %v5393_v10  ;;  %v1235_v3 = vsel %vm1227_vm3, %v4261_v38, %v8603_v23  ;;  %v8604_v9 = vld [vmem:[#allocation94_spill] sm:$0xff]  ;;  %v8605_v10 = vld [vmem:[#allocation91_spill] sm:$0xff]  ;;  %v4262_v35 = vld [vmem:[%s4431_s28 + $0x78] sm:$0xff] }
 0x248   : > { %4075 = vmatprep.mubr.msk.f32.mxu0 %vm8177_vm11, %v1461_v32  ;;  %v1140_v20 = vpop.permute.xlu1 %1139  ;;  %v1366_v32 = vsel %vm1359_vm7, %v1333_v56, %v5540_v0  ;;  %v1269_v6 = vsel %vm1260_vm4, %v1236_v19, %v8604_v9  ;;  %v1365_v26 = vsel %vm1359_vm7, %v1332_v55, %v5527_v42  ;;  %v1268_v0 = vsel %vm1260_vm4, %v1235_v3, %v8605_v10  ;;  %v4263_v56 = vld [vmem:[%s4431_s28 + $0x68] sm:$0xff]  ;;  %v8612_v30 = vld [vmem:[#allocation93_spill] sm:$0xff]  ;;  %v8614_v38 = vld [vmem:[#allocation127_spill] sm:$0xff] }
 0x249   : > { %v1463_v36 = vsel %vm1458_vm10, %v1430_v4, %v1140_v20  ;;  %v1138_v28 = vpop.permute.xlu0 %1137  ;;  %v1399_v18 = vsel %vm1392_vm8, %v1366_v32, %v5685_v2  ;;  %v1302_v58 = vsel %vm1293_vm5, %v1269_v6, %v8606_v62  ;;  %v1398_v12 = vsel %vm1392_vm8, %v1365_v26, %v5675_v14  ;;  %v8608_v14 = vld [vmem:[#allocation64_spill] sm:$0xff]  ;;  %v8613_v19 = vld [vmem:[#allocation130_spill] sm:$0xff]  ;;  %v4264_v26 = vld [vmem:[%s4431_s28 + $0x90] sm:$0xff] }
 0x24a   : > { %v1462_v46 = vsel %vm1458_vm10, %v1429_v54, %v1138_v28  ;;  %v1432_v13 = vsel %vm1425_vm9, %v1399_v18, %v5816_v52  ;;  %v1301_v2 = vsel %vm1293_vm5, %v1268_v0, %v8607_v44  ;;  %v1335_v40 = vsel %vm1326_vm6, %v1302_v58, %v5414_v41  ;;  %v8609_v52 = vld [vmem:[#allocation144_spill] sm:$0xff]  ;;  %v8610_v41 = vld [vmem:[#allocation61_spill] sm:$0xff]  ;;  %v8619_v44 = vld [vmem:[#allocation131_spill] sm:$0xff] }
 0x24b   : > { %4076 = vmatmul.mubr.msk.f32.gmra.mxu0 %vm8177_vm11, %v1462_v46  ;;  %v1431_v49 = vsel %vm1425_vm9, %v1398_v12, %v5807_v60  ;;  %v1238_v4 = vsel %vm1227_vm3, %v4262_v35, %v8608_v14  ;;  %v1334_v20 = vsel %vm1326_vm6, %v1301_v2, %v8609_v52  ;;  %v1368_v50 = vsel %vm1359_vm7, %v1335_v40, %v5548_v53  ;;  %v8611_v60 = vld [vmem:[#allocation96_spill] sm:$0xff]  ;;  %v4265_v62 = vld [vmem:[%s4431_s28 + $0x80] sm:$0xff]  ;;  %v4266_v52 = vld [vmem:[%s4431_s28 + $0xa8] sm:$0xff] }
 0x24c   : > { %4078 = vmatprep.mubr.msk.f32.mxu0 %vm8177_vm11, %v1463_v36  ;;  %v1144_v42 = vpop.permute.xlu1 %1143  ;;  %v1237_v54 = vsel %vm1227_vm3, %v4263_v56, %v8610_v41  ;;  %v1271_v36 = vsel %vm1260_vm4, %v1238_v4, %v8611_v60  ;;  %v1367_v28 = vsel %vm1359_vm7, %v1334_v20, %v5538_v8  ;;  %v1401_v17 = vsel %vm1392_vm8, %v1368_v50, %v5693_v45  ;;  %v4267_v56 = vld [vmem:[%s4431_s28 + $0x98] sm:$0xff] }
 0x24d   : > { %v1465_v22 = vsel %vm1458_vm10, %v1432_v13, %v1144_v42  ;;  %v1142_v33 = vpop.permute.xlu0 %1141  ;;  %v1270_v53 = vsel %vm1260_vm4, %v1237_v54, %v8612_v30  ;;  %v1304_v55 = vsel %vm1293_vm5, %v1271_v36, %v8613_v19  ;;  %v1400_v32 = vsel %vm1392_vm8, %v1367_v28, %v5683_v43  ;;  %v8615_v43 = vld [vmem:[#allocation66_spill] sm:$0xff]  ;;  %v8625_v28 = vld [vmem:[#allocation132_spill] sm:$0xff]  ;;  %v8626_v19 = vld [vmem:[#allocation35_spill] sm:$0xff] }
 0x24e   : > { %v1464_v25 = vsel %vm1458_vm10, %v1431_v49, %v1142_v33  ;;  %v1434_v46 = vsel %vm1425_vm9, %v1401_v17, %v5820_v47  ;;  %v1303_v45 = vsel %vm1293_vm5, %v1270_v53, %v8614_v38  ;;  %v1337_v23 = vsel %vm1326_vm6, %v1304_v55, %v5422_v31  ;;  %v8616_v31 = vld [vmem:[#allocation63_spill] sm:$0xff]  ;;  %v4268_v38 = vld [vmem:[%s4431_s28 + $0xc0] sm:$0xff] }
 0x24f   : > { %4079 = vmatmul.mubr.msk.f32.gmra.mxu0 %vm8177_vm11, %v1464_v25  ;;  %v1433_v3 = vsel %vm1425_vm9, %v1400_v32, %v5814_v59  ;;  %v1240_v18 = vsel %vm1227_vm3, %v4264_v26, %v8615_v43  ;;  %v1336_v47 = vsel %vm1326_vm6, %v1303_v45, %v5412_v57  ;;  %v1370_v10 = vsel %vm1359_vm7, %v1337_v23, %v5556_v34  ;;  %v8617_v59 = vld [vmem:[#allocation98_spill] sm:$0xff]  ;;  %v8618_v57 = vld [vmem:[#allocation95_spill] sm:$0xff]  ;;  %v8628_v23 = vld [vmem:[#allocation164_spill] sm:$0xff] }
 0x250   : > { %4081 = vmatprep.mubr.msk.f32.mxu0 %vm8177_vm11, %v1465_v22  ;;  %v1148_v8 = vpop.permute.xlu1 %1147  ;;  %v1239_v58 = vsel %vm1227_vm3, %v4265_v62, %v8616_v31  ;;  %v1273_v12 = vsel %vm1260_vm4, %v1240_v18, %v8617_v59  ;;  %v1369_v13 = vsel %vm1359_vm7, %v1336_v47, %v5546_v61  ;;  %v1403_v42 = vsel %vm1392_vm8, %v1370_v10, %v5701_v1  ;;  %v8620_v22 = vld [vmem:[#allocation129_spill] sm:$0xff]  ;;  %v8631_v18 = vld [vmem:[#allocation162_spill] sm:$0xff] }
 0x251   : > { %v1467_v9 = vsel %vm1458_vm10, %v1434_v46, %v1148_v8  ;;  %v1146_v6 = vpop.permute.xlu0 %1145  ;;  %v1272_v34 = vsel %vm1260_vm4, %v1239_v58, %v8618_v57  ;;  %v1306_v2 = vsel %vm1293_vm5, %v1273_v12, %v8619_v44  ;;  %v1402_v40 = vsel %vm1392_vm8, %v1369_v13, %v5691_v5  ;;  %v8621_v5 = vld [vmem:[#allocation68_spill] sm:$0xff]  ;;  %v8632_v10 = vld [vmem:[#allocation182_spill] sm:$0xff]  ;;  %v8634_v31 = vld [vmem:[#allocation133_spill] sm:$0xff] }
 0x252   : > { %v1466_v0 = vsel %vm1458_vm10, %v1433_v3, %v1146_v6  ;;  %v1436_v49 = vsel %vm1425_vm9, %v1403_v42, %v5824_v21  ;;  %v1305_v1 = vsel %vm1293_vm5, %v1272_v34, %v8620_v22  ;;  %v1339_v33 = vsel %vm1326_vm6, %v1306_v2, %v5430_v15  ;;  %v8622_v15 = vld [vmem:[#allocation65_spill] sm:$0xff]  ;;  %v4269_v6 = vld [vmem:[%s4431_s28 + $0xb0] sm:$0xff]  ;;  %v8637_v34 = vld [vmem:[#allocation36_spill] sm:$0xff] }
 0x253   : > { %4082 = vmatmul.mubr.msk.f32.gmra.mxu0 %vm8177_vm11, %v1466_v0  ;;  %v1435_v35 = vsel %vm1425_vm9, %v1402_v40, %v5818_v7  ;;  %v1242_v20 = vsel %vm1227_vm3, %v4266_v52, %v8621_v5  ;;  %v1338_v21 = vsel %vm1326_vm6, %v1305_v1, %v5420_v27  ;;  %v1372_v50 = vsel %vm1359_vm7, %v1339_v33, %v5564_v16  ;;  %v8623_v7 = vld [vmem:[#allocation100_spill] sm:$0xff]  ;;  %v8624_v27 = vld [vmem:[#allocation97_spill] sm:$0xff]  ;;  %v8636_v13 = vld [vmem:[#allocation195_spill] sm:$0xff] }
 0x254   : > { %4084 = vmatprep.mubr.msk.f32.mxu0 %vm8177_vm11, %v1467_v9  ;;  %v1152_v61 = vpop.permute.xlu1 %1151  ;;  %v1241_v41 = vsel %vm1227_vm3, %v4267_v56, %v8622_v15  ;;  %v1275_v54 = vsel %vm1260_vm4, %v1242_v20, %v8623_v7  ;;  %v1371_v60 = vsel %vm1359_vm7, %v1338_v21, %v5554_v37  ;;  %v1405_v36 = vsel %vm1392_vm8, %v1372_v50, %v5709_v29  ;;  %v8635_v59 = vld [vmem:[#allocation181_spill] sm:$0xff]  ;;  %v8638_v2 = vld [vmem:[#allocation147_spill] sm:$0xff]  ;;  %v4270_v33 = vld [vmem:[%s4431_s28 + $0xd8] sm:$0xff] }
 0x255   : > { %v1469_v14 = vsel %vm1458_vm10, %v1436_v49, %v1152_v61  ;;  %v1150_v4 = vpop.permute.xlu0 %1149  ;;  %v1274_v16 = vsel %vm1260_vm4, %v1241_v41, %v8624_v27  ;;  %v1308_v17 = vsel %vm1293_vm5, %v1275_v54, %v8625_v28  ;;  %v1404_v30 = vsel %vm1392_vm8, %v1371_v60, %v5699_v51  ;;  %v8627_v51 = vld [vmem:[#allocation70_spill] sm:$0xff]  ;;  %v8639_v49 = vld [vmem:[#allocation193_spill] sm:$0xff]  ;;  %v8644_v15 = vld [vmem:[#allocation104_spill] sm:$0xff] }
 0x256   : > { %v1468_v25 = vsel %vm1458_vm10, %v1435_v35, %v1150_v4  ;;  %v1438_v53 = vsel %vm1425_vm9, %v1405_v36, %v5828_v39  ;;  %v1307_v29 = vsel %vm1293_vm5, %v1274_v16, %v8626_v19  ;;  %v1341_v55 = vsel %vm1326_vm6, %v1308_v17, %v5438_v24  ;;  %v8629_v24 = vld [vmem:[#allocation67_spill] sm:$0xff]  ;;  %v8640_v35 = vld [vmem:[#allocation72_spill] sm:$0xff]  ;;  %v8641_v4 = vld [vmem:[#allocation145_spill] sm:$0xff] }
 0x257   : > { %4085 = vmatmul.mubr.msk.f32.gmra.mxu0 %vm8177_vm11, %v1468_v25  ;;  %v1437_v32 = vsel %vm1425_vm9, %v1404_v30, %v5822_v48  ;;  %v1244_v45 = vsel %vm1227_vm3, %v4268_v38, %v8627_v51  ;;  %v1340_v39 = vsel %vm1326_vm6, %v1307_v29, %v5428_v11  ;;  %v1374_v3 = vsel %vm1359_vm7, %v1341_v55, %v8628_v23  ;;  %v8630_v48 = vld [vmem:[#allocation102_spill] sm:$0xff]  ;;  %v8633_v11 = vld [vmem:[#allocation99_spill] sm:$0xff]  ;;  %v8643_v25 = vld [vmem:[#allocation69_spill] sm:$0xff] }
 0x258   : > { %4087 = vmatprep.mubr.msk.f32.mxu0 %vm8177_vm11, %v1469_v14  ;;  %v1156_v37 = vpop.permute.xlu1 %1155  ;;  %v1243_v26 = vsel %vm1227_vm3, %v4269_v6, %v8629_v24  ;;  %v1277_v43 = vsel %vm1260_vm4, %v1244_v45, %v8630_v48  ;;  %v1373_v47 = vsel %vm1359_vm7, %v1340_v39, %v8631_v18  ;;  %v1407_v0 = vsel %vm1392_vm8, %v1374_v3, %v8632_v10  ;;  %v8642_v5 = vld [vmem:[#allocation166_spill] sm:$0xff]  ;;  %v8645_v7 = vld [vmem:[#allocation163_spill] sm:$0xff]  ;;  %v8647_v27 = vld [vmem:[#allocation101_spill] sm:$0xff] }
 0x259   : > { %v1471_v46 = vsel %vm1458_vm10, %v1438_v53, %v1156_v37  ;;  %v1154_v8 = vpop.permute.xlu0 %1153  ;;  %v1276_v62 = vsel %vm1260_vm4, %v1243_v26, %v8633_v11  ;;  %v1310_v58 = vsel %vm1293_vm5, %v1277_v43, %v8634_v31  ;;  %v1406_v12 = vsel %vm1392_vm8, %v1373_v47, %v8635_v59  ;;  %v4271_v50 = vld [vmem:[%s4431_s28 + $0xc8] sm:$0xff]  ;;  %v8646_v60 = vld [vmem:[#allocation183_spill] sm:$0xff]  ;;  %v8649_v30 = vld [vmem:[#allocation40_spill] sm:$0xff] }
 0x25a   : > { %v1470_v9 = vsel %vm1458_vm10, %v1437_v32, %v1154_v8  ;;  %v1440_v42 = vsel %vm1425_vm9, %v1407_v0, %v8636_v13  ;;  %v1309_v44 = vsel %vm1293_vm5, %v1276_v62, %v8637_v34  ;;  %v1343_v40 = vsel %vm1326_vm6, %v1310_v58, %v8638_v2  ;;  %v8648_v28 = vld [vmem:[#allocation134_spill] sm:$0xff]  ;;  %v8650_v37 = vld [vmem:[#allocation197_spill] sm:$0xff]  ;;  %v4272_v23 = vld [vmem:[%s4431_s28 + $0xf0] sm:$0xff] }
 0x25b   : > { %4088 = vmatmul.mubr.msk.f32.gmra.mxu0 %vm8177_vm11, %v1470_v9  ;;  %v1439_v61 = vsel %vm1425_vm9, %v1406_v12, %v8639_v49  ;;  %v1246_v14 = vsel %vm1227_vm3, %v4270_v33, %v8640_v35  ;;  %v1342_v52 = vsel %vm1326_vm6, %v1309_v44, %v8641_v4  ;;  %v1376_v20 = vsel %vm1359_vm7, %v1343_v40, %v8642_v5  ;;  %v8651_v55 = vld [vmem:[#allocation37_spill] sm:$0xff]  ;;  %v8653_v38 = vld [vmem:[#allocation194_spill] sm:$0xff]  ;;  %v8656_v26 = vld [vmem:[#allocation168_spill] sm:$0xff] }
 0x25c   : > { %4090 = vmatprep.mubr.msk.f32.mxu0 %vm8177_vm11, %v1471_v46  ;;  %v1160_v57 = vpop.permute.xlu1 %1159  ;;  %v1245_v56 = vsel %vm1227_vm3, %v4271_v50, %v8643_v25  ;;  %v1279_v41 = vsel %vm1260_vm4, %v1246_v14, %v8644_v15  ;;  %v1375_v54 = vsel %vm1359_vm7, %v1342_v52, %v8645_v7  ;;  %v1409_v36 = vsel %vm1392_vm8, %v1376_v20, %v8646_v60  ;;  %v8652_v46 = vld [vmem:[#allocation149_spill] sm:$0xff]  ;;  %v8654_v3 = vld [vmem:[#allocation74_spill] sm:$0xff]  ;;  %v8657_v47 = vld [vmem:[#allocation71_spill] sm:$0xff] }
 0x25d   : > { %v1473_v22 = vsel %vm1458_vm10, %v1440_v42, %v1160_v57  ;;  %v1158_v1 = vpop.permute.xlu0 %1157  ;;  %v1278_v16 = vsel %vm1260_vm4, %v1245_v56, %v8647_v27  ;;  %v1312_v17 = vsel %vm1293_vm5, %v1279_v41, %v8648_v28  ;;  %v1408_v53 = vsel %vm1392_vm8, %v1375_v54, %v8649_v30  ;;  %v8655_v6 = vld [vmem:[#allocation146_spill] sm:$0xff]  ;;  %v4273_v18 = vld [vmem:[%s4431_s28 + $0xe0] sm:$0xff]  ;;  %v8660_v58 = vld [vmem:[#allocation184_spill] sm:$0xff] }
 0x25e   : > { %v1472_v21 = vsel %vm1458_vm10, %v1439_v61, %v1158_v1  ;;  %v1442_v19 = vsel %vm1425_vm9, %v1409_v36, %v8650_v37  ;;  %v1311_v32 = vsel %vm1293_vm5, %v1278_v16, %v8651_v55  ;;  %v1345_v8 = vsel %vm1326_vm6, %v1312_v17, %v8652_v46  ;;  %v8658_v0 = vld [vmem:[#allocation106_spill] sm:$0xff]  ;;  %v8659_v62 = vld [vmem:[#allocation165_spill] sm:$0xff]  ;;  %v8661_v12 = vld [vmem:[#allocation103_spill] sm:$0xff] }
 0x25f   : > { %4091 = vmatmul.mubr.msk.f32.gmra.mxu0 %vm8177_vm11, %v1472_v21  ;;  %v1441_v51 = vsel %vm1425_vm9, %v1408_v53, %v8653_v38  ;;  %v1248_v9 = vsel %vm1227_vm3, %v4272_v23, %v8654_v3  ;;  %v1344_v24 = vsel %vm1326_vm6, %v1311_v32, %v8655_v6  ;;  %v1378_v48 = vsel %vm1359_vm7, %v1345_v8, %v8656_v26  ;;  %v8662_v42 = vld [vmem:[#allocation135_spill] sm:$0xff]  ;;  %v8663_v34 = vld [vmem:[#allocation42_spill] sm:$0xff]  ;;  %v8667_v35 = vld [vmem:[#allocation196_spill] sm:$0xff] }
 0x260   : > { %4093 = vmatprep.mubr.msk.f32.mxu0 %vm8177_vm11, %v1473_v22  ;;  %v1164_v29 = vpop.permute.xlu1 %1163  ;;  %v1247_v10 = vsel %vm1227_vm3, %v4273_v18, %v8657_v47  ;;  %v1281_v11 = vsel %vm1260_vm4, %v1248_v9, %v8658_v0  ;;  %v1377_v31 = vsel %vm1359_vm7, %v1344_v24, %v8659_v62  ;;  %v1411_v59 = vsel %vm1392_vm8, %v1378_v48, %v8660_v58  ;;  %v8664_v2 = vld [vmem:[#allocation199_spill] sm:$0xff]  ;;  %v8665_v61 = vld [vmem:[#allocation38_spill] sm:$0xff]  ;;  %v8668_v20 = vld [vmem:[#allocation76_spill] sm:$0xff] }
 0x261   : > { %v1475_v45 = vsel %vm1458_vm10, %v1442_v19, %v1164_v29  ;;  %v1162_v39 = vpop.permute.xlu0 %1161  ;;  %v1280_v13 = vsel %vm1260_vm4, %v1247_v10, %v8661_v12  ;;  %v1314_v57 = vsel %vm1293_vm5, %v1281_v11, %v8662_v42  ;;  %v1410_v44 = vsel %vm1392_vm8, %v1377_v31, %v8663_v34  ;;  %v8666_v1 = vld [vmem:[#allocation151_spill] sm:$0xff]  ;;  %v4274_v5 = vld [vmem:[%s4431_s28 + $0x108] sm:$0xff]  ;;  %v8669_v50 = vld [vmem:[#allocation148_spill] sm:$0xff] }
 0x262   : > { %v1474_v43 = vsel %vm1458_vm10, %v1441_v51, %v1162_v39  ;;  %v1444_v40 = vsel %vm1425_vm9, %v1411_v59, %v8664_v2  ;;  %v1313_v22 = vsel %vm1293_vm5, %v1280_v13, %v8665_v61  ;;  %v1347_v33 = vsel %vm1326_vm6, %v1314_v57, %v8666_v1  ;;  %v8670_v56 = vld [vmem:[#allocation170_spill] sm:$0xff]  ;;  %v4275_v7 = vld [vmem:[%s4431_s28 + $0xf8] sm:$0xff]  ;;  %v8671_v54 = vld [vmem:[#allocation73_spill] sm:$0xff] }
 0x263   : > { %4094 = vmatmul.mubr.msk.f32.gmra.mxu0 %vm8177_vm11, %v1474_v43  ;;  %v1443_v14 = vsel %vm1425_vm9, %v1410_v44, %v8667_v35  ;;  %v1250_v21 = vsel %vm1227_vm3, %v4274_v5, %v8668_v20  ;;  %v1346_v25 = vsel %vm1326_vm6, %v1313_v22, %v8669_v50  ;;  %v1380_v15 = vsel %vm1359_vm7, %v1347_v33, %v8670_v56  ;;  %v8672_v36 = vld [vmem:[#allocation108_spill] sm:$0xff]  ;;  %v8673_v16 = vld [vmem:[#allocation167_spill] sm:$0xff]  ;;  %v8674_v17 = vld [vmem:[#allocation185_spill] sm:$0xff] }
 0x264   : > { %4096 = vmatprep.mubr.msk.f32.mxu0 %vm8177_vm11, %v1475_v45  ;;  %v1168_v49 = vpop.permute.xlu1 %1167  ;;  %v1249_v60 = vsel %vm1227_vm3, %v4275_v7, %v8671_v54  ;;  %v1283_v27 = vsel %vm1260_vm4, %v1250_v21, %v8672_v36  ;;  %v1379_v28 = vsel %vm1359_vm7, %v1346_v25, %v8673_v16  ;;  %v1413_v30 = vsel %vm1392_vm8, %v1380_v15, %v8674_v17  ;;  %v8675_v53 = vld [vmem:[#allocation105_spill] sm:$0xff]  ;;  %v8676_v19 = vld [vmem:[#allocation136_spill] sm:$0xff]  ;;  %v8679_v51 = vld [vmem:[#allocation39_spill] sm:$0xff] }
 0x265   : > { %v1477_v4 = vsel %vm1458_vm10, %v1444_v40, %v1168_v49  ;;  %v1166_v52 = vpop.permute.xlu0 %1165  ;;  %v1282_v37 = vsel %vm1260_vm4, %v1249_v60, %v8675_v53  ;;  %v1316_v29 = vsel %vm1293_vm5, %v1283_v27, %v8676_v19  ;;  %v8677_v55 = vld [vmem:[#allocation44_spill] sm:$0xff]  ;;  %v8678_v46 = vld [vmem:[#allocation201_spill] sm:$0xff]  ;;  %v8681_v3 = vld [vmem:[#allocation198_spill] sm:$0xff] }
 0x266   : > { %v1476_v41 = vsel %vm1458_vm10, %v1443_v14, %v1166_v52  ;;  %v1412_v32 = vsel %vm1392_vm8, %v1379_v28, %v8677_v55  ;;  %v1446_v8 = vsel %vm1425_vm9, %v1413_v30, %v8678_v46  ;;  %v1315_v45 = vsel %vm1293_vm5, %v1282_v37, %v8679_v51  ;;  %v8680_v39 = vld [vmem:[#allocation153_spill] sm:$0xff]  ;;  %v8682_v26 = vld [vmem:[#allocation150_spill] sm:$0xff]  ;;  %v8683_v43 = vld [vmem:[#allocation172_spill] sm:$0xff] }
 0x267   : > { %4097 = vmatmul.mubr.msk.f32.gmra.mxu0 %vm8177_vm11, %v1476_v41  ;;  %v1349_v23 = vsel %vm1326_vm6, %v1316_v29, %v8680_v39  ;;  %v1445_v9 = vsel %vm1425_vm9, %v1412_v32, %v8681_v3  ;;  %v1348_v48 = vsel %vm1326_vm6, %v1315_v45, %v8682_v26  ;;  %v4276_v10 = vld [vmem:[%s4431_s28 + $0x110] sm:$0xff]  ;;  %v8685_v62 = vld [vmem:[#allocation169_spill] sm:$0xff]  ;;  %v8686_v58 = vld [vmem:[#allocation186_spill] sm:$0xff] }
 0x268   : > { %4099 = vmatprep.mubr.msk.f32.mxu0 %vm8177_vm11, %v1477_v4  ;;  %v1172_v38 = vpop.permute.xlu1 %1171  ;;  %v1382_v18 = vsel %vm1359_vm7, %v1349_v23, %v8683_v43  ;;  %v8684_v0 = vld [vmem:[#allocation75_spill] sm:$0xff]  ;;  %v1381_v31 = vsel %vm1359_vm7, %v1348_v48, %v8685_v62  ;;  %v8688_v42 = vld [vmem:[#allocation46_spill] sm:$0xff]  ;;  %v8690_v40 = vld [vmem:[#allocation41_spill] sm:$0xff] }
 0x269   : > { %v1479_v6 = vsel %vm1458_vm10, %v1446_v8, %v1172_v38  ;;  %v1170_v24 = vpop.permute.xlu0 %1169  ;;  %v1251_v11 = vsel %vm1227_vm3, %v4276_v10, %v8684_v0  ;;  %v1415_v59 = vsel %vm1392_vm8, %v1382_v18, %v8686_v58  ;;  %v8687_v12 = vld [vmem:[#allocation107_spill] sm:$0xff]  ;;  %v1414_v57 = vsel %vm1392_vm8, %v1381_v31, %v8688_v42  ;;  %v8689_v34 = vld [vmem:[#allocation86_spill] sm:$0xff]  ;;  %v8691_v61 = vld [vmem:[#allocation200_spill] sm:$0xff] }
 0x26a   : > { %v1478_v47 = vsel %vm1458_vm10, %v1445_v9, %v1170_v24  ;;  %v1284_v13 = vsel %vm1260_vm4, %v1251_v11, %v8687_v12  ;;  %v1448_v44 = vsel %vm1425_vm9, %v1415_v59, %v8689_v34  ;;  %v1447_v22 = vsel %vm1425_vm9, %v1414_v57, %v8691_v61  ;;  %v4277_v35 = vld [vmem:[%s4431_s28 + $0x128] sm:$0xff]  ;;  %v8692_v14 = vld [vmem:[#allocation77_spill] sm:$0xff]  ;;  %v8693_v52 = vld [vmem:[#allocation152_spill] sm:$0xff] }
 0x26b   : > { %4100 = vmatmul.mubr.msk.f32.gmra.mxu0 %vm8177_vm11, %v1478_v47  ;;  %v1317_v49 = vsel %vm1293_vm5, %v1284_v13, %v8690_v40  ;;  %v1253_v4 = vsel %vm1227_vm3, %v4277_v35, %v8692_v14  ;;  %v4278_v21 = vld [vmem:[%s4431_s28 + $0x120] sm:$0xff]  ;;  %v8694_v50 = vld [vmem:[#allocation78_spill] sm:$0xff]  ;;  %v8696_v41 = vld [vmem:[#allocation171_spill] sm:$0xff] }
 0x26c   : > { %4102 = vmatprep.mubr.msk.f32.mxu0 %vm8177_vm11, %v1479_v6  ;;  %v1176_v2 = vpop.permute.xlu1 %1175  ;;  %v1350_v5 = vsel %vm1326_vm6, %v1317_v49, %v8693_v52  ;;  %v1252_v25 = vsel %vm1227_vm3, %v4278_v21, %v8694_v50  ;;  %v8695_v56 = vld [vmem:[#allocation109_spill] sm:$0xff]  ;;  %v8697_v54 = vld [vmem:[#allocation110_spill] sm:$0xff]  ;;  %v8698_v36 = vld [vmem:[#allocation43_spill] sm:$0xff] }
 0x26d   : > { %v1481_v1 = vsel %vm1458_vm10, %v1448_v44, %v1176_v2  ;;  %v1174_v33 = vpop.permute.xlu0 %1173  ;;  %v1286_v15 = vsel %vm1260_vm4, %v1253_v4, %v8695_v56  ;;  %v1383_v7 = vsel %vm1359_vm7, %v1350_v5, %v8696_v41  ;;  %v1285_v60 = vsel %vm1260_vm4, %v1252_v25, %v8697_v54  ;;  %v8699_v16 = vld [vmem:[#allocation48_spill] sm:$0xff]  ;;  %v8700_v30 = vld [vmem:[#allocation137_spill] sm:$0xff]  ;;  %v8701_v37 = vld [vmem:[#allocation154_spill] sm:$0xff] }
 0x26e   : > { %v1480_v20 = vsel %vm1458_vm10, %v1447_v22, %v1174_v33  ;;  %v1319_v27 = vsel %vm1293_vm5, %v1286_v15, %v8698_v36  ;;  %v1416_v28 = vsel %vm1392_vm8, %v1383_v7, %v8699_v16  ;;  %v1318_v53 = vsel %vm1293_vm5, %v1285_v60, %v8700_v30  ;;  %v8702_v29 = vld [vmem:[#allocation53_spill] sm:$0xff]  ;;  %v8703_v46 = vld [vmem:[#allocation155_spill] sm:$0xff]  ;;  %v8705_v39 = vld [vmem:[#allocation174_spill] sm:$0xff] }
 0x26f   : > { %4103 = vmatmul.mubr.msk.f32.gmra.mxu0 %vm8177_vm11, %v1480_v20  ;;  %v1352_v19 = vsel %vm1326_vm6, %v1319_v27, %v8701_v37  ;;  %v1449_v55 = vsel %vm1425_vm9, %v1416_v28, %v8702_v29  ;;  %v1351_v8 = vsel %vm1326_vm6, %v1318_v53, %v8703_v46  ;;  %v8704_v38 = vld [vmem:[#allocation173_spill] sm:$0xff]  ;;  %v8706_v3 = vld [vmem:[#allocation50_spill] sm:$0xff]  ;;  %v8707_v6 = vld [vmem:[#allocation187_spill] sm:$0xff] }
 0x270   : > { %4105 = vmatprep.mubr.msk.f32.mxu0 %vm8177_vm11, %v1481_v1  ;;  %v1081_v17 = vpop.permute.xlu1 %1080  ;;  %v1385_v51 = vsel %vm1359_vm7, %v1352_v19, %v8704_v38  ;;  %v1384_v23 = vsel %vm1359_vm7, %v1351_v8, %v8705_v39  ;;  %v4279_v10 = vld [vmem:[%s4431_s28 + $0x140] sm:$0xff]  ;;  %v8708_v0 = vld [vmem:[#allocation79_spill] sm:$0xff]  ;;  %v4280_v31 = vld [vmem:[%s4431_s28 + $0x138] sm:$0xff] }
 0x271   : > { %v1178_v32 = vpop.permute.xlu0 %1177  ;;  %v1418_v9 = vsel %vm1392_vm8, %v1385_v51, %v8706_v3  ;;  %v1417_v24 = vsel %vm1392_vm8, %v1384_v23, %v8707_v6  ;;  %v1255_v11 = vsel %vm1227_vm3, %v4279_v10, %v8708_v0  ;;  %v8709_v58 = vld [vmem:[#allocation80_spill] sm:$0xff]  ;;  %v8710_v12 = vld [vmem:[#allocation111_spill] sm:$0xff]  ;;  %v8712_v57 = vld [vmem:[#allocation45_spill] sm:$0xff] }
 0x272   : > { %v1482_v45 = vsel %vm1458_vm10, %v1449_v55, %v1178_v32  ;;  %v1451_v26 = vsel %vm1425_vm9, %v1418_v9, %v1081_v17  ;;  %v1450_v43 = vsel %vm1425_vm9, %v1417_v24, %v5880_v63  ;;  %v1254_v59 = vsel %vm1227_vm3, %v4280_v31, %v8709_v58  ;;  %v8711_v42 = vld [vmem:[#allocation112_spill] sm:$0xff]  ;;  %v8713_v2 = vld [vmem:[#allocation138_spill] sm:$0xff]  ;;  %v8715_v1 = vld [vmem:[#allocation157_spill] sm:$0xff] }
 0x273   : > { %4106 = vmatmul.mubr.msk.f32.gmra.mxu0 %vm8177_vm11, %v1482_v45  ;;  %v1288_v13 = vsel %vm1260_vm4, %v1255_v11, %v8710_v12  ;;  %v1287_v63 = vsel %vm1260_vm4, %v1254_v59, %v8711_v42  ;;  %v8714_v49 = vld [vmem:[#allocation156_spill] sm:$0xff]  ;;  %v8716_v35 = vld [vmem:[#allocation175_spill] sm:$0xff]  ;;  %v8720_v60 = vld [vmem:[#allocation81_spill] sm:$0xff] }
 0x274   : > { %v1182_v48 = vpop.permute.xlu1 %1181  ;;  %v1321_v34 = vsel %vm1293_vm5, %v1288_v13, %v8712_v57  ;;  %v1320_v40 = vsel %vm1293_vm5, %v1287_v63, %v8713_v2  ;;  %v8717_v4 = vld [vmem:[#allocation176_spill] sm:$0xff]  ;;  %v8718_v5 = vld [vmem:[#allocation55_spill] sm:$0xff]  ;;  %v8721_v28 = vld [vmem:[#allocation82_spill] sm:$0xff] }
 0x275   : > { %v1484_v18 = vsel %vm1458_vm10, %v1451_v26, %v1182_v48  ;;  %v1180_v47 = vpop.permute.xlu0 %1179  ;;  %v1354_v61 = vsel %vm1326_vm6, %v1321_v34, %v8714_v49  ;;  %v1353_v33 = vsel %vm1326_vm6, %v1320_v40, %v8715_v1  ;;  %v8719_v21 = vld [vmem:[#allocation188_spill] sm:$0xff]  ;;  %v4282_v16 = vld [vmem:[%s4431_s28 + $0x150] sm:$0xff]  ;;  %v8722_v30 = vld [vmem:[#allocation113_spill] sm:$0xff] }
 0x276   : > { %v1483_v62 = vsel %vm1458_vm10, %v1450_v43, %v1180_v47  ;;  %v1387_v14 = vsel %vm1359_vm7, %v1354_v61, %v8716_v35  ;;  %v1386_v52 = vsel %vm1359_vm7, %v1353_v33, %v8717_v4  ;;  %v4281_v54 = vld [vmem:[%s4431_s28 + $0x158] sm:$0xff]  ;;  %v1256_v17 = vsel %vm1227_vm3, %v4282_v16, %v8721_v28  ;;  %v8723_v37 = vld [vmem:[#allocation114_spill] sm:$0xff]  ;;  %v8724_v29 = vld [vmem:[#allocation47_spill] sm:$0xff] }
 0x277   : > { %4108 = vmatprep.mubr.msk.f32.mxu0 %vm8177_vm11, %v1483_v62  ;;  %v1420_v20 = vsel %vm1392_vm8, %v1387_v14, %v8718_v5  ;;  %v1419_v50 = vsel %vm1392_vm8, %v1386_v52, %v8719_v21  ;;  %v1257_v36 = vsel %vm1227_vm3, %v4281_v54, %v8720_v60  ;;  %v1289_v19 = vsel %vm1260_vm4, %v1256_v17, %v8723_v37  ;;  %v8725_v46 = vld [vmem:[#allocation139_spill] sm:$0xff]  ;;  %v8726_v38 = vld [vmem:[#allocation158_spill] sm:$0xff]  ;;  %v8728_v3 = vld [vmem:[#allocation177_spill] sm:$0xff] }
 0x278   : > { %4109 = vmatmul.mubr.msk.f32.gmra.mxu0 %vm8177_vm11, %v1484_v18  ;;  %v1085_v44 = vpop.permute.xlu1 %1084  ;;  %v1290_v53 = vsel %vm1260_vm4, %v1257_v36, %v8722_v30  ;;  %v1322_v8 = vsel %vm1293_vm5, %v1289_v19, %v8725_v46  ;;  %v8727_v39 = vld [vmem:[#allocation159_spill] sm:$0xff]  ;;  %v8729_v6 = vld [vmem:[#allocation178_spill] sm:$0xff]  ;;  %v8730_v26 = vld [vmem:[#allocation189_spill] sm:$0xff]  ;;  %v4355_v33 = vmov 0.0  }
 0x279   : > { %v1083_v22 = vpop.permute.xlu0 %1082  ;;  %v1453_v25 = vsel %vm1425_vm9, %v1420_v20, %v1085_v44  ;;  %v1323_v55 = vsel %vm1293_vm5, %v1290_v53, %v8724_v29  ;;  %v1355_v23 = vsel %vm1326_vm6, %v1322_v8, %v8727_v39  ;;  %v8731_v43 = vld [vmem:[#allocation190_spill] sm:$0xff]  ;;  %v4283_v31 = vld [vmem:[%s4431_s28 + $0x170] sm:$0xff]  ;;  %v8733_v13 = vld [vmem:[#allocation84_spill] sm:$0xff]  ;;  %v6370_v35 = vrot.slane %v4355_v33, 7 }
 0x27a   : > { %v1452_v15 = vsel %vm1425_vm9, %v1419_v50, %v1083_v22  ;;  %v1356_v51 = vsel %vm1326_vm6, %v1323_v55, %v8726_v38  ;;  %v1388_v24 = vsel %vm1359_vm7, %v1355_v23, %v8729_v6  ;;  %v8732_v58 = vld [vmem:[#allocation83_spill] sm:$0xff]  ;;  %v4284_v12 = vld [vmem:[%s4431_s28 + $0x168] sm:$0xff]  ;;  %v8735_v44 = vld [vmem:[#allocation116_spill] sm:$0xff] }
 0x27b   : > { %v1389_v9 = vsel %vm1359_vm7, %v1356_v51, %v8728_v3  ;;  %v1421_v18 = vsel %vm1392_vm8, %v1388_v24, %v8731_v43  ;;  %v1259_v59 = vsel %vm1227_vm3, %v4283_v31, %v8732_v58  ;;  %v1258_v42 = vsel %vm1227_vm3, %v4284_v12, %v8733_v13  ;;  %v8734_v57 = vld [vmem:[#allocation115_spill] sm:$0xff]  ;;  %v8736_v40 = vld [vmem:[#allocation49_spill] sm:$0xff]  ;;  %v8737_v61 = vld [vmem:[#allocation140_spill] sm:$0xff]  ;;  %8738 = vst [vmem:[#allocation118_spill] sm:$0xff] %v6370_v35 }
 0x27c   : > { %v1186_v56 = vpop.permute.xlu1 %1185  ;;  %v1422_v48 = vsel %vm1392_vm8, %v1389_v9, %v8730_v26  ;;  %v1292_v34 = vsel %vm1260_vm4, %v1259_v59, %v8734_v57  ;;  %v1291_v2 = vsel %vm1260_vm4, %v1258_v42, %v8735_v44  ;;  %v8739_v14 = vld [vmem:[#allocation160_spill] sm:$0xff]  ;;  %v8740_v52 = vld [vmem:[#allocation161_spill] sm:$0xff]  ;;  %v8741_v21 = vld [vmem:[#allocation179_spill] sm:$0xff]  ;;  %v2118_v36 = vrot.slane %v6370_v35, 1 }
 0x27d   : > { %v1486_v41 = vsel %vm1458_vm10, %v1453_v25, %v1186_v56  ;;  %v1184_v7 = vpop.permute.xlu0 %1183  ;;  %v1325_v49 = vsel %vm1293_vm5, %v1292_v34, %v8736_v40  ;;  %v1324_v22 = vsel %vm1293_vm5, %v1291_v2, %v8737_v61  ;;  %v8742_v25 = vld [vmem:[#allocation180_spill] sm:$0xff] }
 0x27e   : > { %v1485_v27 = vsel %vm1458_vm10, %v1452_v15, %v1184_v7  ;;  %v1358_v4 = vsel %vm1326_vm6, %v1325_v49, %v8739_v14  ;;  %v1357_v5 = vsel %vm1326_vm6, %v1324_v22, %v8740_v52  ;;  %v6382_v15 = vsel %vm1951_vm12, 0.0, %v6370_v35  ;;  %v8744_v7 = vld [vmem:[#allocation191_spill] sm:$0xff]  ;;  %v8745_v16 = vld [vmem:[#allocation192_spill] sm:$0xff] }
 0x27f   : > { %4111 = vmatprep.mubr.msk.f32.mxu0 %vm8177_vm11, %v1485_v27  ;;  %v1391_v50 = vsel %vm1359_vm7, %v1358_v4, %v8741_v21  ;;  %v1390_v56 = vsel %vm1359_vm7, %v1357_v5, %v8742_v25  ;;  %8743 = vst [vmem:[#allocation141_spill] sm:$0xff] %v6382_v15  ;;  %v2117_v60 = vrot.slane %v6382_v15, 1 }
 0x280   : > { %4112 = vmatmul.mubr.msk.f32.gmra.mxu0 %vm8177_vm11, %v1486_v41  ;;  %v1089_v32 = vpop.permute.xlu1 %1088  ;;  %v6386_v41 = vsel %vm1951_vm12, %v6370_v35, 0.0  ;;  %v1424_v54 = vsel %vm1392_vm8, %v1391_v50, %v8744_v7  ;;  %v1423_v28 = vsel %vm1392_vm8, %v1390_v56, %v8745_v16 }
 0x281   : > { %v1087_v45 = vpop.permute.xlu0 %1086  ;;  %v1455_v47 = vsel %vm1425_vm9, %v1422_v48, %v1089_v32  ;;  %v2120_v27 = vrot.slane %v6386_v41, 1  ;;  %v2119_v29 = vsel %vm271_vm0, %v2117_v60, %v2118_v36 }
 0x282   : > { %v1454_v0 = vsel %vm1425_vm9, %v1421_v18, %v1087_v45 }
 0x283   : > { %v2121_v55 = vsel %vm271_vm0, %v2118_v36, %v2120_v27 }
 0x284   : > { %v1190_v10 = vpop.permute.xlu1 %1189  ;;  %v6401_v46 = vpack.i.bf16 %v2121_v55, %v2119_v29 }
 0x285   : > { %v1488_v11 = vsel %vm1458_vm10, %v1455_v47, %v1190_v10  ;;  %v1188_v62 = vpop.permute.xlu0 %1187 }
 0x286   : > { %v1487_v63 = vsel %vm1458_vm10, %v1454_v0, %v1188_v62  ;;  %8746 = vst [vmem:[#allocation51_spill] sm:$0xff] %v6401_v46  ;;  %4229 = vrot.lane.b32.xlu0 %v6401_v46, %s4347_s29 }
 0x287   : > { %4114 = vmatprep.mubr.msk.f32.mxu0 %vm8177_vm11, %v1487_v63 }
 0x288   : > { %4115 = vmatmul.mubr.msk.f32.gmra.mxu0 %vm8177_vm11, %v1488_v11  ;;  %v1093_v1 = vpop.permute.xlu1 %1092 }
 0x289   : > { %v1091_v20 = vpop.permute.xlu0 %1090  ;;  %v1457_v17 = vsel %vm1425_vm9, %v1424_v54, %v1093_v1 }
 0x28a   : > { %v1456_v53 = vsel %vm1425_vm9, %v1423_v28, %v1091_v20 }
 0x28c   : > { %v1194_v30 = vpop.permute.xlu1 %1193 }
 0x28d   : > { %v1490_v37 = vsel %vm1458_vm10, %v1457_v17, %v1194_v30  ;;  %v1192_v19 = vpop.permute.xlu0 %1191 }
 0x28e   : > { %v1489_v32 = vsel %vm1458_vm10, %v1456_v53, %v1192_v19 }
 0x28f   : > { %4117 = vmatprep.mubr.msk.f32.mxu0 %vm8177_vm11, %v1489_v32 }
 0x290   : > { %4118 = vmatmul.mubr.msk.f32.gmra.mxu0 %vm8177_vm11, %v1490_v37 }
 0x307   : > { %v4074_v8 = vpop.f32.mrf.mxu0 }
 0x308   : > { %vm1823_vm13 = vcmp.ge.f32.partialorder %v4074_v8, 0.0  ;;  %v1855_v38 = vmul.f32 0.01, %v4074_v8 }
 0x309   : > { %v1663_v51 = vpop.f32.mrf.mxu0 }
 0x30a   : > { %v1887_v45 = vsel %vm1823_vm13, %v4074_v8, %v1855_v38  ;;  %vm1822_vm14 = vcmp.ge.f32.partialorder %v1663_v51, 0.0  ;;  %v1854_v39 = vmul.f32 0.01, %v1663_v51 }
 0x30b   : > { %v1955_v23 = vrot.slane %v1887_v45, 7  ;;  %v4077_v3 = vpop.f32.mrf.mxu0 }
 0x30c   : > { %v1886_v9 = vsel %vm1822_vm14, %v1663_v51, %v1854_v39  ;;  %vm1825_vm15 = vcmp.ge.f32.partialorder %v4077_v3, 0.0  ;;  %v1857_v6 = vmul.f32 0.01, %v4077_v3 }
 0x30d   : > { %v1954_v24 = vrot.slane %v1886_v9, 7  ;;  %v1673_v26 = vpop.f32.mrf.mxu0  ;;  %v6408_v48 = vsel %vm1951_vm12, %v1955_v23, 0.0 }
 0x30e   : > { %v1889_v43 = vsel %vm1825_vm15, %v4077_v3, %v1857_v6  ;;  %vm1824_vm11 = vcmp.ge.f32.partialorder %v1673_v26, 0.0  ;;  %v1856_v0 = vmul.f32 0.01, %v1673_v26  ;;  %v2125_v59 = vrot.slane %v6408_v48, 1 }
 0x30f   : > { %v6411_v18 = vsel %vm1951_vm12, %v1954_v24, %v1955_v23  ;;  %v6414_v47 = vsel %vm1951_vm12, 0.0, %v1954_v24  ;;  %v1958_v10 = vrot.slane %v1889_v43, 7  ;;  %v4080_v11 = vpop.f32.mrf.mxu0 }
 0x310   : > { %vm1827_vm13 = vcmp.ge.f32.partialorder %v4080_v11, 0.0  ;;  %v1859_v62 = vmul.f32 0.01, %v4080_v11  ;;  %v2123_v31 = vrot.slane %v6411_v18, 1  ;;  %v2122_v58 = vrot.slane %v6414_v47, 1 }
 0x311   : > { %v6420_v12 = vsel %vm1951_vm12, %v1958_v10, 0.0  ;;  %v1888_v13 = vsel %vm1824_vm11, %v1673_v26, %v1856_v0  ;;  %v1683_v42 = vpop.f32.mrf.mxu0 }
 0x312   : > { %v2130_v63 = vrot.slane %v6420_v12, 1  ;;  %v1957_v57 = vrot.slane %v1888_v13, 7  ;;  %v1891_v34 = vsel %vm1827_vm13, %v4080_v11, %v1859_v62  ;;  %vm1826_vm14 = vcmp.ge.f32.partialorder %v1683_v42, 0.0 }
 0x313   : > { %v1961_v44 = vrot.slane %v1891_v34, 7  ;;  %v1858_v2 = vmul.f32 0.01, %v1683_v42  ;;  %v6424_v40 = vsel %vm271_vm0, %v2123_v31, %v2125_v59  ;;  %v4083_v49 = vpop.f32.mrf.mxu0  ;;  %v6435_v1 = vsel %vm271_vm0, %v2122_v58, %v2123_v31 }
 0x314   : > { %v6427_v61 = vsel %vm1951_vm12, %v1957_v57, %v1958_v10  ;;  %v6430_v22 = vsel %vm1951_vm12, 0.0, %v1957_v57  ;;  %2203 = vrot.lane.b32.xlu0 %v6424_v40, %s4347_s29  ;;  %vm1829_vm11 = vcmp.ge.f32.partialorder %v4083_v49, 0.0  ;;  %2201 = vrot.lane.b32.xlu1 %v6435_v1, %s4347_s29  ;;  %v1861_v4 = vmul.f32 0.01, %v4083_v49 }
 0x315   : > { %v6438_v33 = vsel %vm1951_vm12, %v1961_v44, 0.0  ;;  %v1890_v14 = vsel %vm1826_vm14, %v1683_v42, %v1858_v2  ;;  %v1693_v52 = vpop.f32.mrf.mxu0  ;;  %v2128_v5 = vrot.slane %v6427_v61, 1  ;;  %v2127_v7 = vrot.slane %v6430_v22, 1 }
 0x316   : > { %v2135_v20 = vrot.slane %v6438_v33, 1  ;;  %v1960_v21 = vrot.slane %v1890_v14, 7  ;;  %vm1828_vm15 = vcmp.ge.f32.partialorder %v1693_v52, 0.0  ;;  %v1893_v50 = vsel %vm1829_vm11, %v4083_v49, %v1861_v4 }
 0x317   : > { %v1860_v25 = vmul.f32 0.01, %v1693_v52  ;;  %v6445_v56 = vsel %vm271_vm0, %v2128_v5, %v2130_v63  ;;  %v4086_v54 = vpop.f32.mrf.mxu0  ;;  %v1964_v27 = vrot.slane %v1893_v50, 7  ;;  %v6457_v28 = vsel %vm271_vm0, %v2127_v7, %v2128_v5 }
 0x318   : > { %8747 = vst [vmem:[#allocation56_spill] sm:$0xff] %v6445_v56  ;;  %v6449_v60 = vsel %vm1951_vm12, %v1960_v21, %v1961_v44  ;;  %v6452_v36 = vsel %vm1951_vm12, 0.0, %v1960_v21  ;;  %2207 = vrot.lane.b32.xlu0 %v6445_v56, %s4347_s29  ;;  %vm1831_vm13 = vcmp.ge.f32.partialorder %v4086_v54, 0.0  ;;  %v1863_v17 = vmul.f32 0.01, %v4086_v54  ;;  %2205 = vrot.lane.b32.xlu1 %v6457_v28, %s4347_s29 }
 0x319   : > { %v1892_v16 = vsel %vm1828_vm15, %v1693_v52, %v1860_v25  ;;  %v1703_v30 = vpop.f32.mrf.mxu0  ;;  %v2133_v53 = vrot.slane %v6449_v60, 1  ;;  %v6461_v37 = vsel %vm1951_vm12, %v1964_v27, 0.0  ;;  %v2132_v3 = vrot.slane %v6452_v36, 1 }
 0x31a   : > { %v1963_v19 = vrot.slane %v1892_v16, 7  ;;  %vm1830_vm14 = vcmp.ge.f32.partialorder %v1703_v30, 0.0  ;;  %v1862_v29 = vmul.f32 0.01, %v1703_v30  ;;  %v1895_v55 = vsel %vm1831_vm13, %v4086_v54, %v1863_v17 }
 0x31b   : > { %v6466_v32 = vsel %vm271_vm0, %v2133_v53, %v2135_v20  ;;  %v4089_v8 = vpop.f32.mrf.mxu0  ;;  %v2140_v38 = vrot.slane %v6461_v37, 1  ;;  %v1967_v45 = vrot.slane %v1895_v55, 7  ;;  %v6489_v31 = vsel %vm271_vm0, %v2132_v3, %v2133_v53 }
 0x31c   : > { %8748 = vst [vmem:[#allocation88_spill] sm:$0xff] %v6466_v32  ;;  %v6470_v51 = vsel %vm1951_vm12, %v1963_v19, %v1964_v27  ;;  %v1894_v39 = vsel %vm1830_vm14, %v1703_v30, %v1862_v29  ;;  %2211 = vrot.lane.b32.xlu0 %v6466_v32, %s4347_s29  ;;  %vm1833_vm11 = vcmp.ge.f32.partialorder %v4089_v8, 0.0  ;;  %v1865_v9 = vmul.f32 0.01, %v4089_v8  ;;  %8751 = vst [vmem:[#allocation117_spill] sm:$0xff] %v6489_v31 }
 0x31d   : > { %v1966_v23 = vrot.slane %v1894_v39, 7  ;;  %v1713_v6 = vpop.f32.mrf.mxu0  ;;  %v6476_v24 = vsel %vm1951_vm12, 0.0, %v1963_v19  ;;  %v2138_v43 = vrot.slane %v6470_v51, 1  ;;  %v6480_v10 = vsel %vm1951_vm12, %v1967_v45, 0.0  ;;  %2209 = vrot.lane.b32.xlu1 %v6489_v31, %s4347_s29 }
 0x31e   : > { %vm1832_vm15 = vcmp.ge.f32.partialorder %v1713_v6, 0.0  ;;  %v1864_v26 = vmul.f32 0.01, %v1713_v6  ;;  %v1897_v58 = vsel %vm1833_vm11, %v4089_v8, %v1865_v9  ;;  %v2137_v57 = vrot.slane %v6476_v24, 1 }
 0x31f   : > { %v6483_v0 = vsel %vm1951_vm12, %v1966_v23, %v1967_v45  ;;  %v6486_v11 = vsel %vm1951_vm12, 0.0, %v1966_v23  ;;  %v4092_v62 = vpop.f32.mrf.mxu0  ;;  %v6492_v13 = vsel %vm271_vm0, %v2138_v43, %v2140_v38  ;;  %v1970_v42 = vrot.slane %v1897_v58, 7 }
 0x320   : > { %8749 = vst [vmem:[#allocation85_spill] sm:$0xff] %v6483_v0  ;;  %8750 = vst [vmem:[#allocation120_spill] sm:$0xff] %v6486_v11  ;;  %v1896_v59 = vsel %vm1832_vm15, %v1713_v6, %v1864_v26  ;;  %2215 = vrot.lane.b32.xlu0 %v6492_v13, %s4347_s29  ;;  %vm1835_vm13 = vcmp.ge.f32.partialorder %v4092_v62, 0.0  ;;  %v1867_v44 = vmul.f32 0.01, %v4092_v62  ;;  %v2143_v49 = vrot.slane %v6483_v0, 1 }
 0x321   : > { %8752 = vst [vmem:[#allocation143_spill] sm:$0xff] %v6492_v13  ;;  %v1969_v63 = vrot.slane %v1896_v59, 7  ;;  %v1723_v34 = vpop.f32.mrf.mxu0  ;;  %v2145_v14 = vrot.slane %v6480_v10, 1  ;;  %v6502_v4 = vsel %vm1951_vm12, %v1970_v42, 0.0  ;;  %v6505_v52 = vsel %vm271_vm0, %v2137_v57, %v2138_v43 }
 0x322   : > { %vm1834_vm14 = vcmp.ge.f32.partialorder %v1723_v34, 0.0  ;;  %v1866_v2 = vmul.f32 0.01, %v1723_v34  ;;  %8753 = vst [vmem:[#allocation58_spill] sm:$0xff] %v6505_v52  ;;  %v1899_v50 = vsel %vm1835_vm13, %v4092_v62, %v1867_v44  ;;  %2213 = vrot.lane.b32.xlu1 %v6505_v52, %s4347_s29  ;;  %v2142_v16 = vrot.slane %v6486_v11, 1 }
 0x323   : > { %v4095_v5 = vpop.f32.mrf.mxu0  ;;  %v6508_v20 = vsel %vm1951_vm12, %v1969_v63, %v1970_v42  ;;  %v6511_v21 = vsel %vm1951_vm12, 0.0, %v1969_v63  ;;  %v1973_v7 = vrot.slane %v1899_v50, 7  ;;  %v6516_v27 = vsel %vm271_vm0, %v2143_v49, %v2145_v14 }
 0x324   : > { %8754 = vst [vmem:[#allocation52_spill] sm:$0xff] %v6508_v20  ;;  %8755 = vst [vmem:[#allocation54_spill] sm:$0xff] %v6511_v21  ;;  %v1898_v25 = vsel %vm1834_vm14, %v1723_v34, %v1866_v2  ;;  %2219 = vrot.lane.b32.xlu0 %v6516_v27, %s4347_s29  ;;  %vm1837_vm11 = vcmp.ge.f32.partialorder %v4095_v5, 0.0  ;;  %v1869_v30 = vmul.f32 0.01, %v4095_v5  ;;  %v2150_v19 = vrot.slane %v6502_v4, 1 }
 0x325   : > { %v1972_v54 = vrot.slane %v1898_v25, 7  ;;  %8756 = vst [vmem:[#allocation90_spill] sm:$0xff] %v6516_v27  ;;  %v1733_v17 = vpop.f32.mrf.mxu0  ;;  %v6523_v29 = vsel %vm1951_vm12, %v1973_v7, 0.0  ;;  %v6526_v55 = vsel %vm271_vm0, %v2142_v16, %v2143_v49  ;;  %v2148_v6 = vrot.slane %v6508_v20, 1 }
 0x326   : > { %vm1836_vm15 = vcmp.ge.f32.partialorder %v1733_v17, 0.0  ;;  %v1868_v53 = vmul.f32 0.01, %v1733_v17  ;;  %8757 = vst [vmem:[#allocation87_spill] sm:$0xff] %v6526_v55  ;;  %v1901_v39 = vsel %vm1837_vm11, %v4095_v5, %v1869_v30  ;;  %2217 = vrot.lane.b32.xlu1 %v6526_v55, %s4347_s29  ;;  %v2147_v26 = vrot.slane %v6511_v21, 1 }
 0x327   : > { %v4098_v8 = vpop.f32.mrf.mxu0  ;;  %v6529_v38 = vsel %vm1951_vm12, %v1972_v54, %v1973_v7  ;;  %v6532_v45 = vsel %vm1951_vm12, 0.0, %v1972_v54  ;;  %v1976_v3 = vrot.slane %v1901_v39, 7  ;;  %v2155_v59 = vrot.slane %v6523_v29, 1 }
 0x328   : > { %8758 = vst [vmem:[#allocation124_spill] sm:$0xff] %v6529_v38  ;;  %8759 = vst [vmem:[#allocation119_spill] sm:$0xff] %v6532_v45  ;;  %v1900_v23 = vsel %vm1836_vm15, %v1733_v17, %v1868_v53  ;;  %vm1839_vm13 = vcmp.ge.f32.partialorder %v4098_v8, 0.0  ;;  %v1871_v62 = vmul.f32 0.01, %v4098_v8  ;;  %v6543_v63 = vsel %vm271_vm0, %v2148_v6, %v2150_v19 }
 0x329   : > { %v1975_v9 = vrot.slane %v1900_v23, 7  ;;  %v1743_v43 = vpop.f32.mrf.mxu0  ;;  %v6540_v42 = vsel %vm1951_vm12, %v1976_v3, 0.0  ;;  %8760 = vst [vmem:[#allocation60_spill] sm:$0xff] %v6543_v63  ;;  %2223 = vrot.lane.b32.xlu0 %v6543_v63, %s4347_s29  ;;  %v6554_v2 = vsel %vm271_vm0, %v2147_v26, %v2148_v6  ;;  %v2153_v50 = vrot.slane %v6529_v38, 1 }
 0x32a   : > { %vm1838_vm14 = vcmp.ge.f32.partialorder %v1743_v43, 0.0  ;;  %v1870_v58 = vmul.f32 0.01, %v1743_v43  ;;  %8762 = vst [vmem:[#allocation57_spill] sm:$0xff] %v6554_v2  ;;  %v1903_v49 = vsel %vm1839_vm13, %v4098_v8, %v1871_v62  ;;  %2221 = vrot.lane.b32.xlu1 %v6554_v2, %s4347_s29  ;;  %v2152_v25 = vrot.slane %v6532_v45, 1 }
 0x32b   : > { %v4101_v57 = vpop.f32.mrf.mxu0  ;;  %v6546_v34 = vsel %vm1951_vm12, %v1975_v9, %v1976_v3  ;;  %v6549_v44 = vsel %vm1951_vm12, 0.0, %v1975_v9  ;;  %v1979_v14 = vrot.slane %v1903_v49, 7  ;;  %v6561_v17 = vsel %vm271_vm0, %v2153_v50, %v2155_v59 }
 0x32c   : > { %8761 = vst [vmem:[#allocation142_spill] sm:$0xff] %v6549_v44  ;;  %v1902_v5 = vsel %vm1838_vm14, %v1743_v43, %v1870_v58  ;;  %vm1841_vm11 = vcmp.ge.f32.partialorder %v4101_v57, 0.0  ;;  %v1873_v16 = vmul.f32 0.01, %v4101_v57  ;;  %8763 = vst [vmem:[#allocation92_spill] sm:$0xff] %v6561_v17  ;;  %v6564_v30 = vsel %vm271_vm0, %v2152_v25, %v2153_v50 }
 0x32d   : > { %v1753_v7 = vpop.f32.mrf.mxu0  ;;  %v1978_v54 = vrot.slane %v1902_v5, 7  ;;  %8764 = vst [vmem:[#allocation89_spill] sm:$0xff] %v6564_v30  ;;  %v2160_v8 = vrot.slane %v6540_v42, 1  ;;  %v6568_v39 = vsel %vm1951_vm12, %v1979_v14, 0.0  ;;  %2227 = vrot.lane.b32.xlu0 %v6561_v17, %s4347_s29  ;;  %v2158_v26 = vrot.slane %v6546_v34, 1 }
 0x32e   : > { %vm1840_vm15 = vcmp.ge.f32.partialorder %v1753_v7, 0.0  ;;  %v1872_v53 = vmul.f32 0.01, %v1753_v7  ;;  %2225 = vrot.lane.b32.xlu1 %v6564_v30, %s4347_s29  ;;  %v1905_v9 = vsel %vm1841_vm11, %v4101_v57, %v1873_v16  ;;  %v2157_v43 = vrot.slane %v6549_v44, 1 }
 0x32f   : > { %v4104_v19 = vpop.f32.mrf.mxu0  ;;  %v6571_v23 = vsel %vm1951_vm12, %v1978_v54, %v1979_v14  ;;  %v6574_v3 = vsel %vm1951_vm12, 0.0, %v1978_v54  ;;  %v1982_v58 = vrot.slane %v1905_v9, 7  ;;  %v6583_v14 = vsel %vm271_vm0, %v2158_v26, %v2160_v8 }
 0x330   : > { %v1904_v6 = vsel %vm1840_vm15, %v1753_v7, %v1872_v53  ;;  %vm1843_vm13 = vcmp.ge.f32.partialorder %v4104_v19, 0.0  ;;  %v1875_v49 = vmul.f32 0.01, %v4104_v19  ;;  %8765 = vst [vmem:[#allocation126_spill] sm:$0xff] %v6583_v14  ;;  %v6586_v5 = vsel %vm271_vm0, %v2157_v43, %v2158_v26 }
 0x331   : > { %v1763_v62 = vpop.f32.mrf.mxu0  ;;  %v1981_v59 = vrot.slane %v1904_v6, 7  ;;  %8766 = vst [vmem:[#allocation122_spill] sm:$0xff] %v6586_v5  ;;  %v2165_v57 = vrot.slane %v6568_v39, 1  ;;  %2231 = vrot.lane.b32.xlu0 %v6583_v14, %s4347_s29  ;;  %v6592_v54 = vsel %vm1951_vm12, %v1982_v58, 0.0  ;;  %v2163_v26 = vrot.slane %v6571_v23, 1 }
 0x332   : > { %vm1842_vm14 = vcmp.ge.f32.partialorder %v1763_v62, 0.0  ;;  %v1874_v50 = vmul.f32 0.01, %v1763_v62  ;;  %v1907_v7 = vsel %vm1843_vm13, %v4104_v19, %v1875_v49  ;;  %2229 = vrot.lane.b32.xlu1 %v6586_v5, %s4347_s29  ;;  %v2162_v43 = vrot.slane %v6574_v3, 1 }
 0x333   : > { %v4107_v25 = vpop.f32.mrf.mxu0  ;;  %v6595_v16 = vsel %vm1951_vm12, %v1981_v59, %v1982_v58  ;;  %v1985_v53 = vrot.slane %v1907_v7, 7  ;;  %v6602_v19 = vsel %vm1951_vm12, 0.0, %v1981_v59  ;;  %v2170_v58 = vrot.slane %v6592_v54, 1 }
 0x334   : > { %v1906_v8 = vsel %vm1842_vm14, %v1763_v62, %v1874_v50  ;;  %vm1845_vm11 = vcmp.ge.f32.partialorder %v4107_v25, 0.0  ;;  %v1877_v49 = vmul.f32 0.01, %v4107_v25  ;;  %v6618_v59 = vsel %vm271_vm0, %v2162_v43, %v2163_v26 }
 0x335   : > { %v1773_v9 = vpop.f32.mrf.mxu0  ;;  %v1984_v6 = vrot.slane %v1906_v8, 7  ;;  %v6606_v14 = vsel %vm1951_vm12, %v1985_v53, 0.0  ;;  %v6615_v8 = vsel %vm271_vm0, %v2163_v26, %v2165_v57  ;;  %8768 = vst [vmem:[#allocation59_spill] sm:$0xff] %v6618_v59  ;;  %v2167_v63 = vrot.slane %v6602_v19, 1 }
 0x336   : > { %vm1844_vm15 = vcmp.ge.f32.partialorder %v1773_v9, 0.0  ;;  %v1876_v46 = vmul.f32 0.01, %v1773_v9  ;;  %8767 = vst [vmem:[#allocation62_spill] sm:$0xff] %v6615_v8  ;;  %v1909_v5 = vsel %vm1845_vm11, %v4107_v25, %v1877_v49  ;;  %2235 = vrot.lane.b32.xlu0 %v6615_v8, %s4347_s29  ;;  %2233 = vrot.lane.b32.xlu1 %v6618_v59, %s4347_s29  ;;  %v2293_v31 = vrot.slane %v6382_v15, 2 }
 0x337   : > { %v6609_v62 = vsel %vm1951_vm12, %v1984_v6, %v1985_v53  ;;  %v6612_v50 = vsel %vm1951_vm12, 0.0, %v1984_v6  ;;  %v1988_v53 = vrot.slane %v1909_v5, 7  ;;  %v2168_v6 = vrot.slane %v6595_v16, 1 }
 0x338   : > { %v4110_v7 = vpop.f32.mrf.mxu0  ;;  %v1908_v17 = vsel %vm1844_vm15, %v1773_v9, %v1876_v46  ;;  %v2172_v59 = vrot.slane %v6612_v50, 1 }
 0x339   : > { %v1987_v30 = vrot.slane %v1908_v17, 7  ;;  %vm1847_vm13 = vcmp.ge.f32.partialorder %v4110_v7, 0.0  ;;  %v1879_v57 = vmul.f32 0.01, %v4110_v7  ;;  %v6633_v9 = vsel %vm271_vm0, %v2168_v6, %v2170_v58 }
 0x33a   : > { %v1783_v2 = vpop.f32.mrf.mxu0  ;;  %8769 = vst [vmem:[#allocation94_spill] sm:$0xff] %v6633_v9  ;;  %v2175_v17 = vrot.slane %v6606_v14, 1  ;;  %v6637_v5 = vsel %vm1951_vm12, %v1988_v53, 0.0  ;;  %v6640_v43 = vsel %vm271_vm0, %v2167_v63, %v2168_v6  ;;  %2239 = vrot.lane.b32.xlu0 %v6633_v9, %s4347_s29  ;;  %v2173_v58 = vrot.slane %v6609_v62, 1 }
 0x33b   : > { %vm1846_vm14 = vcmp.ge.f32.partialorder %v1783_v2, 0.0  ;;  %v1878_v26 = vmul.f32 0.01, %v1783_v2  ;;  %v6627_v25 = vsel %vm1951_vm12, %v1987_v30, %v1988_v53  ;;  %v6630_v46 = vsel %vm1951_vm12, 0.0, %v1987_v30  ;;  %8770 = vst [vmem:[#allocation91_spill] sm:$0xff] %v6640_v43  ;;  %2237 = vrot.lane.b32.xlu1 %v6640_v43, %s4347_s29 }
 0x33c   : > { %v1911_v49 = vsel %vm1847_vm13, %v4110_v7, %v1879_v57  ;;  %v2178_v53 = vrot.slane %v6627_v25, 1  ;;  %v2177_v55 = vrot.slane %v6630_v46, 1  ;;  %v2180_v63 = vrot.slane %v6637_v5, 1 }
 0x33d   : > { %v1991_v30 = vrot.slane %v1911_v49, 7  ;;  %v1910_v8 = vsel %vm1846_vm14, %v1783_v2, %v1878_v26  ;;  %v6652_v7 = vsel %vm271_vm0, %v2173_v58, %v2175_v17  ;;  %v6655_v6 = vsel %vm271_vm0, %v2172_v59, %v2173_v58 }
 0x33e   : > { %v1990_v27 = vrot.slane %v1910_v8, 7  ;;  %8771 = vst [vmem:[#allocation128_spill] sm:$0xff] %v6652_v7  ;;  %8772 = vst [vmem:[#allocation125_spill] sm:$0xff] %v6655_v6  ;;  %2243 = vrot.lane.b32.xlu0 %v6652_v7, %s4347_s29  ;;  %v6671_v17 = vsel %vm271_vm0, %v2178_v53, %v2180_v63  ;;  %v6674_v59 = vsel %vm271_vm0, %v2177_v55, %v2178_v53 }
 0x33f   : > { %v6658_v2 = vsel %vm1951_vm12, %v1991_v30, 0.0  ;;  %2241 = vrot.lane.b32.xlu1 %v6655_v6, %s4347_s29  ;;  %8775 = vst [vmem:[#allocation61_spill] sm:$0xff] %v6671_v17  ;;  %8776 = vst [vmem:[#allocation96_spill] sm:$0xff] %v6674_v59 }
 0x340   : > { %v4113_v57 = vpop.f32.mrf.mxu0  ;;  %v6661_v26 = vsel %vm1951_vm12, %v1990_v27, %v1991_v30  ;;  %v6664_v8 = vsel %vm1951_vm12, 0.0, %v1990_v27  ;;  %v2185_v7 = vrot.slane %v6658_v2, 1 }
 0x341   : > { %8773 = vst [vmem:[#allocation64_spill] sm:$0xff] %v6661_v26  ;;  %8774 = vst [vmem:[#allocation144_spill] sm:$0xff] %v6664_v8  ;;  %vm1849_vm11 = vcmp.ge.f32.partialorder %v4113_v57, 0.0  ;;  %v1881_v49 = vmul.f32 0.01, %v4113_v57  ;;  %v2183_v27 = vrot.slane %v6661_v26, 1 }
 0x342   : > { %v1793_v58 = vpop.f32.mrf.mxu0  ;;  %v2182_v9 = vrot.slane %v6664_v8, 1  ;;  %2247 = vrot.lane.b32.xlu0 %v6671_v17, %s4347_s29 }
 0x343   : > { %vm1848_vm15 = vcmp.ge.f32.partialorder %v1793_v58, 0.0  ;;  %v1880_v30 = vmul.f32 0.01, %v1793_v58  ;;  %v1913_v43 = vsel %vm1849_vm11, %v4113_v57, %v1881_v49  ;;  %2245 = vrot.lane.b32.xlu1 %v6674_v59, %s4347_s29  ;;  %v6687_v63 = vsel %vm271_vm0, %v2183_v27, %v2185_v7 }
 0x344   : > { %v1994_v13 = vrot.slane %v1913_v43, 7  ;;  %8777 = vst [vmem:[#allocation93_spill] sm:$0xff] %v6687_v63  ;;  %v6690_v52 = vsel %vm271_vm0, %v2182_v9, %v2183_v27 }
 0x345   : > { %v1912_v6 = vsel %vm1848_vm15, %v1793_v58, %v1880_v30  ;;  %8778 = vst [vmem:[#allocation130_spill] sm:$0xff] %v6690_v52 }
 0x346   : > { %v1993_v55 = vrot.slane %v1912_v6, 7  ;;  %v6684_v53 = vsel %vm1951_vm12, %v1994_v13, 0.0  ;;  %2251 = vrot.lane.b32.xlu0 %v6687_v63, %s4347_s29 }
 0x347   : > { %v2190_v57 = vrot.slane %v6684_v53, 1  ;;  %2249 = vrot.lane.b32.xlu1 %v6690_v52, %s4347_s29 }
 0x348   : > { %v6694_v43 = vsel %vm1951_vm12, %v1993_v55, %v1994_v13  ;;  %v6697_v49 = vsel %vm1951_vm12, 0.0, %v1993_v55  ;;  %v4116_v58 = vpop.f32.mrf.mxu0 }
 0x349   : > { %8779 = vst [vmem:[#allocation127_spill] sm:$0xff] %v6694_v43  ;;  %8780 = vst [vmem:[#allocation66_spill] sm:$0xff] %v6697_v49  ;;  %vm1851_vm13 = vcmp.ge.f32.partialorder %v4116_v58, 0.0  ;;  %v1883_v6 = vmul.f32 0.01, %v4116_v58  ;;  %v2188_v30 = vrot.slane %v6694_v43, 1 }
 0x34a   : > { %v2187_v17 = vrot.slane %v6697_v49, 1  ;;  %v1803_v9 = vpop.f32.mrf.mxu0 }
 0x34b   : > { %v1915_v7 = vsel %vm1851_vm13, %v4116_v58, %v1883_v6  ;;  %vm1850_vm14 = vcmp.ge.f32.partialorder %v1803_v9, 0.0  ;;  %v1882_v13 = vmul.f32 0.01, %v1803_v9  ;;  %v6706_v27 = vsel %vm271_vm0, %v2188_v30, %v2190_v57 }
 0x34c   : > { %8781 = vst [vmem:[#allocation63_spill] sm:$0xff] %v6706_v27  ;;  %v1997_v55 = vrot.slane %v1915_v7, 7  ;;  %v6709_v59 = vsel %vm271_vm0, %v2187_v17, %v2188_v30  ;;  %2255 = vrot.lane.b32.xlu0 %v6706_v27, %s4347_s29  ;;  %v2294_v57 = vrot.slane %v6370_v35, 2  ;;  %v2296_v58 = vrot.slane %v6386_v41, 2 }
 0x34d   : > { %8782 = vst [vmem:[#allocation98_spill] sm:$0xff] %v6709_v59  ;;  %v1914_v32 = vsel %vm1850_vm14, %v1803_v9, %v1882_v13  ;;  %2253 = vrot.lane.b32.xlu1 %v6709_v59, %s4347_s29  ;;  %v2298_v41 = vrot.slane %v6414_v47, 2 }
 0x34e   : > { %v6713_v56 = vsel %vm1951_vm12, %v1997_v55, 0.0  ;;  %v1996_v63 = vrot.slane %v1914_v32, 7  ;;  %v2295_v7 = vsel %vm448_vm1, %v2293_v31, %v2294_v57  ;;  %v2297_v13 = vsel %vm448_vm1, %v2294_v57, %v2296_v58 }
 0x34f   : > { %v2195_v30 = vrot.slane %v6713_v56, 1  ;;  %v6744_v59 = vpack.i.bf16 %v2297_v13, %v2295_v7  ;;  %v2303_v57 = vrot.slane %v6430_v22, 2  ;;  %v2304_v58 = vrot.slane %v6427_v61, 2 }
 0x350   : > { %v6722_v17 = vsel %vm1951_vm12, %v1996_v63, %v1997_v55  ;;  %v6725_v6 = vsel %vm1951_vm12, 0.0, %v1996_v63  ;;  %v2299_v55 = vrot.slane %v6411_v18, 2  ;;  %v2309_v7 = vrot.slane %v6449_v60, 2 }
 0x351   : > { %8783 = vst [vmem:[#allocation95_spill] sm:$0xff] %v6722_v17  ;;  %8784 = vst [vmem:[#allocation131_spill] sm:$0xff] %v6725_v6  ;;  %v2193_v32 = vrot.slane %v6722_v17, 1  ;;  %v2192_v9 = vrot.slane %v6725_v6, 1 }
 0x352   : > { %8787 = vst [vmem:[#allocation65_spill] sm:$0xff] %v6744_v59  ;;  %v6747_v31 = vsel %vm448_vm1, %v2298_v41, %v2299_v55  ;;  %v2306_v41 = vrot.slane %v6420_v12, 2 }
 0x353   : > { %v6733_v27 = vsel %vm271_vm0, %v2193_v32, %v2195_v30  ;;  %v6740_v63 = vsel %vm271_vm0, %v2192_v9, %v2193_v32  ;;  %v2301_v30 = vrot.slane %v6408_v48, 2  ;;  %v6757_v32 = vsel %vm448_vm1, %v2303_v57, %v2304_v58 }
 0x354   : > { %8785 = vst [vmem:[#allocation129_spill] sm:$0xff] %v6733_v27  ;;  %2259 = vrot.lane.b32.xlu0 %v6733_v27, %s4347_s29  ;;  %8786 = vst [vmem:[#allocation68_spill] sm:$0xff] %v6740_v63  ;;  %2257 = vrot.lane.b32.xlu1 %v6740_v63, %s4347_s29  ;;  %v2308_v9 = vrot.slane %v6452_v36, 2  ;;  %v2313_v57 = vrot.slane %v6476_v24, 2  ;;  %v6777_v27 = vsel %vm448_vm1, %v2304_v58, %v2306_v41  ;;  %v2316_v58 = vrot.slane %v6461_v37, 2 }
 0x355   : > { %v6764_v13 = vsel %vm448_vm1, %v2299_v55, %v2301_v30  ;;  %v2311_v55 = vrot.slane %v6438_v33, 2  ;;  %v2318_v30 = vrot.slane %v6486_v11, 2  ;;  %v2323_v41 = vrot.slane %v6511_v21, 2 }
 0x356   : > { %v6770_v48 = vsel %vm448_vm1, %v2308_v9, %v2309_v7  ;;  %v2319_v9 = vrot.slane %v6483_v0, 2 }
 0x357   : > { %v6790_v63 = vsel %vm448_vm1, %v2309_v7, %v2311_v55  ;;  %v2321_v7 = vrot.slane %v6480_v10, 2  ;;  %v2328_v55 = vrot.slane %v6532_v45, 2 }
 0x358   : > { %2377 = vrot.lane.b32.xlu0 %v6747_v31, %s4348_s30  ;;  %4234 = vrot.lane.b32.xlu1 %v6744_v59, %s4348_s30  ;;  %v2314_v59 = vrot.slane %v6470_v51, 2  ;;  %v6796_v33 = vsel %vm448_vm1, %v2318_v30, %v2319_v9  ;;  %v2329_v30 = vrot.slane %v6529_v38, 2 }
 0x359   : > { %v6816_v35 = vsel %vm448_vm1, %v2319_v9, %v2321_v7  ;;  %v2331_v9 = vrot.slane %v6523_v29, 2  ;;  %v2338_v7 = vrot.slane %v6574_v3, 2 }
 0x35a   : > { %v6783_v12 = vsel %vm448_vm1, %v2313_v57, %v2314_v59  ;;  %v2324_v57 = vrot.slane %v6508_v20, 2  ;;  %v6803_v52 = vsel %vm448_vm1, %v2314_v59, %v2316_v58  ;;  %v2326_v59 = vrot.slane %v6502_v4, 2 }
 0x35b   : > { %v6822_v10 = vsel %vm448_vm1, %v2328_v55, %v2329_v30  ;;  %v2333_v58 = vrot.slane %v6549_v44, 2  ;;  %v2339_v55 = vrot.slane %v6571_v23, 2 }
 0x35c   : > { %2381 = vrot.lane.b32.xlu0 %v6757_v32, %s4348_s30  ;;  %2379 = vrot.lane.b32.xlu1 %v6764_v13, %s4348_s30  ;;  %v6809_v37 = vsel %vm448_vm1, %v2323_v41, %v2324_v57  ;;  %8788 = vst [vmem:[#allocation100_spill] sm:$0xff] %v6822_v10  ;;  %v2334_v41 = vrot.slane %v6546_v34, 2  ;;  %v6829_v15 = vsel %vm448_vm1, %v2324_v57, %v2326_v59  ;;  %v2336_v57 = vrot.slane %v6540_v42, 2 }
 0x35d   : > { %v6848_v29 = vsel %vm448_vm1, %v2338_v7, %v2339_v55  ;;  %v2343_v59 = vrot.slane %v6602_v19, 2  ;;  %v2349_v7 = vrot.slane %v6609_v62, 2 }
 0x35e   : > { %v6835_v4 = vsel %vm448_vm1, %v2333_v58, %v2334_v41  ;;  %8790 = vst [vmem:[#allocation132_spill] sm:$0xff] %v6848_v29  ;;  %v2344_v58 = vrot.slane %v6595_v16, 2 }
 0x35f   : > { %8789 = vst [vmem:[#allocation97_spill] sm:$0xff] %v6835_v4 }
 0x360   : > { %2385 = vrot.lane.b32.xlu0 %v6770_v48, %s4348_s30  ;;  %2383 = vrot.lane.b32.xlu1 %v6777_v27, %s4348_s30  ;;  %v6861_v42 = vsel %vm448_vm1, %v2343_v59, %v2344_v58  ;;  %v2354_v59 = vrot.slane %v6627_v25, 2 }
 0x361   : > { %8792 = vst [vmem:[#allocation70_spill] sm:$0xff] %v6861_v42 }
 0x364   : > { %2389 = vrot.lane.b32.xlu0 %v6783_v12, %s4348_s30  ;;  %2387 = vrot.lane.b32.xlu1 %v6790_v63, %s4348_s30 }
 0x368   : > { %2393 = vrot.lane.b32.xlu0 %v6796_v33, %s4348_s30  ;;  %2391 = vrot.lane.b32.xlu1 %v6803_v52, %s4348_s30 }
 0x36c   : > { %2397 = vrot.lane.b32.xlu0 %v6809_v37, %s4348_s30  ;;  %2395 = vrot.lane.b32.xlu1 %v6816_v35, %s4348_s30 }
 0x370   : > { %2401 = vrot.lane.b32.xlu0 %v6822_v10, %s4348_s30  ;;  %2399 = vrot.lane.b32.xlu1 %v6829_v15, %s4348_s30  ;;  %v6842_v10 = vsel %vm448_vm1, %v2329_v30, %v2331_v9  ;;  %v2341_v30 = vrot.slane %v6568_v39, 2  ;;  %v2348_v9 = vrot.slane %v6612_v50, 2 }
 0x372   : > { %v6874_v39 = vsel %vm448_vm1, %v2348_v9, %v2349_v7  ;;  %v2358_v9 = vrot.slane %v6664_v8, 2 }
 0x373   : > { %8794 = vst [vmem:[#allocation67_spill] sm:$0xff] %v6874_v39 }
 0x374   : > { %2405 = vrot.lane.b32.xlu0 %v6835_v4, %s4348_s30  ;;  %2403 = vrot.lane.b32.xlu1 %v6842_v10, %s4348_s30  ;;  %v6855_v4 = vsel %vm448_vm1, %v2334_v41, %v2336_v57  ;;  %v2346_v41 = vrot.slane %v6592_v54, 2  ;;  %v2353_v57 = vrot.slane %v6630_v46, 2  ;;  %v2351_v54 = vrot.slane %v6606_v14, 2 }
 0x375   : > { %8791 = vst [vmem:[#allocation35_spill] sm:$0xff] %v6855_v4 }
 0x378   : > { %2409 = vrot.lane.b32.xlu0 %v6848_v29, %s4348_s30  ;;  %2407 = vrot.lane.b32.xlu1 %v6855_v4, %s4348_s30  ;;  %v6868_v29 = vsel %vm448_vm1, %v2339_v55, %v2341_v30  ;;  %v6883_v55 = vpop.permute.xlu0 %4229  ;;  %v6889_v30 = vsel %vm448_vm1, %v2353_v57, %v2354_v59  ;;  %v2364_v4 = vrot.slane %v6694_v43, 2 }
 0x379   : > { %8793 = vst [vmem:[#allocation164_spill] sm:$0xff] %v6868_v29  ;;  %8796 = vst [vmem:[#allocation162_spill] sm:$0xff] %v6889_v30 }
 0x37c   : > { %2413 = vrot.lane.b32.xlu0 %v6861_v42, %s4348_s30  ;;  %2411 = vrot.lane.b32.xlu1 %v6868_v29, %s4348_s30  ;;  %v6881_v42 = vsel %vm448_vm1, %v2344_v58, %v2346_v41  ;;  %v2359_v29 = vrot.slane %v6661_v26, 2  ;;  %v6896_v58 = vsel %vm448_vm1, %v2349_v7, %v2351_v54  ;;  %v2356_v41 = vrot.slane %v6637_v5, 2 }
 0x37d   : > { %8795 = vst [vmem:[#allocation102_spill] sm:$0xff] %v6881_v42  ;;  %8797 = vst [vmem:[#allocation182_spill] sm:$0xff] %v6896_v58  ;;  %v2361_v5 = vrot.slane %v6658_v2, 2  ;;  %v2366_v2 = vrot.slane %v6684_v53, 2 }
 0x37e   : > { %v6906_v57 = vsel %vm448_vm1, %v2358_v9, %v2359_v29  ;;  %v6913_v7 = vsel %vm448_vm1, %v2354_v59, %v2356_v41 }
 0x37f   : > { %8798 = vst [vmem:[#allocation99_spill] sm:$0xff] %v6906_v57  ;;  %8799 = vst [vmem:[#allocation133_spill] sm:$0xff] %v6913_v7  ;;  %v6928_v59 = vsel %vm448_vm1, %v2359_v29, %v2361_v5  ;;  %v2371_v29 = vrot.slane %v6713_v56, 2 }
 0x380   : > { %2417 = vrot.lane.b32.xlu0 %v6874_v39, %s4348_s30  ;;  %2415 = vrot.lane.b32.xlu1 %v6881_v42, %s4348_s30  ;;  %v2363_v42 = vrot.slane %v6697_v49, 2  ;;  %8801 = vst [vmem:[#allocation195_spill] sm:$0xff] %v6928_v59 }
 0x382   : > { %v6921_v9 = vsel %vm448_vm1, %v2363_v42, %v2364_v4 }
 0x383   : > { %8800 = vst [vmem:[#allocation181_spill] sm:$0xff] %v6921_v9 }
 0x384   : > { %2421 = vrot.lane.b32.xlu0 %v6889_v30, %s4348_s30  ;;  %2419 = vrot.lane.b32.xlu1 %v6896_v58, %s4348_s30  ;;  %v2368_v30 = vrot.slane %v6725_v6, 2  ;;  %v2369_v58 = vrot.slane %v6722_v17, 2 }
 0x386   : > { %v6901_v39 = vpop.permute.xlu0 %2203  ;;  %v6903_v14 = vpop.permute.xlu1 %2201  ;;  %v6938_v42 = vsel %vm448_vm1, %v2368_v30, %v2369_v58  ;;  %v6955_v53 = vsel %vm448_vm1, %v2369_v58, %v2371_v29 }
 0x387   : > { %8802 = vst [vmem:[#allocation36_spill] sm:$0xff] %v6938_v42  ;;  %8804 = vst [vmem:[#allocation193_spill] sm:$0xff] %v6955_v53 }
 0x388   : > { %2425 = vrot.lane.b32.xlu0 %v6906_v57, %s4348_s30  ;;  %2423 = vrot.lane.b32.xlu1 %v6913_v7, %s4348_s30 }
 0x38a   : > { %v6918_v54 = vpop.permute.xlu0 %2207  ;;  %v6930_v41 = vpop.permute.xlu1 %2205 }
 0x38c   : > { %2429 = vrot.lane.b32.xlu0 %v6921_v9, %s4348_s30  ;;  %2427 = vrot.lane.b32.xlu1 %v6928_v59, %s4348_s30  ;;  %v6943_v9 = vsel %vm448_vm1, %v2364_v4, %v2366_v2 }
 0x38d   : > { %8803 = vst [vmem:[#allocation147_spill] sm:$0xff] %v6943_v9 }
 0x38e   : > { %v6935_v57 = vpop.permute.xlu0 %2211 }
 0x38f   : > { %v6948_v5 = vpop.permute.xlu1 %2209 }
 0x390   : > { %2433 = vrot.lane.b32.xlu0 %v6938_v42, %s4348_s30  ;;  %2431 = vrot.lane.b32.xlu1 %v6943_v9, %s4348_s30 }
 0x392   : > { %v6950_v59 = vpop.permute.xlu0 %2215 }
 0x394   : > { %2470 = vrot.lane.b32.xlu0 %v6414_v47, %s4349_s4  ;;  %2435 = vrot.lane.b32.xlu1 %v6955_v53, %s4348_s30  ;;  %v6959_v4 = vpop.permute.xlu1 %2213 }
 0x396   : > { %v6961_v30 = vpop.permute.xlu0 %2219 }
 0x397   : > { %8805 = vst [vmem:[#allocation72_spill] sm:$0xff] %v6961_v30 }
 0x398   : > { %2474 = vrot.lane.b32.xlu0 %v6430_v22, %s4349_s4  ;;  %2472 = vrot.lane.b32.xlu1 %v6411_v18, %s4349_s4  ;;  %v6967_v56 = vpop.permute.xlu1 %2217 }
 0x399   : > { %8806 = vst [vmem:[#allocation145_spill] sm:$0xff] %v6967_v56 }
 0x39b   : > { %v6973_v58 = vpop.permute.xlu0 %2223 }
 0x39c   : > { %2478 = vrot.lane.b32.xlu0 %v6452_v36, %s4349_s4  ;;  %2476 = vrot.lane.b32.xlu1 %v6427_v61, %s4349_s4  ;;  %8807 = vst [vmem:[#allocation166_spill] sm:$0xff] %v6973_v58  ;;  %v6975_v2 = vpop.permute.xlu1 %2221 }
 0x39d   : > { %8808 = vst [vmem:[#allocation69_spill] sm:$0xff] %v6975_v2 }
 0x39f   : > { %v6981_v29 = vpop.permute.xlu0 %2227 }
 0x3a0   : > { %2482 = vrot.lane.b32.xlu0 %v6476_v24, %s4349_s4  ;;  %2480 = vrot.lane.b32.xlu1 %v6449_v60, %s4349_s4  ;;  %8809 = vst [vmem:[#allocation104_spill] sm:$0xff] %v6981_v29  ;;  %v6983_v53 = vpop.permute.xlu1 %2225 }
 0x3a1   : > { %8810 = vst [vmem:[#allocation163_spill] sm:$0xff] %v6983_v53 }
 0x3a3   : > { %v6989_v42 = vpop.permute.xlu0 %2231 }
 0x3a4   : > { %2486 = vrot.lane.b32.xlu0 %v6486_v11, %s4349_s4  ;;  %2484 = vrot.lane.b32.xlu1 %v6470_v51, %s4349_s4  ;;  %8811 = vst [vmem:[#allocation183_spill] sm:$0xff] %v6989_v42  ;;  %v6991_v9 = vpop.permute.xlu1 %2229 }
 0x3a5   : > { %8812 = vst [vmem:[#allocation101_spill] sm:$0xff] %v6991_v9 }
 0x3a8   : > { %2490 = vrot.lane.b32.xlu0 %v6511_v21, %s4349_s4  ;;  %2488 = vrot.lane.b32.xlu1 %v6483_v0, %s4349_s4  ;;  %v6997_v58 = vpop.permute.xlu1 %2233  ;;  %v6999_v29 = vpop.permute.xlu0 %2235 }
 0x3a9   : > { %8813 = vst [vmem:[#allocation134_spill] sm:$0xff] %v6997_v58  ;;  %8814 = vst [vmem:[#allocation40_spill] sm:$0xff] %v6999_v29 }
 0x3ac   : > { %2494 = vrot.lane.b32.xlu0 %v6532_v45, %s4349_s4  ;;  %2492 = vrot.lane.b32.xlu1 %v6508_v20, %s4349_s4  ;;  %v7007_v42 = vpop.permute.xlu0 %2239 }
 0x3ad   : > { %v7005_v53 = vpop.permute.xlu1 %2237  ;;  %8816 = vst [vmem:[#allocation37_spill] sm:$0xff] %v7007_v42 }
 0x3ae   : > { %8815 = vst [vmem:[#allocation197_spill] sm:$0xff] %v7005_v53 }
 0x3b0   : > { %2498 = vrot.lane.b32.xlu0 %v6549_v44, %s4349_s4  ;;  %2496 = vrot.lane.b32.xlu1 %v6529_v38, %s4349_s4  ;;  %v7015_v58 = vpop.permute.xlu0 %2243 }
 0x3b1   : > { %v7013_v9 = vpop.permute.xlu1 %2241  ;;  %8818 = vst [vmem:[#allocation194_spill] sm:$0xff] %v7015_v58 }
 0x3b2   : > { %8817 = vst [vmem:[#allocation149_spill] sm:$0xff] %v7013_v9 }
 0x3b4   : > { %2502 = vrot.lane.b32.xlu0 %v6574_v3, %s4349_s4  ;;  %2500 = vrot.lane.b32.xlu1 %v6546_v34, %s4349_s4  ;;  %v7021_v29 = vpop.permute.xlu0 %2247 }
 0x3b5   : > { %8819 = vst [vmem:[#allocation74_spill] sm:$0xff] %v7021_v29  ;;  %v7025_v42 = vpop.permute.xlu1 %2245 }
 0x3b6   : > { %8820 = vst [vmem:[#allocation146_spill] sm:$0xff] %v7025_v42 }
 0x3b8   : > { %2506 = vrot.lane.b32.xlu0 %v6602_v19, %s4349_s4  ;;  %2504 = vrot.lane.b32.xlu1 %v6571_v23, %s4349_s4  ;;  %v7033_v58 = vpop.permute.xlu0 %2251 }
 0x3b9   : > { %8821 = vst [vmem:[#allocation168_spill] sm:$0xff] %v7033_v58  ;;  %v7035_v9 = vpop.permute.xlu1 %2249 }
 0x3ba   : > { %8822 = vst [vmem:[#allocation71_spill] sm:$0xff] %v7035_v9 }
 0x3bc   : > { %2510 = vrot.lane.b32.xlu0 %v6612_v50, %s4349_s4  ;;  %2508 = vrot.lane.b32.xlu1 %v6595_v16, %s4349_s4 }
 0x3be   : > { %v7041_v29 = vpop.permute.xlu0 %2255 }
 0x3bf   : > { %8823 = vst [vmem:[#allocation106_spill] sm:$0xff] %v7041_v29  ;;  %v7043_v42 = vpop.permute.xlu1 %2253 }
 0x3c0   : > { %2514 = vrot.lane.b32.xlu0 %v6630_v46, %s4349_s4  ;;  %2512 = vrot.lane.b32.xlu1 %v6609_v62, %s4349_s4  ;;  %8824 = vst [vmem:[#allocation165_spill] sm:$0xff] %v7043_v42 }
 0x3c4   : > { %2518 = vrot.lane.b32.xlu0 %v6664_v8, %s4349_s4  ;;  %2516 = vrot.lane.b32.xlu1 %v6627_v25, %s4349_s4 }
 0x3c6   : > { %v7049_v53 = vpop.permute.xlu0 %2259  ;;  %v7051_v58 = vpop.permute.xlu1 %2257 }
 0x3c7   : > { %8825 = vst [vmem:[#allocation184_spill] sm:$0xff] %v7049_v53  ;;  %8826 = vst [vmem:[#allocation103_spill] sm:$0xff] %v7051_v58  ;;  %v3317_v58 = vld [vmem:[%s8085_s2 + $0x20] sm:$0xf] }
 0x3c8   : > { %2522 = vrot.lane.b32.xlu0 %v6697_v49, %s4349_s4  ;;  %2520 = vrot.lane.b32.xlu1 %v6661_v26, %s4349_s4  ;;  %v8830_v26 = vld [vmem:[#allocation56_spill] sm:$0xff] }
 0x3c9   : > { %4120 = vmatprep.subr.msk.mxu1 %vm1593_vm2, %v3317_v58 }
 0x3ca   : > { %v7057_v9 = vpop.permute.xlu0 %2377  ;;  %v7059_v29 = vpop.permute.xlu1 %4234  ;;  %4121 = vmatpush3.msk.msra.mxu1 %vm1593_vm2, %v3317_v58  ;;  %vm8886_vm2 = vcmask 293888  }
 0x3cb   : > { %vm8887_vm11 = vmmov %vm8886_vm2 }
 0x3cc   : > { %2526 = vrot.lane.b32.xlu0 %v6725_v6, %s4349_s4  ;;  %2524 = vrot.lane.b32.xlu1 %v6694_v43, %s4349_s4  ;;  %vm8892_vm15 = vmmov %vm8886_vm2 }
 0x3cd   : > { %vm8893_vm13 = vmmov %vm8886_vm2 }
 0x3ce   : > { %v7065_v42 = vpop.permute.xlu0 %2381  ;;  %v7067_v53 = vpop.permute.xlu1 %2379  ;;  %vm8898_vm14 = vmmov %vm8886_vm2 }
 0x3d0   : > { %2572 = vrot.lane.b32.xlu0 %v6435_v1, %s4350_s5  ;;  %2528 = vrot.lane.b32.xlu1 %v6722_v17, %s4349_s4  ;;  %v3316_v1 = vld [vmem:[%s8085_s2 + $0x18] sm:$0xff]  ;;  %v3315_v17 = vld [vmem:[%s8085_s2 + $0x10] sm:$0xff] }
 0x3d1   : > { %4122 = vmatprep.subr.mxu1 %v3316_v1 }
 0x3d2   : > { %v7076_v2 = vpop.permute.xlu0 %2385  ;;  %v7079_v6 = vpop.permute.xlu1 %2383  ;;  %4123 = vmatpush3.msra.mxu1 %v3316_v1 }
 0x3d3   : > { %4124 = vmatprep.subr.mxu1 %v3315_v17 }
 0x3d4   : > { %2673 = vrot.lane.b32.xlu0 %v6747_v31, %s4351_s6  ;;  %2574 = vrot.lane.b32.xlu1 %v6424_v40, %s4350_s5  ;;  %v3314_v31 = vld [vmem:[%s8085_s2 + $0x8] sm:$0xff]  ;;  %v3313_v40 = vld [vmem:[%s8085_s2] sm:$0xff] }
 0x3d5   : > { %4125 = vmatpush3.msra.mxu1 %v3315_v17 }
 0x3d6   : > { %v7092_v43 = vpop.permute.xlu0 %2389  ;;  %v7094_v49 = vpop.permute.xlu1 %2387  ;;  %4126 = vmatprep.subr.mxu1 %v3314_v31 }
 0x3d7   : > { %4127 = vmatpush3.msra.mxu1 %v3314_v31 }
 0x3d8   : > { %2769 = vrot.lane.b32.xlu0 %v6430_v22, %s4352_s7  ;;  %2675 = vrot.lane.b32.xlu1 %v6764_v13, %s4351_s6 }
 0x3d9   : > { %4128 = vmatprep.subr.mxu1 %v3313_v40 }
 0x3da   : > { %v7106_v58 = vpop.permute.xlu0 %2393  ;;  %v7108_v1 = vpop.permute.xlu1 %2391  ;;  %4129 = vmatpush3.msra.mxu1 %v3313_v40 }
 0x3db   : > { %8827 = vst [vmem:[#allocation135_spill] sm:$0xff] %v7106_v58  ;;  %v8857_v58 = vld [vmem:[#allocation90_spill] sm:$0xff] }
 0x3dc   : > { %2865 = vrot.lane.b32.xlu0 %v6457_v28, %s4353_s8  ;;  %2771 = vrot.lane.b32.xlu1 %v6427_v61, %s4352_s7 }
 0x3de   : > { %v7114_v17 = vpop.permute.xlu0 %2397  ;;  %v7116_v13 = vpop.permute.xlu1 %2395 }
 0x3df   : > { %8828 = vst [vmem:[#allocation42_spill] sm:$0xff] %v7114_v17  ;;  %8829 = vst [vmem:[#allocation199_spill] sm:$0xff] %v7116_v13 }
 0x3e0   : > { %2867 = vrot.lane.b32.xlu0 %v8830_v26, %s4353_s8  ;;  %2576 = vrot.lane.b32.xlu1 %v6457_v28, %s4350_s5 }
 0x3e2   : > { %v7122_v31 = vpop.permute.xlu0 %2401  ;;  %v7124_v30 = vpop.permute.xlu1 %2399 }
 0x3e3   : > { %8831 = vst [vmem:[#allocation38_spill] sm:$0xff] %v7122_v31  ;;  %8832 = vst [vmem:[#allocation151_spill] sm:$0xff] %v7124_v30  ;;  %v8854_v30 = vld [vmem:[#allocation87_spill] sm:$0xff] }
 0x3e4   : > { %2578 = vrot.lane.b32.xlu0 %v8830_v26, %s4350_s5  ;;  %2961 = vrot.lane.b32.xlu1 %v6757_v32, %s4354_s9 }
 0x3e6   : > { %v7130_v40 = vpop.permute.xlu0 %2405  ;;  %v7132_v17 = vpop.permute.xlu1 %2403 }
 0x3e7   : > { %8833 = vst [vmem:[#allocation196_spill] sm:$0xff] %v7130_v40  ;;  %8834 = vst [vmem:[#allocation76_spill] sm:$0xff] %v7132_v17  ;;  %v8839_v17 = vld [vmem:[#allocation117_spill] sm:$0xff] }
 0x3e8   : > { %2963 = vrot.lane.b32.xlu0 %v6777_v27, %s4354_s9  ;;  %2677 = vrot.lane.b32.xlu1 %v6757_v32, %s4351_s6 }
 0x3ea   : > { %v7138_v28 = vpop.permute.xlu0 %2409  ;;  %v7140_v31 = vpop.permute.xlu1 %2407 }
 0x3eb   : > { %8835 = vst [vmem:[#allocation148_spill] sm:$0xff] %v7138_v28  ;;  %8836 = vst [vmem:[#allocation170_spill] sm:$0xff] %v7140_v31  ;;  %v8842_v31 = vld [vmem:[#allocation88_spill] sm:$0xff] }
 0x3ec   : > { %2773 = vrot.lane.b32.xlu0 %v6452_v36, %s4352_s7  ;;  %2679 = vrot.lane.b32.xlu1 %v6777_v27, %s4351_s6 }
 0x3ee   : > { %v7146_v26 = vpop.permute.xlu0 %2413  ;;  %v7148_v40 = vpop.permute.xlu1 %2411 }
 0x3ef   : > { %8837 = vst [vmem:[#allocation73_spill] sm:$0xff] %v7146_v26  ;;  %8838 = vst [vmem:[#allocation108_spill] sm:$0xff] %v7148_v40 }
 0x3f0   : > { %2869 = vrot.lane.b32.xlu0 %v8839_v17, %s4353_s8  ;;  %2775 = vrot.lane.b32.xlu1 %v6449_v60, %s4352_s7 }
 0x3f2   : > { %v7154_v32 = vpop.permute.xlu0 %2417  ;;  %v7156_v28 = vpop.permute.xlu1 %2415 }
 0x3f3   : > { %8840 = vst [vmem:[#allocation167_spill] sm:$0xff] %v7154_v32  ;;  %8841 = vst [vmem:[#allocation185_spill] sm:$0xff] %v7156_v28 }
 0x3f4   : > { %2871 = vrot.lane.b32.xlu0 %v8842_v31, %s4353_s8  ;;  %2580 = vrot.lane.b32.xlu1 %v8839_v17, %s4350_s5 }
 0x3f6   : > { %v7162_v27 = vpop.permute.xlu0 %2421  ;;  %v7164_v26 = vpop.permute.xlu1 %2419 }
 0x3f7   : > { %8843 = vst [vmem:[#allocation105_spill] sm:$0xff] %v7162_v27  ;;  %8844 = vst [vmem:[#allocation136_spill] sm:$0xff] %v7164_v26 }
 0x3f8   : > { %2582 = vrot.lane.b32.xlu0 %v8842_v31, %s4350_s5  ;;  %2965 = vrot.lane.b32.xlu1 %v6770_v48, %s4354_s9 }
 0x3fa   : > { %v7170_v40 = vpop.permute.xlu0 %2425  ;;  %v7172_v32 = vpop.permute.xlu1 %2423 }
 0x3fb   : > { %8845 = vst [vmem:[#allocation44_spill] sm:$0xff] %v7170_v40  ;;  %8846 = vst [vmem:[#allocation201_spill] sm:$0xff] %v7172_v32  ;;  %v8851_v32 = vld [vmem:[#allocation58_spill] sm:$0xff] }
 0x3fc   : > { %2967 = vrot.lane.b32.xlu0 %v6790_v63, %s4354_s9  ;;  %2681 = vrot.lane.b32.xlu1 %v6770_v48, %s4351_s6 }
 0x3fe   : > { %v7178_v17 = vpop.permute.xlu0 %2429  ;;  %v7180_v27 = vpop.permute.xlu1 %2427 }
 0x3ff   : > { %8847 = vst [vmem:[#allocation39_spill] sm:$0xff] %v7178_v17  ;;  %8848 = vst [vmem:[#allocation153_spill] sm:$0xff] %v7180_v27  ;;  %v8853_v27 = vld [vmem:[#allocation143_spill] sm:$0xff] }
 0x400   : > { %2777 = vrot.lane.b32.xlu0 %v6476_v24, %s4352_s7  ;;  %2683 = vrot.lane.b32.xlu1 %v6790_v63, %s4351_s6 }
 0x402   : > { %v7186_v31 = vpop.permute.xlu0 %2433  ;;  %v7188_v40 = vpop.permute.xlu1 %2431 }
 0x403   : > { %8849 = vst [vmem:[#allocation198_spill] sm:$0xff] %v7186_v31  ;;  %8850 = vst [vmem:[#allocation150_spill] sm:$0xff] %v7188_v40 }
 0x404   : > { %2873 = vrot.lane.b32.xlu0 %v8851_v32, %s4353_s8  ;;  %2779 = vrot.lane.b32.xlu1 %v6470_v51, %s4352_s7 }
 0x406   : > { %v7194_v48 = vpop.permute.xlu0 %2470  ;;  %v7196_v17 = vpop.permute.xlu1 %2435 }
 0x407   : > { %8852 = vst [vmem:[#allocation172_spill] sm:$0xff] %v7196_v17 }
 0x408   : > { %2875 = vrot.lane.b32.xlu0 %v8853_v27, %s4353_s8  ;;  %2584 = vrot.lane.b32.xlu1 %v8851_v32, %s4350_s5 }
 0x40a   : > { %v7202_v63 = vpop.permute.xlu0 %2474  ;;  %v7204_v31 = vpop.permute.xlu1 %2472 }
 0x40c   : > { %2586 = vrot.lane.b32.xlu0 %v8853_v27, %s4350_s5  ;;  %2969 = vrot.lane.b32.xlu1 %v6783_v12, %s4354_s9 }
 0x40e   : > { %v7210_v40 = vpop.permute.xlu0 %2478  ;;  %v7212_v26 = vpop.permute.xlu1 %2476 }
 0x410   : > { %2971 = vrot.lane.b32.xlu0 %v6803_v52, %s4354_s9  ;;  %2685 = vrot.lane.b32.xlu1 %v6783_v12, %s4351_s6 }
 0x412   : > { %v7218_v32 = vpop.permute.xlu0 %2482  ;;  %v7220_v17 = vpop.permute.xlu1 %2480 }
 0x414   : > { %2781 = vrot.lane.b32.xlu0 %v6486_v11, %s4352_s7  ;;  %2687 = vrot.lane.b32.xlu1 %v6803_v52, %s4351_s6 }
 0x416   : > { %v7226_v27 = vpop.permute.xlu0 %2486  ;;  %v7228_v28 = vpop.permute.xlu1 %2484 }
 0x418   : > { %2877 = vrot.lane.b32.xlu0 %v8854_v30, %s4353_s8  ;;  %2783 = vrot.lane.b32.xlu1 %v6483_v0, %s4352_s7 }
 0x41a   : > { %v7234_v12 = vpop.permute.xlu0 %2490  ;;  %v7236_v13 = vpop.permute.xlu1 %2488 }
 0x41b   : > { %8855 = vst [vmem:[#allocation75_spill] sm:$0xff] %v7234_v12  ;;  %8856 = vst [vmem:[#allocation169_spill] sm:$0xff] %v7236_v13  ;;  %v8883_v13 = vld [vmem:[#allocation118_spill] sm:$0xff] }
 0x41c   : > { %2879 = vrot.lane.b32.xlu0 %v8857_v58, %s4353_s8  ;;  %2588 = vrot.lane.b32.xlu1 %v8854_v30, %s4350_s5 }
 0x41e   : > { %v7242_v52 = vpop.permute.xlu0 %2494  ;;  %v7244_v11 = vpop.permute.xlu1 %2492 }
 0x41f   : > { %8858 = vst [vmem:[#allocation186_spill] sm:$0xff] %v7242_v52  ;;  %8859 = vst [vmem:[#allocation107_spill] sm:$0xff] %v7244_v11 }
 0x420   : > { %2590 = vrot.lane.b32.xlu0 %v8857_v58, %s4350_s5  ;;  %2973 = vrot.lane.b32.xlu1 %v6796_v33, %s4354_s9 }
 0x422   : > { %v7250_v0 = vpop.permute.xlu0 %2498  ;;  %v7252_v12 = vpop.permute.xlu1 %2496 }
 0x423   : > { %8860 = vst [vmem:[#allocation46_spill] sm:$0xff] %v7250_v0  ;;  %8861 = vst [vmem:[#allocation86_spill] sm:$0xff] %v7252_v12  ;;  %v8866_v12 = vld [vmem:[#allocation57_spill] sm:$0xff] }
 0x424   : > { %2975 = vrot.lane.b32.xlu0 %v6816_v35, %s4354_s9  ;;  %2689 = vrot.lane.b32.xlu1 %v6796_v33, %s4351_s6 }
 0x426   : > { %v7258_v30 = vpop.permute.xlu0 %2502  ;;  %v7260_v52 = vpop.permute.xlu1 %2500 }
 0x427   : > { %8862 = vst [vmem:[#allocation41_spill] sm:$0xff] %v7258_v30  ;;  %8863 = vst [vmem:[#allocation200_spill] sm:$0xff] %v7260_v52  ;;  %v8869_v52 = vld [vmem:[#allocation60_spill] sm:$0xff] }
 0x428   : > { %2785 = vrot.lane.b32.xlu0 %v6511_v21, %s4352_s7  ;;  %2691 = vrot.lane.b32.xlu1 %v6816_v35, %s4351_s6  ;;  %v8882_v21 = vld [vmem:[#allocation141_spill] sm:$0xff] }
 0x42a   : > { %v7266_v58 = vpop.permute.xlu0 %2506  ;;  %v7268_v0 = vpop.permute.xlu1 %2504 }
 0x42b   : > { %8864 = vst [vmem:[#allocation77_spill] sm:$0xff] %v7266_v58  ;;  %8865 = vst [vmem:[#allocation152_spill] sm:$0xff] %v7268_v0 }
 0x42c   : > { %2881 = vrot.lane.b32.xlu0 %v8866_v12, %s4353_s8  ;;  %2787 = vrot.lane.b32.xlu1 %v6508_v20, %s4352_s7  ;;  %v4232_v20 = vunpack.i.h.bf16 %v6883_v55 }
 0x42e   : > { %v7274_v33 = vpop.permute.xlu0 %2510  ;;  %v7276_v30 = vpop.permute.xlu1 %2508 }
 0x42f   : > { %8867 = vst [vmem:[#allocation78_spill] sm:$0xff] %v7274_v33  ;;  %8868 = vst [vmem:[#allocation109_spill] sm:$0xff] %v7276_v30 }
 0x430   : > { %2883 = vrot.lane.b32.xlu0 %v8869_v52, %s4353_s8  ;;  %2592 = vrot.lane.b32.xlu1 %v8866_v12, %s4350_s5 }
 0x432   : > { %v7282_v35 = vpop.permute.xlu0 %2514  ;;  %v7284_v58 = vpop.permute.xlu1 %2512 }
 0x433   : > { %8870 = vst [vmem:[#allocation171_spill] sm:$0xff] %v7282_v35  ;;  %8871 = vst [vmem:[#allocation110_spill] sm:$0xff] %v7284_v58 }
 0x434   : > { %2594 = vrot.lane.b32.xlu0 %v8869_v52, %s4350_s5  ;;  %2977 = vrot.lane.b32.xlu1 %v6809_v37, %s4354_s9 }
 0x436   : > { %v7290_v0 = vpop.permute.xlu0 %2518  ;;  %v7292_v33 = vpop.permute.xlu1 %2516 }
 0x437   : > { %8872 = vst [vmem:[#allocation43_spill] sm:$0xff] %v7290_v0  ;;  %8873 = vst [vmem:[#allocation48_spill] sm:$0xff] %v7292_v33  ;;  %v8878_v33 = vld [vmem:[#allocation89_spill] sm:$0xff] }
 0x438   : > { %2979 = vrot.lane.b32.xlu0 %v6829_v15, %s4354_s9  ;;  %2693 = vrot.lane.b32.xlu1 %v6809_v37, %s4351_s6 }
 0x43a   : > { %v7298_v12 = vpop.permute.xlu0 %2522  ;;  %v7300_v35 = vpop.permute.xlu1 %2520 }
 0x43b   : > { %8874 = vst [vmem:[#allocation137_spill] sm:$0xff] %v7298_v12  ;;  %8875 = vst [vmem:[#allocation154_spill] sm:$0xff] %v7300_v35  ;;  %v8880_v35 = vld [vmem:[#allocation92_spill] sm:$0xff] }
 0x43c   : > { %2789 = vrot.lane.b32.xlu0 %v6532_v45, %s4352_s7  ;;  %2695 = vrot.lane.b32.xlu1 %v6829_v15, %s4351_s6 }
 0x43e   : > { %v7306_v52 = vpop.permute.xlu0 %2526  ;;  %v7308_v0 = vpop.permute.xlu1 %2524 }
 0x43f   : > { %8876 = vst [vmem:[#allocation53_spill] sm:$0xff] %v7306_v52  ;;  %8877 = vst [vmem:[#allocation155_spill] sm:$0xff] %v7308_v0  ;;  %v8881_v52 = vld [vmem:[#allocation100_spill] sm:$0xff] }
 0x440   : > { %2885 = vrot.lane.b32.xlu0 %v8878_v33, %s4353_s8  ;;  %2791 = vrot.lane.b32.xlu1 %v6529_v38, %s4352_s7 }
 0x442   : > { %v2573_v37 = vpop.permute.xlu0 %2572  ;;  %v7314_v12 = vpop.permute.xlu1 %2528 }
 0x443   : > { %8879 = vst [vmem:[#allocation173_spill] sm:$0xff] %v7314_v12  ;;  %v4231_v12 = vunpack.i.l.bf16 %v6883_v55  ;;  %v3058_v55 = vsel %vm1227_vm3, %v8883_v13, %v4232_v20 }
 0x444   : > { %2887 = vrot.lane.b32.xlu0 %v8880_v35, %s4353_s8  ;;  %2596 = vrot.lane.b32.xlu1 %v8878_v33, %s4350_s5  ;;  %v4236_v33 = vunpack.i.l.bf16 %v7059_v29 }
 0x445   : > { %v3057_v11 = vsel %vm1227_vm3, %v8882_v21, %v4231_v12 }
 0x446   : > { %v2674_v15 = vpop.permute.xlu0 %2673  ;;  %v2575_v58 = vpop.permute.xlu1 %2574  ;;  %v3089_v56 = vsel %vm1260_vm4, %v3057_v11, %v4236_v33  ;;  %v8885_v33 = vld [vmem:[#allocation126_spill] sm:$0xff] }
 0x447   : > { %v3121_v8 = vsel %vm1293_vm5, %v3089_v56, %v7194_v48 }
 0x448   : > { %2598 = vrot.lane.b32.xlu0 %v8880_v35, %s4350_s5  ;;  %2981 = vrot.lane.b32.xlu1 %v8881_v52, %s4354_s9  ;;  %v4237_v35 = vunpack.i.h.bf16 %v7059_v29  ;;  %v8884_v29 = vld [vmem:[#allocation122_spill] sm:$0xff] }
 0x44a   : > { %v2770_v0 = vpop.permute.xlu0 %2769  ;;  %v2676_v30 = vpop.permute.xlu1 %2675  ;;  %v3090_v12 = vsel %vm1260_vm4, %v3058_v55, %v4237_v35  ;;  %v8889_v35 = vld [vmem:[#allocation35_spill] sm:$0xff] }
 0x44b   : > { %v3122_v11 = vsel %vm1293_vm5, %v3090_v12, %v7204_v31 }
 0x44c   : > { %2983 = vrot.lane.b32.xlu0 %v6842_v10, %s4354_s9  ;;  %2697 = vrot.lane.b32.xlu1 %v8881_v52, %s4351_s6  ;;  %v3154_v20 = vsel %vm1326_vm6, %v3122_v11, %v2575_v58 }
 0x44e   : > { %v2866_v38 = vpop.permute.xlu0 %2865  ;;  %v2772_v45 = vpop.permute.xlu1 %2771 }
 0x450   : > { %2793 = vrot.lane.b32.xlu0 %v6549_v44, %s4352_s7  ;;  %2699 = vrot.lane.b32.xlu1 %v6842_v10, %s4351_s6  ;;  %v3153_v44 = vsel %vm1326_vm6, %v3121_v8, %v2573_v37  ;;  %v3186_v37 = vsel %vm1359_vm7, %v3154_v20, %v2676_v30  ;;  %v8888_v30 = vld [vmem:[#allocation97_spill] sm:$0xff] }
 0x451   : > { %v3185_v21 = vsel %vm1359_vm7, %v3153_v44, %v2674_v15  ;;  %v3218_v15 = vsel %vm1392_vm8, %v3186_v37, %v2772_v45  ;;  %v8890_v37 = vld [vmem:[#allocation59_spill] sm:$0xff] }
 0x452   : > { %v2868_v52 = vpop.permute.xlu0 %2867  ;;  %v2577_v7 = vpop.permute.xlu1 %2576  ;;  %v3217_v10 = vsel %vm1392_vm8, %v3185_v21, %v2770_v0 }
 0x453   : > { %v3249_v8 = vsel %vm1425_vm9, %v3217_v10, %v2866_v38  ;;  %v3250_v0 = vsel %vm1425_vm9, %v3218_v15, %v2868_v52  ;;  %v8891_v15 = vld [vmem:[#allocation62_spill] sm:$0xff] }
 0x454   : > { %2889 = vrot.lane.b32.xlu0 %v8884_v29, %s4353_s8  ;;  %2795 = vrot.lane.b32.xlu1 %v6546_v34, %s4352_s7 }
 0x456   : > { %v2579_v56 = vpop.permute.xlu0 %2578  ;;  %v2962_v48 = vpop.permute.xlu1 %2961 }
 0x457   : > { %v3281_v44 = vsel %vm1458_vm10, %v3249_v8, %v2962_v48  ;;  %v3060_v8 = vsel %vm1227_vm3, %v6411_v18, %v6901_v39 }
 0x458   : > { %2891 = vrot.lane.b32.xlu0 %v8885_v33, %s4353_s8  ;;  %2600 = vrot.lane.b32.xlu1 %v8884_v29, %s4350_s5  ;;  %v3059_v29 = vsel %vm1227_vm3, %v6414_v47, %v6903_v14  ;;  %v3092_v47 = vsel %vm1260_vm4, %v3060_v8, %v7067_v53  ;;  %v3062_v8 = vsel %vm1227_vm3, %v6427_v61, %v6918_v54 }
 0x459   : > { %4130 = vmatprep.mubr.msk.f32.mxu1 %vm8886_vm2, %v3281_v44  ;;  %v3091_v12 = vsel %vm1260_vm4, %v3059_v29, %v7057_v9  ;;  %v3124_v9 = vsel %vm1293_vm5, %v3092_v47, %v7212_v26 }
 0x45a   : > { %v2964_v21 = vpop.permute.xlu0 %2963  ;;  %v2678_v31 = vpop.permute.xlu1 %2677  ;;  %v3123_v10 = vsel %vm1293_vm5, %v3091_v12, %v7202_v63  ;;  %v3156_v18 = vsel %vm1326_vm6, %v3124_v9, %v2579_v56  ;;  %v8897_v9 = vld [vmem:[#allocation94_spill] sm:$0xff] }
 0x45b   : > { %v3282_v38 = vsel %vm1458_vm10, %v3250_v0, %v2964_v21  ;;  %v3155_v48 = vsel %vm1326_vm6, %v3123_v10, %v2577_v7 }
 0x45c   : > { %2602 = vrot.lane.b32.xlu0 %v8885_v33, %s4350_s5  ;;  %4131 = vmatmul.mubr.msk.f32.vlgmr.msra.gmra.mxu1 %vm8887_vm11, %v3282_v38  ;;  %v3187_v14 = vsel %vm1359_vm7, %v3155_v48, %v2678_v31  ;;  %v8894_v38 = vld [vmem:[#allocation132_spill] sm:$0xff]  ;;  %vm8903_vm11 = vmmov %vm8886_vm2 }
 0x45d   : > { %2985 = vrot.lane.b32.xlu1 %v8888_v30, %s4354_s9 }
 0x45e   : > { %v2774_v45 = vpop.permute.xlu0 %2773  ;;  %v2680_v58 = vpop.permute.xlu1 %2679 }
 0x45f   : > { %v3219_v63 = vsel %vm1392_vm8, %v3187_v14, %v2774_v45  ;;  %v3188_v44 = vsel %vm1359_vm7, %v3156_v18, %v2680_v58  ;;  %v8895_v58 = vld [vmem:[#allocation164_spill] sm:$0xff] }
 0x460   : > { %2987 = vrot.lane.b32.xlu0 %v8889_v35, %s4354_s9 }
 0x461   : > { %2701 = vrot.lane.b32.xlu1 %v8888_v30, %s4351_s6 }
 0x462   : > { %v2870_v52 = vpop.permute.xlu0 %2869  ;;  %v2776_v55 = vpop.permute.xlu1 %2775 }
 0x463   : > { %v3251_v39 = vsel %vm1425_vm9, %v3219_v63, %v2870_v52  ;;  %v3220_v0 = vsel %vm1392_vm8, %v3188_v44, %v2776_v55  ;;  %v3061_v55 = vsel %vm1227_vm3, %v6430_v22, %v6930_v41  ;;  %v3094_v22 = vsel %vm1260_vm4, %v3062_v8, %v7079_v6 }
 0x464   : > { %2797 = vrot.lane.b32.xlu0 %v6574_v3, %s4352_s7  ;;  %v3093_v29 = vsel %vm1260_vm4, %v3061_v55, %v7065_v42  ;;  %v3126_v42 = vsel %vm1293_vm5, %v3094_v22, %v7220_v17 }
 0x465   : > { %2703 = vrot.lane.b32.xlu1 %v8889_v35, %s4351_s6 }
 0x466   : > { %v2872_v11 = vpop.permute.xlu0 %2871  ;;  %v2581_v20 = vpop.permute.xlu1 %2580 }
 0x467   : > { %v3252_v26 = vsel %vm1425_vm9, %v3220_v0, %v2872_v11  ;;  %v3125_v11 = vsel %vm1293_vm5, %v3093_v29, %v7210_v40 }
 0x468   : > { %2893 = vrot.lane.b32.xlu0 %v8890_v37, %s4353_s8  ;;  %v3157_v48 = vsel %vm1326_vm6, %v3125_v11, %v2581_v20 }
 0x469   : > { %2799 = vrot.lane.b32.xlu1 %v6571_v23, %s4352_s7 }
 0x46a   : > { %v2583_v33 = vpop.permute.xlu0 %2582  ;;  %v2966_v7 = vpop.permute.xlu1 %2965 }
 0x46b   : > { %v3283_v53 = vsel %vm1458_vm10, %v3251_v39, %v2966_v7  ;;  %v3158_v61 = vsel %vm1326_vm6, %v3126_v42, %v2583_v33  ;;  %v8899_v7 = vld [vmem:[#allocation70_spill] sm:$0xff] }
 0x46c   : > { %2895 = vrot.lane.b32.xlu0 %v8891_v15, %s4353_s8  ;;  %4133 = vmatprep.mubr.msk.f32.mxu1 %vm8892_vm15, %v3283_v53  ;;  %vm8904_vm15 = vmmov %vm8886_vm2  ;;  %v8906_v42 = vld [vmem:[#allocation182_spill] sm:$0xff] }
 0x46d   : > { %2604 = vrot.lane.b32.xlu1 %v8890_v37, %s4350_s5  ;;  %v8896_v37 = vld [vmem:[#allocation91_spill] sm:$0xff] }
 0x46e   : > { %v2968_v56 = vpop.permute.xlu0 %2967  ;;  %v2682_v21 = vpop.permute.xlu1 %2681 }
 0x46f   : > { %v3284_v31 = vsel %vm1458_vm10, %v3252_v26, %v2968_v56  ;;  %v3189_v41 = vsel %vm1359_vm7, %v3157_v48, %v2682_v21  ;;  %v3063_v56 = vsel %vm1227_vm3, %v6452_v36, %v6948_v5 }
 0x470   : > { %2606 = vrot.lane.b32.xlu0 %v8891_v15, %s4350_s5  ;;  %4134 = vmatmul.mubr.msk.f32.gmra.mxu1 %vm8893_vm13, %v3284_v31  ;;  %v8900_v15 = vld [vmem:[#allocation102_spill] sm:$0xff]  ;;  %v3095_v21 = vsel %vm1260_vm4, %v3063_v56, %v7076_v2  ;;  %vm8910_vm13 = vmmov %vm8886_vm2 }
 0x471   : > { %2989 = vrot.lane.b32.xlu1 %v8894_v38, %s4354_s9 }
 0x472   : > { %v2778_v30 = vpop.permute.xlu0 %2777  ;;  %v2684_v45 = vpop.permute.xlu1 %2683 }
 0x473   : > { %v3221_v40 = vsel %vm1392_vm8, %v3189_v41, %v2778_v30  ;;  %v3190_v14 = vsel %vm1359_vm7, %v3158_v61, %v2684_v45  ;;  %v3064_v45 = vsel %vm1227_vm3, %v6449_v60, %v6935_v57  ;;  %v3065_v61 = vsel %vm1227_vm3, %v6476_v24, %v6959_v4 }
 0x474   : > { %2991 = vrot.lane.b32.xlu0 %v8895_v58, %s4354_s9  ;;  %v3096_v36 = vsel %vm1260_vm4, %v3064_v45, %v7094_v49 }
 0x475   : > { %2705 = vrot.lane.b32.xlu1 %v8894_v38, %s4351_s6  ;;  %v3127_v38 = vsel %vm1293_vm5, %v3095_v21, %v7218_v32  ;;  %v3128_v2 = vsel %vm1293_vm5, %v3096_v36, %v7228_v28  ;;  %v8912_v21 = vld [vmem:[#allocation162_spill] sm:$0xff]  ;;  %v8915_v36 = vld [vmem:[#allocation145_spill] sm:$0xff] }
 0x476   : > { %v2874_v35 = vpop.permute.xlu0 %2873  ;;  %v2780_v52 = vpop.permute.xlu1 %2779 }
 0x477   : > { %v3253_v54 = vsel %vm1425_vm9, %v3221_v40, %v2874_v35  ;;  %v3222_v63 = vsel %vm1392_vm8, %v3190_v14, %v2780_v52  ;;  %v8901_v35 = vld [vmem:[#allocation125_spill] sm:$0xff] }
 0x478   : > { %2801 = vrot.lane.b32.xlu0 %v6602_v19, %s4352_s7 }
 0x479   : > { %2707 = vrot.lane.b32.xlu1 %v8895_v58, %s4351_s6 }
 0x47a   : > { %v2876_v12 = vpop.permute.xlu0 %2875  ;;  %v2585_v10 = vpop.permute.xlu1 %2584 }
 0x47b   : > { %v3254_v17 = vsel %vm1425_vm9, %v3222_v63, %v2876_v12  ;;  %v3159_v58 = vsel %vm1326_vm6, %v3127_v38, %v2585_v10  ;;  %v8902_v12 = vld [vmem:[#allocation128_spill] sm:$0xff] }
 0x47c   : > { %2897 = vrot.lane.b32.xlu0 %v8896_v37, %s4353_s8 }
 0x47d   : > { %2803 = vrot.lane.b32.xlu1 %v6595_v16, %s4352_s7 }
 0x47e   : > { %v2587_v47 = vpop.permute.xlu0 %2586  ;;  %v2970_v20 = vpop.permute.xlu1 %2969 }
 0x47f   : > { %v3285_v6 = vsel %vm1458_vm10, %v3253_v54, %v2970_v20  ;;  %v3160_v60 = vsel %vm1326_vm6, %v3128_v2, %v2587_v47  ;;  %v3097_v54 = vsel %vm1260_vm4, %v3065_v61, %v7092_v43  ;;  %v8908_v43 = vld [vmem:[#allocation169_spill] sm:$0xff] }
 0x480   : > { %2899 = vrot.lane.b32.xlu0 %v8897_v9, %s4353_s8  ;;  %4136 = vmatprep.mubr.msk.f32.mxu1 %vm8898_vm14, %v3285_v6  ;;  %v3129_v14 = vsel %vm1293_vm5, %v3097_v54, %v7226_v27  ;;  %vm8911_vm14 = vmmov %vm8886_vm2 }
 0x481   : > { %2608 = vrot.lane.b32.xlu1 %v8896_v37, %s4350_s5  ;;  %v8905_v37 = vld [vmem:[#allocation67_spill] sm:$0xff] }
 0x482   : > { %v2972_v33 = vpop.permute.xlu0 %2971  ;;  %v2686_v18 = vpop.permute.xlu1 %2685 }
 0x483   : > { %v3286_v39 = vsel %vm1458_vm10, %v3254_v17, %v2972_v33  ;;  %v3191_v5 = vsel %vm1359_vm7, %v3159_v58, %v2686_v18  ;;  %v8907_v17 = vld [vmem:[#allocation96_spill] sm:$0xff] }
 0x484   : > { %2610 = vrot.lane.b32.xlu0 %v8897_v9, %s4350_s5  ;;  %4137 = vmatmul.mubr.msk.f32.gmra.mxu1 %vm8886_vm2, %v3286_v39  ;;  %v3066_v9 = vsel %vm1227_vm3, %v6470_v51, %v6950_v59 }
 0x485   : > { %2993 = vrot.lane.b32.xlu1 %v8899_v7, %s4354_s9  ;;  %v3098_v24 = vsel %vm1260_vm4, %v3066_v9, %v7108_v1  ;;  %v8925_v9 = vld [vmem:[#allocation93_spill] sm:$0xff] }
 0x486   : > { %v2782_v44 = vpop.permute.xlu0 %2781  ;;  %v2688_v53 = vpop.permute.xlu1 %2687  ;;  %v3130_v27 = vsel %vm1293_vm5, %v3098_v24, %v8908_v43 }
 0x487   : > { %v3223_v32 = vsel %vm1392_vm8, %v3191_v5, %v2782_v44  ;;  %v3192_v29 = vsel %vm1359_vm7, %v3160_v60, %v2688_v53  ;;  %v8909_v44 = vld [vmem:[#allocation61_spill] sm:$0xff]  ;;  %v8916_v5 = vld [vmem:[#allocation120_spill] sm:$0xff] }
 0x488   : > { %2995 = vrot.lane.b32.xlu0 %v8900_v15, %s4354_s9  ;;  %v3067_v2 = vsel %vm1227_vm3, %v8916_v5, %v8915_v36  ;;  %v8936_v36 = vld [vmem:[#allocation98_spill] sm:$0xff]  ;;  %v8937_v5 = vld [vmem:[#allocation151_spill] sm:$0xff] }
 0x489   : > { %2709 = vrot.lane.b32.xlu1 %v8899_v7, %s4351_s6 }
 0x48a   : > { %v2878_v0 = vpop.permute.xlu0 %2877  ;;  %v2784_v26 = vpop.permute.xlu1 %2783 }
 0x48b   : > { %v3255_v57 = vsel %vm1425_vm9, %v3223_v32, %v2878_v0  ;;  %v3224_v11 = vsel %vm1392_vm8, %v3192_v29, %v2784_v26  ;;  %v8917_v32 = vld [vmem:[#allocation135_spill] sm:$0xff] }
 0x48c   : > { %2805 = vrot.lane.b32.xlu0 %v6612_v50, %s4352_s7 }
 0x48d   : > { %2711 = vrot.lane.b32.xlu1 %v8900_v15, %s4351_s6 }
 0x48e   : > { %v2880_v31 = vpop.permute.xlu0 %2879  ;;  %v2589_v30 = vpop.permute.xlu1 %2588 }
 0x48f   : > { %v3256_v28 = vsel %vm1425_vm9, %v3224_v11, %v2880_v31  ;;  %v3161_v63 = vsel %vm1326_vm6, %v3129_v14, %v2589_v30  ;;  %v8913_v30 = vld [vmem:[#allocation133_spill] sm:$0xff] }
 0x490   : > { %2901 = vrot.lane.b32.xlu0 %v8901_v35, %s4353_s8 }
 0x491   : > { %2807 = vrot.lane.b32.xlu1 %v6609_v62, %s4352_s7 }
 0x492   : > { %v2591_v52 = vpop.permute.xlu0 %2590  ;;  %v2974_v55 = vpop.permute.xlu1 %2973 }
 0x493   : > { %v3287_v49 = vsel %vm1458_vm10, %v3255_v57, %v2974_v55  ;;  %v3162_v51 = vsel %vm1326_vm6, %v3130_v27, %v2591_v52  ;;  %v3099_v52 = vsel %vm1260_vm4, %v3067_v2, %v8917_v32  ;;  %v8918_v57 = vld [vmem:[#allocation75_spill] sm:$0xff] }
 0x494   : > { %2903 = vrot.lane.b32.xlu0 %v8902_v12, %s4353_s8  ;;  %4139 = vmatprep.mubr.msk.f32.mxu1 %vm8903_vm11, %v3287_v49  ;;  %v3131_v55 = vsel %vm1293_vm5, %v3099_v52, %v8918_v57  ;;  %v8919_v49 = vld [vmem:[#allocation72_spill] sm:$0xff]  ;;  %vm8926_vm11 = vmmov %vm8886_vm2  ;;  %v8927_v27 = vld [vmem:[#allocation99_spill] sm:$0xff] }
 0x495   : > { %2612 = vrot.lane.b32.xlu1 %v8901_v35, %s4350_s5  ;;  %v8914_v35 = vld [vmem:[#allocation144_spill] sm:$0xff]  ;;  %v8938_v52 = vld [vmem:[#allocation127_spill] sm:$0xff] }
 0x496   : > { %v2976_v10 = vpop.permute.xlu0 %2975  ;;  %v2690_v8 = vpop.permute.xlu1 %2689 }
 0x497   : > { %v3288_v48 = vsel %vm1458_vm10, %v3256_v28, %v2976_v10  ;;  %v3193_v4 = vsel %vm1359_vm7, %v3161_v63, %v2690_v8  ;;  %v8921_v10 = vld [vmem:[#allocation130_spill] sm:$0xff]  ;;  %v8922_v8 = vld [vmem:[#allocation199_spill] sm:$0xff] }
 0x498   : > { %2614 = vrot.lane.b32.xlu0 %v8902_v12, %s4350_s5  ;;  %4140 = vmatmul.mubr.msk.f32.gmra.mxu1 %vm8904_vm15, %v3288_v48  ;;  %v8920_v12 = vld [vmem:[#allocation85_spill] sm:$0xff]  ;;  %vm8941_vm15 = vmmov %vm8886_vm2 }
 0x499   : > { %2997 = vrot.lane.b32.xlu1 %v8905_v37, %s4354_s9  ;;  %v3068_v11 = vsel %vm1227_vm3, %v8920_v12, %v8919_v49 }
 0x49a   : > { %v2786_v22 = vpop.permute.xlu0 %2785  ;;  %v2692_v41 = vpop.permute.xlu1 %2691  ;;  %v3100_v48 = vsel %vm1260_vm4, %v3068_v11, %v8922_v8  ;;  %v8940_v8 = vld [vmem:[#allocation63_spill] sm:$0xff] }
 0x49b   : > { %v3225_v33 = vsel %vm1392_vm8, %v3193_v4, %v2786_v22  ;;  %v3194_v7 = vsel %vm1359_vm7, %v3162_v51, %v2692_v41  ;;  %v8923_v22 = vld [vmem:[#allocation64_spill] sm:$0xff]  ;;  %v8924_v41 = vld [vmem:[#allocation107_spill] sm:$0xff] }
 0x49c   : > { %2999 = vrot.lane.b32.xlu0 %v8906_v42, %s4354_s9  ;;  %v8928_v51 = vld [vmem:[#allocation195_spill] sm:$0xff] }
 0x49d   : > { %2713 = vrot.lane.b32.xlu1 %v8905_v37, %s4351_s6 }
 0x49e   : > { %v2882_v40 = vpop.permute.xlu0 %2881  ;;  %v2788_v47 = vpop.permute.xlu1 %2787 }
 0x49f   : > { %v3257_v59 = vsel %vm1425_vm9, %v3225_v33, %v2882_v40  ;;  %v3226_v53 = vsel %vm1392_vm8, %v3194_v7, %v2788_v47  ;;  %v8929_v7 = vld [vmem:[#allocation66_spill] sm:$0xff] }
 0x4a0   : > { %2809 = vrot.lane.b32.xlu0 %v6630_v46, %s4352_s7 }
 0x4a1   : > { %2715 = vrot.lane.b32.xlu1 %v8906_v42, %s4351_s6  ;;  %v3132_v42 = vsel %vm1293_vm5, %v3100_v48, %v8924_v41 }
 0x4a2   : > { %v2884_v20 = vpop.permute.xlu0 %2883  ;;  %v2593_v6 = vpop.permute.xlu1 %2592 }
 0x4a3   : > { %v3258_v15 = vsel %vm1425_vm9, %v3226_v53, %v2884_v20  ;;  %v3163_v28 = vsel %vm1326_vm6, %v3131_v55, %v2593_v6 }
 0x4a4   : > { %2905 = vrot.lane.b32.xlu0 %v8907_v17, %s4353_s8 }
 0x4a5   : > { %2811 = vrot.lane.b32.xlu1 %v6627_v25, %s4352_s7 }
 0x4a6   : > { %v2595_v18 = vpop.permute.xlu0 %2594  ;;  %v2978_v39 = vpop.permute.xlu1 %2977 }
 0x4a7   : > { %v3289_v1 = vsel %vm1458_vm10, %v3257_v59, %v2978_v39  ;;  %v3164_v61 = vsel %vm1326_vm6, %v3132_v42, %v2595_v18 }
 0x4a8   : > { %2907 = vrot.lane.b32.xlu0 %v8909_v44, %s4353_s8  ;;  %4142 = vmatprep.mubr.msk.f32.mxu1 %vm8910_vm13, %v3289_v1  ;;  %v8930_v1 = vld [vmem:[#allocation69_spill] sm:$0xff]  ;;  %vm8942_vm13 = vmmov %vm8886_vm2 }
 0x4a9   : > { %2616 = vrot.lane.b32.xlu1 %v8907_v17, %s4350_s5 }
 0x4aa   : > { %v2980_v0 = vpop.permute.xlu0 %2979  ;;  %v2694_v26 = vpop.permute.xlu1 %2693 }
 0x4ab   : > { %v3290_v56 = vsel %vm1458_vm10, %v3258_v15, %v2980_v0  ;;  %v3195_v37 = vsel %vm1359_vm7, %v3163_v28, %v2694_v26  ;;  %v8932_v15 = vld [vmem:[#allocation42_spill] sm:$0xff] }
 0x4ac   : > { %2618 = vrot.lane.b32.xlu0 %v8909_v44, %s4350_s5  ;;  %4143 = vmatmul.mubr.msk.f32.gmra.mxu1 %vm8911_vm14, %v3290_v56  ;;  %v8931_v44 = vld [vmem:[#allocation54_spill] sm:$0xff] }
 0x4ad   : > { %3001 = vrot.lane.b32.xlu1 %v8912_v21, %s4354_s9  ;;  %v3069_v53 = vsel %vm1227_vm3, %v8931_v44, %v8930_v1  ;;  %v8933_v56 = vld [vmem:[#allocation186_spill] sm:$0xff]  ;;  %v8951_v1 = vld [vmem:[#allocation124_spill] sm:$0xff] }
 0x4ae   : > { %v2790_v31 = vpop.permute.xlu0 %2789  ;;  %v2696_v38 = vpop.permute.xlu1 %2695  ;;  %v3101_v0 = vsel %vm1260_vm4, %v3069_v53, %v8932_v15  ;;  %v8952_v15 = vld [vmem:[#allocation68_spill] sm:$0xff] }
 0x4af   : > { %v3227_v40 = vsel %vm1392_vm8, %v3195_v37, %v2790_v31  ;;  %v3196_v14 = vsel %vm1359_vm7, %v3164_v61, %v2696_v38  ;;  %v8934_v38 = vld [vmem:[#allocation166_spill] sm:$0xff] }
 0x4b0   : > { %3003 = vrot.lane.b32.xlu0 %v8913_v30, %s4354_s9 }
 0x4b1   : > { %2717 = vrot.lane.b32.xlu1 %v8912_v21, %s4351_s6  ;;  %v3133_v21 = vsel %vm1293_vm5, %v3101_v0, %v8933_v56 }
 0x4b2   : > { %v2886_v45 = vpop.permute.xlu0 %2885  ;;  %v2792_v58 = vpop.permute.xlu1 %2791 }
 0x4b3   : > { %v3259_v54 = vsel %vm1425_vm9, %v3227_v40, %v2886_v45  ;;  %v3228_v63 = vsel %vm1392_vm8, %v3196_v14, %v2792_v58 }
 0x4b4   : > { %2813 = vrot.lane.b32.xlu0 %v8914_v35, %s4352_s7 }
 0x4b5   : > { %2719 = vrot.lane.b32.xlu1 %v8913_v30, %s4351_s6  ;;  %v8935_v30 = vld [vmem:[#allocation52_spill] sm:$0xff] }
 0x4b6   : > { %v2888_v60 = vpop.permute.xlu0 %2887  ;;  %v2597_v29 = vpop.permute.xlu1 %2596  ;;  %v3070_v45 = vsel %vm1227_vm3, %v8935_v30, %v8934_v38  ;;  %v8954_v38 = vld [vmem:[#allocation95_spill] sm:$0xff]  ;;  %v8955_v30 = vld [vmem:[#allocation200_spill] sm:$0xff] }
 0x4b7   : > { %v3260_v17 = vsel %vm1425_vm9, %v3228_v63, %v2888_v60  ;;  %v3165_v58 = vsel %vm1326_vm6, %v3133_v21, %v2597_v29  ;;  %v3102_v2 = vsel %vm1260_vm4, %v3070_v45, %v8937_v5  ;;  %v8939_v60 = vld [vmem:[#allocation86_spill] sm:$0xff]  ;;  %v4119_v63 = vpop.f32.mrf.mxu0 }
 0x4b8   : > { %2909 = vrot.lane.b32.xlu0 %v8921_v10, %s4353_s8  ;;  %v3134_v57 = vsel %vm1293_vm5, %v3102_v2, %v8939_v60 }
 0x4b9   : > { %2815 = vrot.lane.b32.xlu1 %v8923_v22, %s4352_s7  ;;  %v1813_v0 = vpop.f32.mrf.mxu0 }
 0x4ba   : > { %v2599_v47 = vpop.permute.xlu0 %2598  ;;  %v2982_v20 = vpop.permute.xlu1 %2981  ;;  %vm1852_vm14 = vcmp.ge.f32.partialorder %v1813_v0, 0.0 }
 0x4bb   : > { %v3291_v6 = vsel %vm1458_vm10, %v3259_v54, %v2982_v20  ;;  %v3166_v12 = vsel %vm1326_vm6, %v3134_v57, %v2599_v47  ;;  %v8943_v47 = vld [vmem:[#allocation181_spill] sm:$0xff]  ;;  %v8944_v20 = vld [vmem:[#allocation147_spill] sm:$0xff] }
 0x4bc   : > { %2911 = vrot.lane.b32.xlu0 %v8925_v9, %s4353_s8  ;;  %4145 = vmatprep.mubr.msk.f32.mxu1 %vm8886_vm2, %v3291_v6 }
 0x4bd   : > { %2620 = vrot.lane.b32.xlu1 %v8921_v10, %s4350_s5 }
 0x4be   : > { %v2984_v24 = vpop.permute.xlu0 %2983  ;;  %v2698_v4 = vpop.permute.xlu1 %2697 }
 0x4bf   : > { %v3292_v43 = vsel %vm1458_vm10, %v3260_v17, %v2984_v24  ;;  %v3197_v32 = vsel %vm1359_vm7, %v3165_v58, %v2698_v4  ;;  %v8946_v17 = vld [vmem:[#allocation163_spill] sm:$0xff] }
 0x4c0   : > { %2622 = vrot.lane.b32.xlu0 %v8925_v9, %s4350_s5  ;;  %4146 = vmatmul.mubr.msk.f32.gmra.mxu1 %vm8926_vm11, %v3292_v43  ;;  %v8945_v9 = vld [vmem:[#allocation131_spill] sm:$0xff]  ;;  %v8948_v43 = vld [vmem:[#allocation38_spill] sm:$0xff]  ;;  %vm8957_vm11 = vmmov %vm8886_vm2 }
 0x4c1   : > { %3005 = vrot.lane.b32.xlu1 %v8927_v27, %s4354_s9  ;;  %v8947_v24 = vld [vmem:[#allocation119_spill] sm:$0xff] }
 0x4c2   : > { %v2794_v33 = vpop.permute.xlu0 %2793  ;;  %v2700_v18 = vpop.permute.xlu1 %2699  ;;  %v3071_v4 = vsel %vm1227_vm3, %v8947_v24, %v8946_v17  ;;  %v8961_v17 = vld [vmem:[#allocation142_spill] sm:$0xff] }
 0x4c3   : > { %v3229_v55 = vsel %vm1392_vm8, %v3197_v32, %v2794_v33  ;;  %v3198_v28 = vsel %vm1359_vm7, %v3166_v12, %v2700_v18  ;;  %v8949_v18 = vld [vmem:[#allocation46_spill] sm:$0xff]  ;;  %v1884_v32 = vmul.f32 0.01, %v1813_v0 }
 0x4c4   : > { %3007 = vrot.lane.b32.xlu0 %v8928_v51, %s4354_s9 }
 0x4c5   : > { %2721 = vrot.lane.b32.xlu1 %v8927_v27, %s4351_s6  ;;  %v3103_v27 = vsel %vm1260_vm4, %v3071_v4, %v8948_v43  ;;  %v8962_v4 = vld [vmem:[#allocation196_spill] sm:$0xff] }
 0x4c6   : > { %v2890_v59 = vpop.permute.xlu0 %2889  ;;  %v2796_v39 = vpop.permute.xlu1 %2795 }
 0x4c7   : > { %v3261_v29 = vsel %vm1425_vm9, %v3229_v55, %v2890_v59  ;;  %v3230_v48 = vsel %vm1392_vm8, %v3198_v28, %v2796_v39  ;;  %v8950_v39 = vld [vmem:[#allocation104_spill] sm:$0xff]  ;;  %v8956_v55 = vld [vmem:[#allocation129_spill] sm:$0xff] }
 0x4c8   : > { %2817 = vrot.lane.b32.xlu0 %v8929_v7, %s4352_s7  ;;  %v3072_v44 = vsel %vm1227_vm3, %v8951_v1, %v8950_v39  ;;  %v8964_v39 = vld [vmem:[#allocation183_spill] sm:$0xff] }
 0x4c9   : > { %2723 = vrot.lane.b32.xlu1 %v8928_v51, %s4351_s6  ;;  %v3135_v51 = vsel %vm1293_vm5, %v3103_v27, %v8949_v18  ;;  %v3074_v1 = vsel %vm1227_vm3, %v6546_v34, %v8964_v39 }
 0x4ca   : > { %v2892_v26 = vpop.permute.xlu0 %2891  ;;  %v2601_v31 = vpop.permute.xlu1 %2600 }
 0x4cb   : > { %v3262_v37 = vsel %vm1425_vm9, %v3230_v48, %v2892_v26  ;;  %v3167_v53 = vsel %vm1326_vm6, %v3135_v51, %v2601_v31  ;;  %v8953_v26 = vld [vmem:[#allocation76_spill] sm:$0xff] }
 0x4cc   : > { %2913 = vrot.lane.b32.xlu0 %v8936_v36, %s4353_s8  ;;  %v3104_v56 = vsel %vm1260_vm4, %v3072_v44, %v8953_v26  ;;  %v8958_v48 = vld [vmem:[#allocation36_spill] sm:$0xff] }
 0x4cd   : > { %2819 = vrot.lane.b32.xlu1 %v8938_v52, %s4352_s7  ;;  %v3136_v45 = vsel %vm1293_vm5, %v3104_v56, %v8955_v30  ;;  %v8966_v30 = vld [vmem:[#allocation152_spill] sm:$0xff] }
 0x4ce   : > { %v2603_v49 = vpop.permute.xlu0 %2602 }
 0x4cf   : > { %v2986_v11 = vpop.permute.xlu1 %2985  ;;  %v3168_v31 = vsel %vm1326_vm6, %v3136_v45, %v2603_v49 }
 0x4d0   : > { %v3293_v10 = vsel %vm1458_vm10, %v3261_v29, %v2986_v11  ;;  %2915 = vrot.lane.b32.xlu0 %v8940_v8, %s4353_s8 }
 0x4d1   : > { %2624 = vrot.lane.b32.xlu1 %v8936_v36, %s4350_s5  ;;  %4148 = vmatprep.mubr.msk.f32.mxu1 %vm8941_vm15, %v3293_v10  ;;  %v1885_v10 = vmul.f32 0.01, %v4119_v63  ;;  %vm1853_vm15 = vcmp.ge.f32.partialorder %v4119_v63, 0.0 }
 0x4d2   : > { %v2988_v41 = vpop.permute.xlu0 %2987 }
 0x4d3   : > { %v2702_v42 = vpop.permute.xlu1 %2701  ;;  %v3294_v40 = vsel %vm1458_vm10, %v3262_v37, %v2988_v41 }
 0x4d4   : > { %2626 = vrot.lane.b32.xlu0 %v8940_v8, %s4350_s5  ;;  %4149 = vmatmul.mubr.msk.f32.gmra.mxu1 %vm8942_vm13, %v3294_v40  ;;  %v3199_v21 = vsel %vm1359_vm7, %v3167_v53, %v2702_v42  ;;  %v1916_v8 = vsel %vm1852_vm14, %v1813_v0, %v1884_v32  ;;  %v1917_v40 = vsel %vm1853_vm15, %v4119_v63, %v1885_v10  ;;  %v8965_v0 = vld [vmem:[#allocation170_spill] sm:$0xff]  ;;  %vm8968_vm13 = vmmov %vm8886_vm2 }
 0x4d5   : > { %3009 = vrot.lane.b32.xlu1 %v8943_v47, %s4354_s9  ;;  %v1999_v41 = vrot.slane %v1916_v8, 7  ;;  %v3106_v26 = vsel %vm1260_vm4, %v3074_v1, %v8965_v0  ;;  %v8975_v1 = vld [vmem:[#allocation109_spill] sm:$0xff] }
 0x4d6   : > { %v2798_v61 = vpop.permute.xlu0 %2797  ;;  %v3138_v45 = vsel %vm1293_vm5, %v3106_v26, %v8966_v30 }
 0x4d7   : > { %v2704_v54 = vpop.permute.xlu1 %2703  ;;  %v3231_v58 = vsel %vm1392_vm8, %v3199_v21, %v2798_v61 }
 0x4d8   : > { %3011 = vrot.lane.b32.xlu0 %v8944_v20, %s4354_s9  ;;  %v3200_v60 = vsel %vm1359_vm7, %v3168_v31, %v2704_v54  ;;  %v2000_v54 = vrot.slane %v1917_v40, 7 }
 0x4d9   : > { %2725 = vrot.lane.b32.xlu1 %v8943_v47, %s4351_s6  ;;  %v8959_v47 = vld [vmem:[#allocation193_spill] sm:$0xff] }
 0x4da   : > { %v2894_v14 = vpop.permute.xlu0 %2893  ;;  %v2001_v63 = vsel %vm1951_vm12, %v1999_v41, %v2000_v54  ;;  %v2084_v21 = vsel %vm1951_vm12, %v2000_v54, 0.0 }
 0x4db   : > { %v2800_v6 = vpop.permute.xlu1 %2799  ;;  %v3263_v5 = vsel %vm1425_vm9, %v3231_v58, %v2894_v14  ;;  %v2067_v14 = vsel %vm1951_vm12, 0.0, %v1999_v41  ;;  %vm8967_vm12 = vmmov %vm8886_vm2  ;;  %v2669_v10 = vrot.slane %v2001_v63, 2  ;;  %v2671_v41 = vrot.slane %v2084_v21, 2 }
 0x4dc   : > { %2821 = vrot.lane.b32.xlu0 %v8945_v9, %s4352_s7  ;;  %v3232_v12 = vsel %vm1392_vm8, %v3200_v60, %v2800_v6  ;;  %v8960_v6 = vld [vmem:[#allocation101_spill] sm:$0xff]  ;;  %v2567_v53 = vrot.slane %v2067_v14, 1 }
 0x4dd   : > { %2727 = vrot.lane.b32.xlu1 %v8944_v20, %s4351_s6  ;;  %v3073_v24 = vsel %vm1227_vm3, %v8961_v17, %v8960_v6  ;;  %v8971_v6 = vld [vmem:[#allocation148_spill] sm:$0xff] }
 0x4de   : > { %v2896_v33 = vpop.permute.xlu0 %2895  ;;  %v3105_v43 = vsel %vm1260_vm4, %v3073_v24, %v8962_v4 }
 0x4df   : > { %v2605_v59 = vpop.permute.xlu1 %2604  ;;  %v3264_v49 = vsel %vm1425_vm9, %v3232_v12, %v2896_v33  ;;  %v8963_v33 = vld [vmem:[#allocation41_spill] sm:$0xff] }
 0x4e0   : > { %2917 = vrot.lane.b32.xlu0 %v8952_v15, %s4353_s8  ;;  %v3137_v18 = vsel %vm1293_vm5, %v3105_v43, %v8963_v33 }
 0x4e1   : > { %2823 = vrot.lane.b32.xlu1 %v8954_v38, %s4352_s7  ;;  %v3169_v44 = vsel %vm1326_vm6, %v3137_v18, %v2605_v59  ;;  %v8974_v18 = vld [vmem:[#allocation108_spill] sm:$0xff] }
 0x4e2   : > { %v2607_v36 = vpop.permute.xlu0 %2606 }
 0x4e3   : > { %v2990_v2 = vpop.permute.xlu1 %2989  ;;  %v3170_v59 = vsel %vm1326_vm6, %v3138_v45, %v2607_v36  ;;  %v8977_v45 = vld [vmem:[#allocation51_spill] sm:$0xff] }
 0x4e4   : > { %v3295_v57 = vsel %vm1458_vm10, %v3263_v5, %v2990_v2  ;;  %2919 = vrot.lane.b32.xlu0 %v8956_v55, %s4353_s8 }
 0x4e5   : > { %2628 = vrot.lane.b32.xlu1 %v8952_v15, %s4350_s5  ;;  %4151 = vmatprep.mubr.msk.f32.mxu1 %vm8886_vm2, %v3295_v57  ;;  %v2568_v15 = vrot.slane %v2001_v63, 1  ;;  %v2570_v57 = vrot.slane %v2084_v21, 1  ;;  %v8976_v21 = vld [vmem:[#allocation65_spill] sm:$0xff] }
 0x4e6   : > { %v2992_v29 = vpop.permute.xlu0 %2991 }
 0x4e7   : > { %v2706_v11 = vpop.permute.xlu1 %2705  ;;  %v3296_v28 = vsel %vm1458_vm10, %v3264_v49, %v2992_v29  ;;  %v2569_v60 = vsel %vm271_vm0, %v2567_v53, %v2568_v15 }
 0x4e8   : > { %2630 = vrot.lane.b32.xlu0 %v8956_v55, %s4350_s5  ;;  %4152 = vmatmul.mubr.msk.f32.gmra.mxu1 %vm8957_vm11, %v3296_v28  ;;  %v3201_v56 = vsel %vm1359_vm7, %v3169_v44, %v2706_v11  ;;  %v2571_v11 = vsel %vm271_vm0, %v2568_v15, %v2570_v57  ;;  %v2668_v28 = vrot.slane %v2067_v14, 2  ;;  %vm8978_vm0 = vmmov %vm8886_vm2  ;;  %v8980_v57 = vld [vmem:[#allocation197_spill] sm:$0xff] }
 0x4e9   : > { %3013 = vrot.lane.b32.xlu1 %v8958_v48, %s4354_s9  ;;  %vm8988_vm11 = vmmov %vm8978_vm0 }
 0x4ea   : > { %v2802_v37 = vpop.permute.xlu0 %2801  ;;  %vm8989_vm15 = vmmov %vm8978_vm0 }
 0x4eb   : > { %v2708_v42 = vpop.permute.xlu1 %2707  ;;  %v3233_v34 = vsel %vm1392_vm8, %v3201_v56, %v2802_v37  ;;  %v2670_v37 = vsel %vm448_vm1, %v2668_v28, %v2669_v10  ;;  %v8983_v28 = vld [vmem:[#allocation37_spill] sm:$0xff] }
 0x4ec   : > { %3015 = vrot.lane.b32.xlu0 %v8959_v47, %s4354_s9  ;;  %v3202_v2 = vsel %vm1359_vm7, %v3170_v59, %v2708_v42 }
 0x4ed   : > { %2729 = vrot.lane.b32.xlu1 %v8958_v48, %s4351_s6 }
 0x4ee   : > { %v2898_v61 = vpop.permute.xlu0 %2897 }
 0x4ef   : > { %v2804_v20 = vpop.permute.xlu1 %2803  ;;  %v3265_v31 = vsel %vm1425_vm9, %v3233_v34, %v2898_v61  ;;  %v8969_v61 = vld [vmem:[#allocation141_spill] sm:$0xff] }
 0x4f0   : > { %2825 = vrot.lane.b32.xlu0 %v2067_v14, %s4352_s7  ;;  %v3234_v55 = vsel %vm1392_vm8, %v3202_v2, %v2804_v20  ;;  %v4238_v54 = vpack.i.bf16 %v8883_v13, %v8969_v61  ;;  %v8970_v20 = vld [vmem:[#allocation134_spill] sm:$0xff] }
 0x4f1   : > { %2731 = vrot.lane.b32.xlu1 %v8959_v47, %s4351_s6  ;;  %v2672_v47 = vsel %vm448_vm1, %v2669_v10, %v2671_v41  ;;  %vm8979_vm1 = vmmov %vm8978_vm0  ;;  %v3078_v10 = vsel %vm1227_vm3, %v6595_v16, %v8983_v28  ;;  %v8985_v41 = vld [vmem:[#allocation185_spill] sm:$0xff]  ;;  %v8997_v28 = vld [vmem:[#allocation48_spill] sm:$0xff] }
 0x4f2   : > { %v2900_v27 = vpop.permute.xlu0 %2899 }
 0x4f3   : > { %v2609_v51 = vpop.permute.xlu1 %2608  ;;  %v3266_v36 = vsel %vm1425_vm9, %v3234_v55, %v2900_v27  ;;  %v8973_v27 = vld [vmem:[#allocation40_spill] sm:$0xff]  ;;  %v3077_v55 = vsel %vm1227_vm3, %v6602_v19, %v8980_v57 }
 0x4f4   : > { %2827 = vrot.lane.b32.xlu0 %v2001_v63, %s4352_s7  ;;  %v3076_v33 = vsel %vm1227_vm3, %v6571_v23, %v8973_v27 }
 0x4f5   : > { %2530 = vrot.lane.b32.xlu1 %v2067_v14, %s4349_s4  ;;  %v3075_v14 = vsel %vm1227_vm3, %v6574_v3, %v8970_v20  ;;  %v3108_v3 = vsel %vm1260_vm4, %v3076_v33, %v8974_v18 }
 0x4f6   : > { %v2611_v58 = vpop.permute.xlu0 %2610  ;;  %v3107_v17 = vsel %vm1260_vm4, %v3075_v14, %v8971_v6  ;;  %v3140_v44 = vsel %vm1293_vm5, %v3108_v3, %v8975_v1 }
 0x4f7   : > { %v2994_v5 = vpop.permute.xlu1 %2993  ;;  %v3172_v0 = vsel %vm1326_vm6, %v3140_v44, %v2611_v58 }
 0x4f8   : > { %v3297_v32 = vsel %vm1458_vm10, %v3265_v31, %v2994_v5  ;;  %2532 = vrot.lane.b32.xlu0 %v2001_v63, %s4349_s4  ;;  %v8972_v63 = vld [vmem:[#allocation77_spill] sm:$0xff]  ;;  %s161_s4 = sand.u32 1, %s4337_s13  }
 0x4f9   : > { %2921 = vrot.lane.b32.xlu1 %v2569_v60, %s4353_s8  ;;  %4154 = vmatprep.mubr.msk.f32.mxu1 %vm8967_vm12, %v3297_v32  ;;  %v3139_v4 = vsel %vm1293_vm5, %v3107_v17, %v8972_v63 }
 0x4fa   : > { %v2996_v12 = vpop.permute.xlu0 %2995  ;;  %v3171_v13 = vsel %vm1326_vm6, %v3139_v4, %v2609_v51 }
 0x4fb   : > { %v2710_v49 = vpop.permute.xlu1 %2709  ;;  %v3298_v29 = vsel %vm1458_vm10, %v3266_v36, %v2996_v12  ;;  %v8981_v36 = vld [vmem:[#allocation73_spill] sm:$0xff] }
 0x4fc   : > { %2923 = vrot.lane.b32.xlu0 %v2571_v11, %s4353_s8  ;;  %4155 = vmatmul.mubr.msk.f32.gmra.mxu1 %vm8968_vm13, %v3298_v29  ;;  %v3203_v39 = vsel %vm1359_vm7, %v3171_v13, %v2710_v49  ;;  %v3109_v12 = vsel %vm1260_vm4, %v3077_v55, %v8981_v36  ;;  %v8982_v29 = vld [vmem:[#allocation6_spill] sm:$0xff]  ;;  %v8995_v36 = vld [vmem:[#allocation136_spill] sm:$0xff] }
 0x4fd   : > { %2632 = vrot.lane.b32.xlu1 %v2569_v60, %s4350_s5 }
 0x4fe   : > { %v2806_v8 = vpop.permute.xlu0 %2805 }
 0x4ff   : > { %v2712_v48 = vpop.permute.xlu1 %2711  ;;  %v3235_v53 = vsel %vm1392_vm8, %v3203_v39, %v2806_v8  ;;  %v8984_v8 = vld [vmem:[#allocation78_spill] sm:$0xff] }
 0x500   : > { %2634 = vrot.lane.b32.xlu0 %v2571_v11, %s4350_s5  ;;  %v3204_v26 = vsel %vm1359_vm7, %v3172_v0, %v2712_v48  ;;  %v3351_v11 = vsel %vm1227_vm3, %v8982_v29, 0.0  ;;  %v3141_v48 = vsel %vm1293_vm5, %v3109_v12, %v8984_v8  ;;  %s3914_s5 = sshll.u32 %s161_s4, 8  ;;  %v8996_v29 = vld [vmem:[#allocation8_spill] sm:$0xff] }
 0x501   : > { %3017 = vrot.lane.b32.xlu1 %v2670_v37, %s4354_s9 }
 0x502   : > { %v2902_v42 = vpop.permute.xlu0 %2901 }
 0x503   : > { %v2808_v40 = vpop.permute.xlu1 %2807  ;;  %v3267_v23 = vsel %vm1425_vm9, %v3235_v53, %v2902_v42  ;;  %v3110_v42 = vsel %vm1260_vm4, %v3078_v10, %v8985_v41 }
 0x504   : > { %3019 = vrot.lane.b32.xlu0 %v2672_v47, %s4354_s9  ;;  %v3236_v30 = vsel %vm1392_vm8, %v3204_v26, %v2808_v40 }
 0x505   : > { %2733 = vrot.lane.b32.xlu1 %v2670_v37, %s4351_s6 }
 0x506   : > { %v2904_v24 = vpop.permute.xlu0 %2903 }
 0x507   : > { %v2613_v43 = vpop.permute.xlu1 %2612  ;;  %v3268_v34 = vsel %vm1425_vm9, %v3236_v30, %v2904_v24  ;;  %v8990_v30 = vld [vmem:[#allocation149_spill] sm:$0xff] }
 0x508   : > { %4239 = vrot.lane.b32.xlu0 %v4238_v54, %s4352_s7  ;;  %v3173_v19 = vsel %vm1326_vm6, %v3141_v48, %v2613_v43  ;;  %v8987_v54 = vld [vmem:[#allocation110_spill] sm:$0xff]  ;;  %s3987_s7 = sshll.u32 %s4399_s16, 12  ;;  %s8042_s16 = scalar_lea.sflag [#allocation3], %s161_s4 }
 0x509   : > { %2735 = vrot.lane.b32.xlu1 %v2672_v47, %s4351_s6  ;;  %v8986_v47 = vld [vmem:[#allocation5_spill] sm:$0xff]  ;;  %v3142_v20 = vsel %vm1293_vm5, %v3110_v42, %v8987_v54  ;;  %s7807_s6 = scalar_lea.vmem [#allocation2], %s3914_s5  ;;  %s8034_s28 = scalar_lea.hbm %s8086_s3, %s3987_s7 }
 0x50a   : > { %v2615_v15 = vpop.permute.xlu0 %2614  ;;  %v3350_v61 = vsel %vm1227_vm3, %v8986_v47, 0.0 }
 0x50b   : > { %v2998_v51 = vpop.permute.xlu1 %2997  ;;  %v3174_v6 = vsel %vm1326_vm6, %v3142_v20, %v2615_v15 }
 0x50c   : > { %v3299_v56 = vsel %vm1458_vm10, %v3267_v23, %v2998_v51  ;;  %4249 = vrot.lane.b32.xlu0 %v8976_v21, %s4354_s9 }
 0x50d   : > { %4244 = vrot.lane.b32.xlu1 %v8977_v45, %s4353_s8  ;;  %4157 = vmatprep.mubr.msk.f32.mxu1 %vm8978_vm0, %v3299_v56  ;;  %v3079_v45 = vsel %vm1227_vm3, %v6612_v50, %v8990_v30  ;;  %v9004_v30 = vld [vmem:[#allocation201_spill] sm:$0xff]  ;;  %s3848_s8 = sshll.u32 %s7807_s6, 4  ;;  %s8037_s8 = int_to_ptr.vmem [resolvable:$true] %s3848_s8 }
 0x50e   : > { %v3000_v58 = vpop.permute.xlu0 %2999  ;;  %s4285_s29 = scalar_lea.vmem %s8037_s8, 4096  ;;  %p4292_p0 = scmp.lt.s32.totalorder %s8037_s8, %s4290_s11 }
 0x50f   : > { %v2714_v59 = vpop.permute.xlu1 %2713  ;;  %v3300_v31 = vsel %vm1458_vm10, %v3268_v34, %v3000_v58  ;;  %v8991_v34 = vld [vmem:[#allocation167_spill] sm:$0xff]  ;;  %p4286_p11 = scmp.ne.s32.totalorder %s8037_s8, %s4285_s29  ;;  %p4293_p1 = scmp.lt.s32.totalorder %s4291_s17, %s4285_s29 }
 0x510   : > { %4158 = vmatmul.mubr.msk.f32.gmra.mxu1 %vm8979_vm1, %v3300_v31  ;;  %v3205_v16 = vsel %vm1359_vm7, %v3173_v19, %v2714_v59  ;;  %v3111_v58 = vsel %vm1260_vm4, %v3079_v45, %v8991_v34  ;;  %v8992_v31 = vld [vmem:[#allocation7_spill] sm:$0xff]  ;;  %vm8998_vm1 = vmmov %vm8978_vm0 }
 0x511   : > { %p4287_p12 = pnand %p4286_p11, %p4416_p5  ;;  %p4294_p2 = por %p4293_p1, %p4292_p0 }
 0x512   : > { %v2810_v5 = vpop.permute.xlu0 %2809 }
 0x513   : > { %v2716_v2 = vpop.permute.xlu1 %2715  ;;  %v3237_v17 = vsel %vm1392_vm8, %v3205_v16, %v2810_v5  ;;  %v3353_v5 = vsel %vm1227_vm3, %v8992_v31, 0.0  ;;  %v9006_v31 = vld [vmem:[#allocation154_spill] sm:$0xff]  ;;  %p4288_p13 = pneg %p4287_p12 }
 0x514   : > { %v3206_v13 = vsel %vm1359_vm7, %v3174_v6, %v2716_v2  ;;  %v8993_v2 = vld [vmem:[#allocation194_spill] sm:$0xff] }
 0x515   : > { %p4295_p3 = pnand %p4294_p2, %p4288_p13 }
 0x516   : > { %v2906_v32 = vpop.permute.xlu0 %2905 }
 0x517   : > { %v2812_v60 = vpop.permute.xlu1 %2811  ;;  %v3269_v4 = vsel %vm1425_vm9, %v3237_v17, %v2906_v32  ;;  %v3080_v32 = vsel %vm1227_vm3, %v6609_v62, %v8993_v2 }
 0x518   : > { %v3238_v3 = vsel %vm1392_vm8, %v3206_v13, %v2812_v60  ;;  %v8994_v60 = vld [vmem:[#allocation171_spill] sm:$0xff]  ;;  %v3112_v12 = vsel %vm1260_vm4, %v3080_v32, %v8995_v36 }
 0x519   : > { %v3143_v57 = vsel %vm1293_vm5, %v3111_v58, %v8994_v60  ;;  %v3144_v10 = vsel %vm1293_vm5, %v3112_v12, %v8997_v28  ;;  %v9005_v58 = vld [vmem:[#allocation10_spill] sm:$0xff] }
 0x51a   : > { %v2908_v49 = vpop.permute.xlu0 %2907 }
 0x51b   : > { %v2617_v37 = vpop.permute.xlu1 %2616  ;;  %v3270_v44 = vsel %vm1425_vm9, %v3238_v3, %v2908_v49  ;;  %v8999_v3 = vld [vmem:[#allocation146_spill] sm:$0xff] }
 0x51c   : > { %v4132_v40 = vpop.f32.mrf.mxu1  ;;  %v3175_v50 = vsel %vm1326_vm6, %v3143_v57, %v2617_v37 }
 0x51d   : > { %v3553_v14 = vadd.f32 %v4132_v40, %v3351_v11  ;;  %v3352_v11 = vsel %vm1227_vm3, %v8996_v29, 0.0 }
 0x51e   : > { %v2619_v24 = vpop.permute.xlu0 %2618  ;;  %v3547_v63 = vpop.f32.mrf.mxu1 }
 0x51f   : > { %vm3707_vm14 = vcmp.ge.f32.partialorder %v3553_v14, 0.0  ;;  %v3739_v43 = vmul.f32 0.01, %v3553_v14  ;;  %v3002_v27 = vpop.permute.xlu1 %3001  ;;  %v3548_v33 = vadd.f32 %v3547_v63, %v3350_v61  ;;  %v3176_v62 = vsel %vm1326_vm6, %v3144_v10, %v2619_v24 }
 0x520   : > { %v3301_v18 = vsel %vm1458_vm10, %v3269_v4, %v3002_v27 }
 0x521   : > { %v3771_v39 = vsel %vm3707_vm14, %v3553_v14, %v3739_v43  ;;  %vm3706_vm2 = vcmp.ge.f32.partialorder %v3548_v33, 0.0  ;;  %v3738_v1 = vmul.f32 0.01, %v3548_v33  ;;  %4160 = vmatprep.mubr.msk.f32.mxu1 %vm8988_vm11, %v3301_v18  ;;  %vm9007_vm11 = vmmov %vm8978_vm0 }
 0x522   : > { %3803 = vst [vmem:[%s7807_s6 + $0x8] sm:$0xff] %v3771_v39  ;;  %v3004_v53 = vpop.permute.xlu0 %3003  ;;  %v3081_v39 = vsel %vm1227_vm3, %v6630_v46, %v8999_v3 }
 0x523   : > { %v3770_v15 = vsel %vm3706_vm2, %v3548_v33, %v3738_v1  ;;  %v2718_v0 = vpop.permute.xlu1 %2717  ;;  %v3302_v23 = vsel %vm1458_vm10, %v3270_v44, %v3004_v53  ;;  %v9000_v1 = vld [vmem:[#allocation105_spill] sm:$0xff] }
 0x524   : > { %3802 = vst [vmem:[%s7807_s6] sm:$0xff] %v3770_v15  ;;  %4161 = vmatmul.mubr.msk.f32.gmra.mxu1 %vm8989_vm15, %v3302_v23  ;;  %v3207_v8 = vsel %vm1359_vm7, %v3175_v50, %v2718_v0  ;;  %v3113_v44 = vsel %vm1260_vm4, %v3081_v39, %v9000_v1  ;;  %v9001_v15 = vld [vmem:[#allocation9_spill] sm:$0xff]  ;;  %v9002_v23 = vld [vmem:[#allocation74_spill] sm:$0xff]  ;;  %vm9008_vm15 = vmmov %vm8978_vm0 }
 0x525   : > { %v3355_v0 = vsel %vm1227_vm3, %v9001_v15, 0.0  ;;  %v9015_v39 = vld [vmem:[#allocation12_spill] sm:$0xff] }
 0x526   : > { %v2814_v51 = vpop.permute.xlu0 %2813  ;;  %v3356_v1 = vsel %vm1227_vm3, %v9015_v39, 0.0 }
 0x527   : > { %v2720_v26 = vpop.permute.xlu1 %2719  ;;  %v3239_v41 = vsel %vm1392_vm8, %v3207_v8, %v2814_v51  ;;  %v3082_v51 = vsel %vm1227_vm3, %v6627_v25, %v9002_v23 }
 0x528   : > { %v3208_v54 = vsel %vm1359_vm7, %v3176_v62, %v2720_v26  ;;  %v9003_v26 = vld [vmem:[#allocation43_spill] sm:$0xff]  ;;  %v3114_v45 = vsel %vm1260_vm4, %v3082_v51, %v9004_v30 }
 0x52a   : > { %v2910_v56 = vpop.permute.xlu0 %2909 }
 0x52b   : > { %v2816_v21 = vpop.permute.xlu1 %2815  ;;  %v3271_v40 = vsel %vm1425_vm9, %v3239_v41, %v2910_v56  ;;  %v3145_v56 = vsel %vm1293_vm5, %v3113_v44, %v9003_v26  ;;  %v9016_v44 = vld [vmem:[#allocation155_spill] sm:$0xff] }
 0x52c   : > { %v3240_v16 = vsel %vm1392_vm8, %v3208_v54, %v2816_v21  ;;  %v9009_v54 = vld [vmem:[#allocation71_spill] sm:$0xff] }
 0x52e   : > { %v2912_v59 = vpop.permute.xlu0 %2911 }
 0x52f   : > { %v2621_v55 = vpop.permute.xlu1 %2620  ;;  %v3272_v17 = vsel %vm1425_vm9, %v3240_v16, %v2912_v59  ;;  %v3354_v59 = vsel %vm1227_vm3, %v9005_v58, 0.0  ;;  %v9010_v16 = vld [vmem:[#allocation44_spill] sm:$0xff] }
 0x530   : > { %v4135_v49 = vpop.f32.mrf.mxu1  ;;  %v3177_v46 = vsel %vm1326_vm6, %v3145_v56, %v2621_v55 }
 0x531   : > { %v3563_v48 = vadd.f32 %v4135_v49, %v3353_v5  ;;  %v3146_v5 = vsel %vm1293_vm5, %v3114_v45, %v9006_v31 }
 0x532   : > { %v2623_v42 = vpop.permute.xlu0 %2622  ;;  %v3557_v19 = vpop.f32.mrf.mxu1 }
 0x533   : > { %vm3709_vm12 = vcmp.ge.f32.partialorder %v3563_v48, 0.0  ;;  %v3741_v37 = vmul.f32 0.01, %v3563_v48  ;;  %v3006_v47 = vpop.permute.xlu1 %3005  ;;  %v3558_v61 = vadd.f32 %v3557_v19, %v3352_v11  ;;  %v3178_v25 = vsel %vm1326_vm6, %v3146_v5, %v2623_v42 }
 0x534   : > { %v3303_v20 = vsel %vm1458_vm10, %v3271_v40, %v3006_v47 }
 0x535   : > { %v3773_v14 = vsel %vm3709_vm12, %v3563_v48, %v3741_v37  ;;  %vm3708_vm13 = vcmp.ge.f32.partialorder %v3558_v61, 0.0  ;;  %v3740_v6 = vmul.f32 0.01, %v3558_v61  ;;  %4163 = vmatprep.mubr.msk.f32.mxu1 %vm8978_vm0, %v3303_v20  ;;  %v3083_v20 = vsel %vm1227_vm3, %v8914_v35, %v9009_v54  ;;  %v9023_v54 = vld [vmem:[#allocation53_spill] sm:$0xff] }
 0x536   : > { %3805 = vst [vmem:[%s7807_s6 + $0x18] sm:$0xff] %v3773_v14  ;;  %v3008_v24 = vpop.permute.xlu0 %3007  ;;  %v3115_v14 = vsel %vm1260_vm4, %v3083_v20, %v9010_v16 }
 0x537   : > { %v3772_v63 = vsel %vm3708_vm13, %v3558_v61, %v3740_v6  ;;  %v2722_v4 = vpop.permute.xlu1 %2721  ;;  %v3304_v43 = vsel %vm1458_vm10, %v3272_v17, %v3008_v24  ;;  %v9011_v17 = vld [vmem:[#allocation11_spill] sm:$0xff] }
 0x538   : > { %3804 = vst [vmem:[%s7807_s6 + $0x10] sm:$0xff] %v3772_v63  ;;  %4164 = vmatmul.mubr.msk.f32.gmra.mxu1 %vm8998_vm1, %v3304_v43  ;;  %v3209_v2 = vsel %vm1359_vm7, %v3177_v46, %v2722_v4  ;;  %v3357_v24 = vsel %vm1227_vm3, %v9011_v17, 0.0  ;;  %v9012_v63 = vld [vmem:[#allocation168_spill] sm:$0xff]  ;;  %v9013_v43 = vld [vmem:[#allocation137_spill] sm:$0xff]  ;;  %vm9017_vm1 = vmmov %vm8978_vm0 }
 0x539   : > { %v3084_v4 = vsel %vm1227_vm3, %v8923_v22, %v9012_v63  ;;  %v9024_v17 = vld [vmem:[#allocation150_spill] sm:$0xff] }
 0x53a   : > { %v2818_v27 = vpop.permute.xlu0 %2817 }
 0x53b   : > { %v2724_v33 = vpop.permute.xlu1 %2723  ;;  %v3241_v60 = vsel %vm1392_vm8, %v3209_v2, %v2818_v27  ;;  %v3147_v27 = vsel %vm1293_vm5, %v3115_v14, %v9013_v43  ;;  %v9025_v43 = vld [vmem:[#allocation173_spill] sm:$0xff] }
 0x53c   : > { %v3210_v29 = vsel %vm1359_vm7, %v3178_v25, %v2724_v33 }
 0x53e   : > { %v2914_v13 = vpop.permute.xlu0 %2913 }
 0x53f   : > { %v2820_v18 = vpop.permute.xlu1 %2819  ;;  %v3273_v12 = vsel %vm1425_vm9, %v3241_v60, %v2914_v13  ;;  %v9014_v13 = vld [vmem:[#allocation153_spill] sm:$0xff] }
 0x540   : > { %v3242_v28 = vsel %vm1392_vm8, %v3210_v29, %v2820_v18  ;;  %v3116_v18 = vsel %vm1260_vm4, %v3084_v4, %v9014_v13 }
 0x542   : > { %v2916_v53 = vpop.permute.xlu0 %2915 }
 0x543   : > { %v2625_v21 = vpop.permute.xlu1 %2624  ;;  %v3274_v48 = vsel %vm1425_vm9, %v3242_v28, %v2916_v53  ;;  %v3148_v53 = vsel %vm1293_vm5, %v3116_v18, %v9016_v44 }
 0x544   : > { %v4138_v34 = vpop.f32.mrf.mxu1  ;;  %v3179_v35 = vsel %vm1326_vm6, %v3147_v27, %v2625_v21 }
 0x545   : > { %v3573_v32 = vadd.f32 %v4138_v34, %v3355_v0 }
 0x546   : > { %v2627_v57 = vpop.permute.xlu0 %2626  ;;  %v3567_v36 = vpop.f32.mrf.mxu1 }
 0x547   : > { %vm3711_vm14 = vcmp.ge.f32.partialorder %v3573_v32, 0.0  ;;  %v3743_v55 = vmul.f32 0.01, %v3573_v32  ;;  %v3010_v50 = vpop.permute.xlu1 %3009  ;;  %v3568_v49 = vadd.f32 %v3567_v36, %v3354_v59  ;;  %v3180_v22 = vsel %vm1326_vm6, %v3148_v53, %v2627_v57 }
 0x548   : > { %v3305_v11 = vsel %vm1458_vm10, %v3273_v12, %v3010_v50 }
 0x549   : > { %v3775_v10 = vsel %vm3711_vm14, %v3573_v32, %v3743_v55  ;;  %vm3710_vm2 = vcmp.ge.f32.partialorder %v3568_v49, 0.0  ;;  %v3742_v8 = vmul.f32 0.01, %v3568_v49  ;;  %4166 = vmatprep.mubr.msk.f32.mxu1 %vm9007_vm11, %v3305_v11  ;;  %vm9026_vm11 = vmmov %vm8978_vm0 }
 0x54a   : > { %3807 = vst [vmem:[%s7807_s6 + $0x28] sm:$0xff] %v3775_v10  ;;  %v3012_v62 = vpop.permute.xlu0 %3011  ;;  %v9019_v10 = vld [vmem:[#allocation14_spill] sm:$0xff] }
 0x54b   : > { %v3774_v41 = vsel %vm3710_vm2, %v3568_v49, %v3742_v8  ;;  %v2726_v42 = vpop.permute.xlu1 %2725  ;;  %v3306_v19 = vsel %vm1458_vm10, %v3274_v48, %v3012_v62  ;;  %v9018_v49 = vld [vmem:[#allocation13_spill] sm:$0xff]  ;;  %v3358_v8 = vsel %vm1227_vm3, %v9019_v10, 0.0 }
 0x54c   : > { %3806 = vst [vmem:[%s7807_s6 + $0x20] sm:$0xff] %v3774_v41  ;;  %4167 = vmatmul.mubr.msk.f32.gmra.mxu1 %vm9008_vm15, %v3306_v19  ;;  %v3211_v15 = vsel %vm1359_vm7, %v3179_v35, %v2726_v42  ;;  %v3359_v29 = vsel %vm1227_vm3, %v9018_v49, 0.0  ;;  %v9020_v48 = vld [vmem:[#allocation165_spill] sm:$0xff]  ;;  %v9021_v42 = vld [vmem:[#allocation106_spill] sm:$0xff]  ;;  %vm9027_vm15 = vmmov %vm8978_vm0 }
 0x54d   : > { %v3085_v62 = vsel %vm1227_vm3, %v8929_v7, %v9020_v48  ;;  %v3086_v19 = vsel %vm1227_vm3, %v8938_v52, %v9021_v42 }
 0x54e   : > { %v2822_v40 = vpop.permute.xlu0 %2821  ;;  %v3118_v7 = vsel %vm1260_vm4, %v3086_v19, %v9024_v17 }
 0x54f   : > { %v2728_v37 = vpop.permute.xlu1 %2727  ;;  %v3243_v23 = vsel %vm1392_vm8, %v3211_v15, %v2822_v40  ;;  %v9022_v40 = vld [vmem:[#allocation39_spill] sm:$0xff]  ;;  %v3150_v27 = vsel %vm1293_vm5, %v3118_v7, %v9025_v43 }
 0x550   : > { %v3212_v46 = vsel %vm1359_vm7, %v3180_v22, %v2728_v37  ;;  %v3117_v37 = vsel %vm1260_vm4, %v3085_v62, %v9022_v40 }
 0x551   : > { %v3149_v20 = vsel %vm1293_vm5, %v3117_v37, %v9023_v54 }
 0x552   : > { %v2918_v47 = vpop.permute.xlu0 %2917 }
 0x553   : > { %v2824_v61 = vpop.permute.xlu1 %2823  ;;  %v3275_v56 = vsel %vm1425_vm9, %v3243_v23, %v2918_v47 }
 0x554   : > { %v3244_v58 = vsel %vm1392_vm8, %v3212_v46, %v2824_v61  ;;  %v9030_v46 = vld [vmem:[#allocation103_spill] sm:$0xff] }
 0x556   : > { %v2920_v6 = vpop.permute.xlu0 %2919 }
 0x557   : > { %v2629_v33 = vpop.permute.xlu1 %2628  ;;  %v3276_v5 = vsel %vm1425_vm9, %v3244_v58, %v2920_v6 }
 0x558   : > { %v4141_v3 = vpop.f32.mrf.mxu1 }
 0x559   : > { %v3583_v0 = vadd.f32 %v4141_v3, %v3357_v24  ;;  %v3181_v24 = vsel %vm1326_vm6, %v3149_v20, %v2629_v33 }
 0x55a   : > { %v2631_v51 = vpop.permute.xlu0 %2630  ;;  %v3577_v26 = vpop.f32.mrf.mxu1 }
 0x55b   : > { %vm3713_vm12 = vcmp.ge.f32.partialorder %v3583_v0, 0.0  ;;  %v3745_v21 = vmul.f32 0.01, %v3583_v0  ;;  %v3014_v30 = vpop.permute.xlu1 %3013  ;;  %v3578_v45 = vadd.f32 %v3577_v26, %v3356_v1  ;;  %v3182_v35 = vsel %vm1326_vm6, %v3150_v27, %v2631_v51  ;;  %v9028_v51 = vld [vmem:[#allocation184_spill] sm:$0xff] }
 0x55c   : > { %v3307_v34 = vsel %vm1458_vm10, %v3275_v56, %v3014_v30  ;;  %v3088_v26 = vsel %vm1227_vm3, %v8954_v38, %v9028_v51 }
 0x55d   : > { %v3777_v59 = vsel %vm3713_vm12, %v3583_v0, %v3745_v21  ;;  %vm3712_vm13 = vcmp.ge.f32.partialorder %v3578_v45, 0.0  ;;  %v3744_v31 = vmul.f32 0.01, %v3578_v45  ;;  %4169 = vmatprep.mubr.msk.f32.mxu1 %vm8978_vm0, %v3307_v34  ;;  %v9029_v21 = vld [vmem:[#allocation172_spill] sm:$0xff]  ;;  %v3087_v34 = vsel %vm1227_vm3, %v8945_v9, %v9030_v46 }
 0x55e   : > { %3809 = vst [vmem:[%s7807_s6 + $0x38] sm:$0xff] %v3777_v59  ;;  %v3016_v2 = vpop.permute.xlu0 %3015  ;;  %v3120_v30 = vsel %vm1260_vm4, %v3088_v26, %v9029_v21  ;;  %v9031_v59 = vld [vmem:[#allocation198_spill] sm:$0xff] }
 0x55f   : > { %v3776_v32 = vsel %vm3712_vm13, %v3578_v45, %v3744_v31  ;;  %v2730_v25 = vpop.permute.xlu1 %2729  ;;  %v3308_v60 = vsel %vm1458_vm10, %v3276_v5, %v3016_v2  ;;  %v3119_v31 = vsel %vm1260_vm4, %v3087_v34, %v9031_v59 }
 0x560   : > { %3808 = vst [vmem:[%s7807_s6 + $0x30] sm:$0xff] %v3776_v32  ;;  %4170 = vmatmul.mubr.msk.f32.gmra.mxu1 %vm9017_vm1, %v3308_v60  ;;  %v3213_v52 = vsel %vm1359_vm7, %v3181_v24, %v2730_v25  ;;  %v9037_v24 = vld [vmem:[#allocation18_spill] sm:$0xff] }
 0x562   : > { %v2826_v57 = vpop.permute.xlu0 %2825 }
 0x563   : > { %v2732_v36 = vpop.permute.xlu1 %2731  ;;  %v3245_v13 = vsel %vm1392_vm8, %v3213_v52, %v2826_v57  ;;  %v9032_v57 = vld [vmem:[#allocation15_spill] sm:$0xff]  ;;  %v3362_v52 = vsel %vm1227_vm3, %v9037_v24, 0.0 }
 0x564   : > { %v3214_v33 = vsel %vm1359_vm7, %v3182_v35, %v2732_v36  ;;  %v3361_v36 = vsel %vm1227_vm3, %v9032_v57, 0.0  ;;  %v9043_v57 = vld [vmem:[#allocation24_spill] sm:$0xff] }
 0x566   : > { %v2828_v12 = vpop.permute.xlu0 %2827 }
 0x567   : > { %v2531_v55 = vpop.permute.xlu1 %2530  ;;  %v3246_v53 = vsel %vm1392_vm8, %v3214_v33, %v2828_v12  ;;  %v9039_v33 = vld [vmem:[#allocation20_spill] sm:$0xff] }
 0x568   : > { %v3151_v38 = vsel %vm1293_vm5, %v3119_v31, %v2531_v55 }
 0x56a   : > { %v2533_v50 = vpop.permute.xlu0 %2532 }
 0x56b   : > { %v2922_v11 = vpop.permute.xlu1 %2921  ;;  %v3152_v58 = vsel %vm1293_vm5, %v3120_v30, %v2533_v50  ;;  %v9033_v50 = vld [vmem:[#allocation16_spill] sm:$0xff]  ;;  %vm9034_vm5 = vmmov %vm8978_vm0 }
 0x56c   : > { %v4144_v28 = vpop.f32.mrf.mxu1  ;;  %v3277_v3 = vsel %vm1425_vm9, %v3245_v13, %v2922_v11 }
 0x56d   : > { %v3593_v41 = vadd.f32 %v4144_v28, %v3359_v29  ;;  %v3360_v29 = vsel %vm1227_vm3, %v9033_v50, 0.0 }
 0x56e   : > { %v2924_v47 = vpop.permute.xlu0 %2923  ;;  %v3587_v61 = vpop.f32.mrf.mxu1 }
 0x56f   : > { %vm3715_vm14 = vcmp.ge.f32.partialorder %v3593_v41, 0.0  ;;  %v3747_v16 = vmul.f32 0.01, %v3593_v41  ;;  %v2633_v14 = vpop.permute.xlu1 %2632  ;;  %v3588_v6 = vadd.f32 %v3587_v61, %v3358_v8  ;;  %v3278_v15 = vsel %vm1425_vm9, %v3246_v53, %v2924_v47 }
 0x570   : > { %v3183_v12 = vsel %vm1326_vm6, %v3151_v38, %v2633_v14  ;;  %v9042_v38 = vld [vmem:[#allocation23_spill] sm:$0xff] }
 0x571   : > { %v3779_v63 = vsel %vm3715_vm14, %v3593_v41, %v3747_v16  ;;  %vm3714_vm2 = vcmp.ge.f32.partialorder %v3588_v6, 0.0  ;;  %v3746_v4 = vmul.f32 0.01, %v3588_v6 }
 0x572   : > { %3811 = vst [vmem:[%s7807_s6 + $0x48] sm:$0xff] %v3779_v63  ;;  %v2635_v18 = vpop.permute.xlu0 %2634 }
 0x573   : > { %v3778_v39 = vsel %vm3714_vm2, %v3588_v6, %v3746_v4  ;;  %v3018_v1 = vpop.permute.xlu1 %3017  ;;  %v3184_v5 = vsel %vm1326_vm6, %v3152_v58, %v2635_v18  ;;  %v9036_v6 = vld [vmem:[#allocation17_spill] sm:$0xff] }
 0x574   : > { %3810 = vst [vmem:[%s7807_s6 + $0x40] sm:$0xff] %v3778_v39  ;;  %v3309_v44 = vsel %vm1458_vm10, %v3277_v3, %v3018_v1  ;;  %v3363_v17 = vsel %vm1227_vm3, %v9036_v6, 0.0  ;;  %v9038_v3 = vld [vmem:[#allocation19_spill] sm:$0xff] }
 0x575   : > { %4172 = vmatprep.mubr.msk.f32.mxu1 %vm9026_vm11, %v3309_v44  ;;  %v3365_v39 = vsel %vm1227_vm3, %v9038_v3, 0.0  ;;  %v3364_v44 = vsel %vm1227_vm3, %v9039_v33, 0.0 }
 0x576   : > { %v3020_v0 = vpop.permute.xlu0 %3019 }
 0x577   : > { %v2734_v22 = vpop.permute.xlu1 %2733  ;;  %v3310_v23 = vsel %vm1458_vm10, %v3278_v15, %v3020_v0 }
 0x578   : > { %4173 = vmatmul.mubr.msk.f32.gmra.mxu1 %vm9027_vm15, %v3310_v23  ;;  %v3215_v11 = vsel %vm1359_vm7, %v3183_v12, %v2734_v22 }
 0x57a   : > { %v4240_v56 = vpop.permute.xlu0 %4239 }
 0x57b   : > { %v2736_v45 = vpop.permute.xlu1 %2735  ;;  %v4242_v2 = vunpack.i.h.bf16 %v4240_v56  ;;  %v4241_v32 = vunpack.i.l.bf16 %v4240_v56  ;;  %v9040_v56 = vld [vmem:[#allocation21_spill] sm:$0xff] }
 0x57c   : > { %v3216_v25 = vsel %vm1359_vm7, %v3184_v5, %v2736_v45  ;;  %vm9035_vm7 = vmmov %vm8978_vm0  ;;  %v3367_v21 = vsel %vm1227_vm3, %v9040_v56, 0.0  ;;  %v9041_v45 = vld [vmem:[#allocation22_spill] sm:$0xff] }
 0x57d   : > { %v3248_v55 = vsel %vm1392_vm8, %v3216_v25, %v4242_v2  ;;  %v3247_v62 = vsel %vm1392_vm8, %v3215_v11, %v4241_v32  ;;  %v3366_v46 = vsel %vm1227_vm3, %v9041_v45, 0.0  ;;  %v3369_v25 = vsel %vm1227_vm3, %v9042_v38, 0.0 }
 0x57e   : > { %v4250_v60 = vpop.permute.xlu0 %4249 }
 0x57f   : > { %v4245_v9 = vpop.permute.xlu1 %4244  ;;  %v4251_v49 = vunpack.i.l.bf16 %v4250_v60  ;;  %v4252_v8 = vunpack.i.h.bf16 %v4250_v60 }
 0x580   : > { %v4247_v28 = vunpack.i.h.bf16 %v4245_v9  ;;  %v4246_v10 = vunpack.i.l.bf16 %v4245_v9  ;;  %v4147_v48 = vpop.f32.mrf.mxu1 }
 0x581   : > { %v3603_v41 = vadd.f32 %v4147_v48, %v3361_v36  ;;  %v3368_v36 = vsel %vm1227_vm3, %v9043_v57, 0.0 }
 0x582   : > { %v3279_v42 = vsel %vm1425_vm9, %v3247_v62, %v4246_v10  ;;  %v3280_v19 = vsel %vm1425_vm9, %v3248_v55, %v4247_v28  ;;  %v3597_v40 = vpop.f32.mrf.mxu1  ;;  %v9044_v10 = vld [vmem:[#allocation25_spill] sm:$0xff]  ;;  %v9045_v55 = vld [vmem:[#allocation26_spill] sm:$0xff] }
 0x583   : > { %vm3717_vm4 = vcmp.ge.f32.partialorder %v3603_v41, 0.0  ;;  %v3749_v37 = vmul.f32 0.01, %v3603_v41  ;;  %v3598_v47 = vadd.f32 %v3597_v40, %v3360_v29  ;;  %v3311_v61 = vsel %vm1458_vm10, %v3279_v42, %v4251_v49 }
 0x584   : > { %4175 = vmatprep.mubr.msk.f32.mxu1 %vm9034_vm5, %v3311_v61  ;;  %v3312_v54 = vsel %vm1458_vm10, %v3280_v19, %v4252_v8  ;;  %v3371_v8 = vsel %vm1227_vm3, %v9044_v10, 0.0  ;;  %v3370_v62 = vsel %vm1227_vm3, %v9045_v55, 0.0 }
 0x585   : > { %v3781_v20 = vsel %vm3717_vm4, %v3603_v41, %v3749_v37  ;;  %vm3716_vm6 = vcmp.ge.f32.partialorder %v3598_v47, 0.0  ;;  %v3748_v16 = vmul.f32 0.01, %v3598_v47  ;;  %4176 = vmatmul.mubr.msk.f32.gmra.mxu1 %vm9035_vm7, %v3312_v54  ;;  %v9046_v54 = vld [vmem:[#allocation27_spill] sm:$0xff] }
 0x586   : > { %3813 = vst [vmem:[%s7807_s6 + $0x58] sm:$0xff] %v3781_v20  ;;  %v3373_v20 = vsel %vm1227_vm3, %v9046_v54, 0.0 }
 0x587   : > { %v3780_v14 = vsel %vm3716_vm6, %v3598_v47, %v3748_v16 }
 0x588   : > { %3812 = vst [vmem:[%s7807_s6 + $0x50] sm:$0xff] %v3780_v14  ;;  %v9047_v14 = vld [vmem:[#allocation28_spill] sm:$0xff] }
 0x589   : > { %v3372_v6 = vsel %vm1227_vm3, %v9047_v14, 0.0 }
 0x594   : > { %v4150_v7 = vpop.f32.mrf.mxu1 }
 0x595   : > { %v3613_v63 = vadd.f32 %v4150_v7, %v3363_v17 }
 0x596   : > { %v3607_v4 = vpop.f32.mrf.mxu1 }
 0x597   : > { %vm3719_vm8 = vcmp.ge.f32.partialorder %v3613_v63, 0.0  ;;  %v3751_v43 = vmul.f32 0.01, %v3613_v63  ;;  %v3608_v27 = vadd.f32 %v3607_v4, %v3362_v52 }
 0x599   : > { %v3783_v13 = vsel %vm3719_vm8, %v3613_v63, %v3751_v43  ;;  %vm3718_vm9 = vcmp.ge.f32.partialorder %v3608_v27, 0.0  ;;  %v3750_v18 = vmul.f32 0.01, %v3608_v27 }
 0x59a   : > { %3815 = vst [vmem:[%s7807_s6 + $0x68] sm:$0xff] %v3783_v13 }
 0x59b   : > { %v3782_v35 = vsel %vm3718_vm9, %v3608_v27, %v3750_v18  ;;  %v9048_v27 = vld [vmem:[#allocation29_spill] sm:$0xff] }
 0x59c   : > { %3814 = vst [vmem:[%s7807_s6 + $0x60] sm:$0xff] %v3782_v35  ;;  %v3375_v13 = vsel %vm1227_vm3, %v9048_v27, 0.0  ;;  %v9049_v35 = vld [vmem:[#allocation30_spill] sm:$0xff] }
 0x59d   : > { %v3374_v3 = vsel %vm1227_vm3, %v9049_v35, 0.0 }
 0x5a8   : > { %v4153_v1 = vpop.f32.mrf.mxu1 }
 0x5a9   : > { %v3623_v53 = vadd.f32 %v4153_v1, %v3365_v39 }
 0x5aa   : > { %v3617_v15 = vpop.f32.mrf.mxu1 }
 0x5ab   : > { %vm3721_vm10 = vcmp.ge.f32.partialorder %v3623_v53, 0.0  ;;  %v3753_v0 = vmul.f32 0.01, %v3623_v53  ;;  %v3618_v22 = vadd.f32 %v3617_v15, %v3364_v44 }
 0x5ad   : > { %v3785_v23 = vsel %vm3721_vm10, %v3623_v53, %v3753_v0  ;;  %vm3720_vm12 = vcmp.ge.f32.partialorder %v3618_v22, 0.0  ;;  %v3752_v51 = vmul.f32 0.01, %v3618_v22 }
 0x5ae   : > { %3817 = vst [vmem:[%s7807_s6 + $0x78] sm:$0xff] %v3785_v23 }
 0x5af   : > { %v3784_v26 = vsel %vm3720_vm12, %v3618_v22, %v3752_v51  ;;  %v9050_v22 = vld [vmem:[#allocation31_spill] sm:$0xff] }
 0x5b0   : > { %3816 = vst [vmem:[%s7807_s6 + $0x70] sm:$0xff] %v3784_v26  ;;  %v3377_v23 = vsel %vm1227_vm3, %v9050_v22, 0.0  ;;  %v9051_v26 = vld [vmem:[#allocation32_spill] sm:$0xff] }
 0x5b1   : > { %v3376_v56 = vsel %vm1227_vm3, %v9051_v26, 0.0 }
 0x5bc   : > { %v4156_v30 = vpop.f32.mrf.mxu1 }
 0x5bd   : > { %v3633_v34 = vadd.f32 %v4156_v30, %v3367_v21 }
 0x5be   : > { %v3627_v58 = vpop.f32.mrf.mxu1 }
 0x5bf   : > { %vm3723_vm13 = vcmp.ge.f32.partialorder %v3633_v34, 0.0  ;;  %v3755_v59 = vmul.f32 0.01, %v3633_v34  ;;  %v3628_v31 = vadd.f32 %v3627_v58, %v3366_v46 }
 0x5c1   : > { %v3787_v5 = vsel %vm3723_vm13, %v3633_v34, %v3755_v59  ;;  %vm3722_vm0 = vcmp.ge.f32.partialorder %v3628_v31, 0.0  ;;  %v3754_v2 = vmul.f32 0.01, %v3628_v31 }
 0x5c2   : > { %3819 = vst [vmem:[%s7807_s6 + $0x88] sm:$0xff] %v3787_v5 }
 0x5c3   : > { %v3786_v32 = vsel %vm3722_vm0, %v3628_v31, %v3754_v2  ;;  %v9052_v31 = vld [vmem:[#allocation33_spill] sm:$0xff] }
 0x5c4   : > { %3818 = vst [vmem:[%s7807_s6 + $0x80] sm:$0xff] %v3786_v32  ;;  %v3379_v5 = vsel %vm1227_vm3, %v9052_v31, 0.0  ;;  %v9053_v32 = vld [vmem:[#allocation34_spill] sm:$0xff] }
 0x5c5   : > { %v3378_v38 = vsel %vm1227_vm3, %v9053_v32, 0.0 }
 0x5d0   : > { %v4159_v60 = vpop.f32.mrf.mxu1 }
 0x5d1   : > { %v3643_v12 = vadd.f32 %v4159_v60, %v3369_v25 }
 0x5d2   : > { %v3637_v9 = vpop.f32.mrf.mxu1 }
 0x5d3   : > { %vm3725_vm1 = vcmp.ge.f32.partialorder %v3643_v12, 0.0  ;;  %v3757_v49 = vmul.f32 0.01, %v3643_v12  ;;  %v3638_v50 = vadd.f32 %v3637_v9, %v3368_v36 }
 0x5d5   : > { %v3789_v29 = vsel %vm3725_vm1, %v3643_v12, %v3757_v49  ;;  %vm3724_vm14 = vcmp.ge.f32.partialorder %v3638_v50, 0.0  ;;  %v3756_v11 = vmul.f32 0.01, %v3638_v50 }
 0x5d6   : > { %3821 = vst [vmem:[%s7807_s6 + $0x98] sm:$0xff] %v3789_v29 }
 0x5d7   : > { %v3788_v28 = vsel %vm3724_vm14, %v3638_v50, %v3756_v11  ;;  %v9054_v50 = vld [vmem:[#allocation121_spill] sm:$0xff] }
 0x5d8   : > { %3820 = vst [vmem:[%s7807_s6 + $0x90] sm:$0xff] %v3788_v28  ;;  %v3381_v29 = vsel %vm1227_vm3, %v9054_v50, 0.0  ;;  %v9055_v28 = vld [vmem:[#allocation123_spill] sm:$0xff] }
 0x5d9   : > { %v3380_v10 = vsel %vm1227_vm3, %v9055_v28, 0.0 }
 0x5e4   : > { %v4162_v48 = vpop.f32.mrf.mxu1 }
 0x5e5   : > { %v3653_v41 = vadd.f32 %v4162_v48, %v3371_v8 }
 0x5e6   : > { %v3647_v42 = vpop.f32.mrf.mxu1 }
 0x5e7   : > { %vm3727_vm2 = vcmp.ge.f32.partialorder %v3653_v41, 0.0  ;;  %v3759_v19 = vmul.f32 0.01, %v3653_v41  ;;  %v3648_v40 = vadd.f32 %v3647_v42, %v3370_v62 }
 0x5e9   : > { %v3791_v37 = vsel %vm3727_vm2, %v3653_v41, %v3759_v19  ;;  %vm3726_vm11 = vcmp.ge.f32.partialorder %v3648_v40, 0.0  ;;  %v3758_v47 = vmul.f32 0.01, %v3648_v40 }
 0x5ea   : > { %3823 = vst [vmem:[%s7807_s6 + $0xa8] sm:$0xff] %v3791_v37 }
 0x5eb   : > { %v3790_v61 = vsel %vm3726_vm11, %v3648_v40, %v3758_v47 }
 0x5ec   : > { %3822 = vst [vmem:[%s7807_s6 + $0xa0] sm:$0xff] %v3790_v61 }
 0x5f8   : > { %v4165_v16 = vpop.f32.mrf.mxu1 }
 0x5f9   : > { %v3663_v17 = vadd.f32 %v4165_v16, %v3373_v20 }
 0x5fa   : > { %v3657_v7 = vpop.f32.mrf.mxu1 }
 0x5fb   : > { %vm3729_vm15 = vcmp.ge.f32.partialorder %v3663_v17, 0.0  ;;  %v3761_v24 = vmul.f32 0.01, %v3663_v17  ;;  %v3658_v52 = vadd.f32 %v3657_v7, %v3372_v6 }
 0x5fd   : > { %v3793_v63 = vsel %vm3729_vm15, %v3663_v17, %v3761_v24  ;;  %vm3728_vm4 = vcmp.ge.f32.partialorder %v3658_v52, 0.0  ;;  %v3760_v4 = vmul.f32 0.01, %v3658_v52 }
 0x5fe   : > { %3825 = vst [vmem:[%s7807_s6 + $0xb8] sm:$0xff] %v3793_v63 }
 0x5ff   : > { %v3792_v43 = vsel %vm3728_vm4, %v3658_v52, %v3760_v4 }
 0x600   : > { %3824 = vst [vmem:[%s7807_s6 + $0xb0] sm:$0xff] %v3792_v43 }
 0x60c   : > { %v4168_v18 = vpop.f32.mrf.mxu1 }
 0x60d   : > { %v3673_v39 = vadd.f32 %v4168_v18, %v3375_v13 }
 0x60e   : > { %v3667_v1 = vpop.f32.mrf.mxu1 }
 0x60f   : > { %vm3731_vm5 = vcmp.ge.f32.partialorder %v3673_v39, 0.0  ;;  %v3763_v33 = vmul.f32 0.01, %v3673_v39  ;;  %v3668_v44 = vadd.f32 %v3667_v1, %v3374_v3 }
 0x611   : > { %v3795_v53 = vsel %vm3731_vm5, %v3673_v39, %v3763_v33  ;;  %vm3730_vm6 = vcmp.ge.f32.partialorder %v3668_v44, 0.0  ;;  %v3762_v15 = vmul.f32 0.01, %v3668_v44 }
 0x612   : > { %3827 = vst [vmem:[%s7807_s6 + $0xc8] sm:$0xff] %v3795_v53 }
 0x613   : > { %v3794_v0 = vsel %vm3730_vm6, %v3668_v44, %v3762_v15 }
 0x614   : > { %3826 = vst [vmem:[%s7807_s6 + $0xc0] sm:$0xff] %v3794_v0 }
 0x620   : > { %v4171_v51 = vpop.f32.mrf.mxu1 }
 0x621   : > { %v3683_v21 = vadd.f32 %v4171_v51, %v3377_v23 }
 0x622   : > { %v3677_v30 = vpop.f32.mrf.mxu1 }
 0x623   : > { %vm3733_vm7 = vcmp.ge.f32.partialorder %v3683_v21, 0.0  ;;  %v3765_v45 = vmul.f32 0.01, %v3683_v21  ;;  %v3678_v46 = vadd.f32 %v3677_v30, %v3376_v56 }
 0x625   : > { %v3797_v34 = vsel %vm3733_vm7, %v3683_v21, %v3765_v45  ;;  %vm3732_vm8 = vcmp.ge.f32.partialorder %v3678_v46, 0.0  ;;  %v3764_v58 = vmul.f32 0.01, %v3678_v46 }
 0x626   : > { %3829 = vst [vmem:[%s7807_s6 + $0xd8] sm:$0xff] %v3797_v34 }
 0x627   : > { %v3796_v59 = vsel %vm3732_vm8, %v3678_v46, %v3764_v58 }
 0x628   : > { %3828 = vst [vmem:[%s7807_s6 + $0xd0] sm:$0xff] %v3796_v59 }
 0x638   : > { %v4174_v2 = vpop.f32.mrf.mxu1 }
 0x639   : > { %v3693_v25 = vadd.f32 %v4174_v2, %v3379_v5 }
 0x63a   : > { %v3687_v60 = vpop.f32.mrf.mxu1 }
 0x63b   : > { %vm3735_vm9 = vcmp.ge.f32.partialorder %v3693_v25, 0.0  ;;  %v3767_v57 = vmul.f32 0.01, %v3693_v25  ;;  %v3688_v36 = vadd.f32 %v3687_v60, %v3378_v38 }
 0x63d   : > { %v3799_v12 = vsel %vm3735_vm9, %v3693_v25, %v3767_v57  ;;  %vm3734_vm10 = vcmp.ge.f32.partialorder %v3688_v36, 0.0  ;;  %v3766_v9 = vmul.f32 0.01, %v3688_v36 }
 0x63e   : > { %3831 = vst [vmem:[%s7807_s6 + $0xe8] sm:$0xff] %v3799_v12 }
 0x63f   : > { %v3798_v49 = vsel %vm3734_vm10, %v3688_v36, %v3766_v9 }
 0x640   : > { %3830 = vst [vmem:[%s7807_s6 + $0xe0] sm:$0xff] %v3798_v49 }
 0x645   : > { %v4177_v11 = vpop.f32.mrf.mxu1 }
 0x646   : > { %v3703_v8 = vadd.f32 %v4177_v11, %v3381_v29 }
 0x647   : > { %v3697_v48 = vpop.f32.mrf.mxu1 }
 0x648   : > { %vm3737_vm12 = vcmp.ge.f32.partialorder %v3703_v8, 0.0  ;;  %v3769_v55 = vmul.f32 0.01, %v3703_v8  ;;  %v3698_v62 = vadd.f32 %v3697_v48, %v3380_v10 }
 0x64a   : > { %v3801_v41 = vsel %vm3737_vm12, %v3703_v8, %v3769_v55  ;;  %vm3736_vm13 = vcmp.ge.f32.partialorder %v3698_v62, 0.0  ;;  %v3768_v42 = vmul.f32 0.01, %v3698_v62 }
 0x64b   : > { %3833 = vst [vmem:[%s7807_s6 + $0xf8] sm:$0xff] %v3801_v41 }
 0x64c   : > { %v3800_v19 = vsel %vm3736_vm13, %v3698_v62, %v3768_v42 }
 0x64d   : > { %3832 = vst [vmem:[%s7807_s6 + $0xf0] sm:$0xff] %v3800_v19 }
 0x64e   : > { %4298 = shalt.err (!%p4295_p3)
}
 0x64f   : > { %s4299_s19 = scalar_lea.hbm %s8034_s28, 4096  ;;  %s4303_s25 = scalar_lea.hbm %s8086_s3, 8192 }
 0x650   : > { %p4300_p4 = scmp.ne.s32.totalorder %s8034_s28, %s4299_s19  ;;  %p4304_p9 = scmp.lt.s32.totalorder %s8034_s28, %s8086_s3 }
 0x651   : > { %p4305_p10 = scmp.lt.s32.totalorder %s4303_s25, %s4299_s19 }
 0x652   : > { %p4301_p7 = pnand %p4300_p4, %p4416_p5 }
 0x653   : > { %p4306_p11 = por %p4305_p10, %p4304_p9 }
 0x654   : > { %p4302_p8 = pneg %p4301_p7 }
 0x656   : > { %p4307_p12 = pnand %p4306_p11, %p4302_p8 }
 0x658   : > { %4310 = shalt.err (!%p4307_p12)
}
 0x659   : > { %s4357_s5 = smov 128  }
 0x65a   : > { %4179 = dma.vmem_to_hbm [thread:$0]  (%p4416_p5), %s8037_s8, 4096, %s8034_s28, %s8042_s16, %s4357_s5, %s4357_s5, %s4348_s30  }
 0x65b PF: > { %p4185_p13 = scmp.ge.s32.totalorder %s4345_s15, 2  ;;  %s3863_s6 = sand.u32 1, %s4333_s12  }
 0x65c   : > { %s3864_s7 = scalar_lea.sflag [#allocation3], %s3863_s6 }
 0x65d   : > { %p4182_p0 = pnand %p4185_p13, %p4420_p6 }
 0x65f   : > { %p4183_p1 = pneg %p4182_p0 }
 0x661   : > { %4328 = dma.done.wait (%p4183_p1), %s3864_s7, 4096  }
 0x662   : > { %4330 = vsyncadd (%p4183_p1), %s3864_s7, 4294963200  ;;  %p13_p2 = scmp.ge.s32.totalorder %s4403_s18, 4   ;;  %s9056_s12 = smov %s4337_s13 }
 0x663   : > { %s9057_s13 = smov %s4341_s14  ;;  %s9058_s14 = smov %s4414_s21 }
 0x664   : > { %s9059_s15 = smov %s4403_s18  ;;  %15 = sbr.rel (!%p13_p2) target bundleno = 3 (0x3), region = 67 }
 0x669   :  { %3869 = vsyncpa [#allocation3], 1 }
 0x66a   :  { %3871 = vsyncpa [#allocation3 + $0x1], 1 }

</bundles_post_ra>
